<compile_context>
chip_gen: v7x
topology: tpu7x:2x2x1
jax: 0.10.0
libtpu: 0.0.40
codegen_flags: <defaults>
</compile_context>

<pallas_src>
import jax
import jax.numpy as jnp
from jax.experimental import pallas as pl
from jax.experimental.pallas import tpu as pltpu


# ---------------------------------------------------------------------------
# Fused ResidualBlock kernel (one batch element per grid step)
# ---------------------------------------------------------------------------
def _residual_block_kernel(x_ref, w1_ref, w2_ref, o_ref, slab_ref):
    # x_ref, o_ref : (1, H, W, C)      f32 NHWC block of one sample
    # w*_ref       : (3, 3*C, C)       bf16; row kh, K dim = kw-major x Cin
    # slab_ref     : (H+2, W, 3*C)     bf16 VMEM scratch (kw-folded taps)
    _, H, W, C = x_ref.shape
    HW = H * W

    def build_slab(hb):
        # hb: (H, W, C) bf16.  Reflection pad (pad=1) and fold the three kw
        # taps onto the lane axis:
        #   slab[r, j, kw*C + c] = hp[r, j + kw, c]
        # where hp is the (H+2, W+2) reflection-padded image.
        vp = jnp.concatenate([hb[1:2], hb, hb[H - 2:H - 1]], axis=0)  # (H+2,W,C)
        left = jnp.concatenate([vp[:, 1:2], vp[:, 0:W - 1]], axis=1)  # kw = 0
        right = jnp.concatenate([vp[:, 1:W], vp[:, W - 2:W - 1]], axis=1)  # kw=2
        # Three lane-block stores (lane offsets 0, C, 2C -> aligned for C=128k).
        slab_ref[:, :, 0:C] = left
        slab_ref[:, :, C:2 * C] = vp
        slab_ref[:, :, 2 * C:3 * C] = right

    def conv3x3(w_ref):
        # 3x3 "valid" conv as 3 MXU matmuls with K = 3C.  The per-kh slice is
        # along the untiled major dim of the slab -> contiguous, no relayout.
        acc = jnp.dot(slab_ref[0:H].reshape(HW, 3 * C), w_ref[0],
                      preferred_element_type=jnp.float32)
        acc = acc + jnp.dot(slab_ref[1:H + 1].reshape(HW, 3 * C), w_ref[1],
                            preferred_element_type=jnp.float32)
        acc = acc + jnp.dot(slab_ref[2:H + 2].reshape(HW, 3 * C), w_ref[2],
                            preferred_element_type=jnp.float32)
        return acc                                            # (HW, C) f32

    def instance_norm(y):
        # InstanceNorm2d defaults: affine=False, eps=1e-5, biased variance.
        # Single pass: per-channel sum and sum-of-squares.
        inv_n = 1.0 / HW
        mean = jnp.sum(y, axis=0, keepdims=True) * inv_n
        ex2 = jnp.sum(y * y, axis=0, keepdims=True) * inv_n
        var = jnp.maximum(ex2 - mean * mean, 0.0)
        return (y - mean) * jax.lax.rsqrt(var + 1e-5)

    # ---- layer 1: pad -> conv -> IN -> ReLU (conv bias cancels in IN) ----
    build_slab(x_ref[0].astype(jnp.bfloat16))
    h = instance_norm(conv3x3(w1_ref))
    h = jnp.maximum(h, 0.0)

    # ---- layer 2: pad -> conv -> IN ----
    build_slab(h.reshape(H, W, C).astype(jnp.bfloat16))
    h = instance_norm(conv3x3(w2_ref))

    # ---- residual add: re-read the (VMEM-resident) input block ----
    o_ref[0] = x_ref[0] + h.reshape(H, W, C)


# ---------------------------------------------------------------------------
# Wrapper: layout prep (single NCHW<->NHWC transpose at the boundary) + call
# ---------------------------------------------------------------------------
def _vmem_budget_bytes(H, W, C):
    f32, bf16 = 4, 2
    io = 2 * 2 * H * W * C * f32            # double-buffered in + out blocks
    wts = 2 * 2 * 9 * C * C * bf16          # double-buffered w1 + w2
    slab = (H + 2) * W * 3 * C * bf16       # scratch
    temps = 8 * H * W * C * f32             # live f32/bf16 temporaries headroom
    est = (io + wts + slab + temps) * 3 // 2
    return int(min(max(est, 32 << 20), 60 << 20))   # safe on v7x's 64 MiB VMEM


def residual_block(x_nchw, params):
    """Forward of CycleGAN ResidualBlock. x_nchw: (B, C, H, W) float32."""
    w1, b1, w2, b2 = params
    # Per-channel conv biases cancel exactly in InstanceNorm(affine=False):
    # they are not needed inside the kernel.
    del b1, b2
    B, C, H, W = x_nchw.shape

    # Channels-last so C is the lane dimension everywhere inside the kernel.
    x = jnp.transpose(x_nchw, (0, 2, 3, 1))

    def prep_w(w):
        # OIHW -> (kh, kw*Cin, Cout): kw taps folded into the GEMM K dim,
        # matching the slab's lane ordering (kw-major, Cin-minor).
        return jnp.transpose(w, (2, 3, 1, 0)).reshape(3, 3 * C, C).astype(
            jnp.bfloat16)

    w1t, w2t = prep_w(w1), prep_w(w2)

    out = pl.pallas_call(
        _residual_block_kernel,
        out_shape=jax.ShapeDtypeStruct((B, H, W, C), jnp.float32),
        grid=(B,),
        in_specs=[
            pl.BlockSpec((1, H, W, C), lambda b: (b, 0, 0, 0)),
            # Constant index_map: fetched once, not re-DMA'd per grid step.
            pl.BlockSpec((3, 3 * C, C), lambda b: (0, 0, 0)),
            pl.BlockSpec((3, 3 * C, C), lambda b: (0, 0, 0)),
        ],
        out_specs=pl.BlockSpec((1, H, W, C), lambda b: (b, 0, 0, 0)),
        scratch_shapes=[pltpu.VMEM((H + 2, W, 3 * C), jnp.bfloat16)],
        compiler_params=pltpu.CompilerParams(
            dimension_semantics=("parallel",),        # megacore over batch
            vmem_limit_bytes=_vmem_budget_bytes(H, W, C),
        ),
    )(x, w1t, w2t)

    return jnp.transpose(out, (0, 3, 1, 2))


# ---------------------------------------------------------------------------
# Pure-JAX f32 reference (mirrors the PyTorch module exactly, incl. biases)
# ---------------------------------------------------------------------------
def _reference(x, params):
    w1, b1, w2, b2 = params

    def layer(h, w, b, relu):
        hp = jnp.pad(h, ((0, 0), (0, 0), (1, 1), (1, 1)), mode="reflect")
        h = jax.lax.conv_general_dilated(
            hp, w, window_strides=(1, 1), padding="VALID",
            dimension_numbers=("NCHW", "OIHW", "NCHW"),
            precision=jax.lax.Precision.HIGHEST)
        h = h + b[None, :, None, None]
        mean = jnp.mean(h, axis=(2, 3), keepdims=True)
        var = jnp.mean(jnp.square(h - mean), axis=(2, 3), keepdims=True)
        h = (h - mean) * jax.lax.rsqrt(var + 1e-5)
        return jnp.maximum(h, 0.0) if relu else h

    h = layer(x, w1, b1, relu=True)
    h = layer(h, w2, b2, relu=False)
    return x + h


if __name__ == "__main__":
    key = jax.random.PRNGKey(0)
    kx, kw1, kb1, kw2, kb2 = jax.random.split(key, 5)

    # Small demo shapes; C=128 keeps the lane axis dense (CycleGAN uses C=256).
    B, C, H, W = 2, 128, 16, 16
    fan_in = C * 3 * 3
    x = jax.random.normal(kx, (B, C, H, W), jnp.float32)
    params = (
        jax.random.normal(kw1, (C, C, 3, 3), jnp.float32) / jnp.sqrt(fan_in),
        0.01 * jax.random.normal(kb1, (C,), jnp.float32),
        jax.random.normal(kw2, (C, C, 3, 3), jnp.float32) / jnp.sqrt(fan_in),
        0.01 * jax.random.normal(kb2, (C,), jnp.float32),
    )

    y = jax.jit(residual_block)(x, params)
    jax.block_until_ready(y)
    assert y.shape == (B, C, H, W), y.shape

    # Correctness vs f32 reference (tolerance covers bf16 GEMM operands).
    y_ref = _reference(x, params)
    err = float(jnp.max(jnp.abs(y - y_ref)))
    assert err < 0.1, f"max abs error {err}"

    print("KERNEL_OK")
</pallas_src>

<mosaic_0001>
module attributes {stable_mosaic.version = 11 : i64} {
  func.func @_residual_block_kernel(%arg0: i32, %arg1: memref<1x16x16x128xf32, #tpu.memory_space<vmem>>, %arg2: memref<3x384x128xbf16, #tpu.memory_space<vmem>>, %arg3: memref<3x384x128xbf16, #tpu.memory_space<vmem>>, %arg4: memref<1x16x16x128xf32, #tpu.memory_space<vmem>>, %arg5: memref<18x16x384xbf16, #tpu.memory_space<vmem>>) attributes {dimension_semantics = [#tpu.dimension_semantics<parallel>], iteration_bounds = array<i64: 2>, scalar_prefetch = 0 : i64, scratch_operands = 1 : i64, tpu.core_type = #tpu.core_type<tc>, window_params = [{transform_indices = @transform_0, window_bounds = array<i64: 1, 16, 16, 128>}, {pipeline_mode = #tpu.pipeline_mode<synchronous>, transform_indices = @transform_1, window_bounds = array<i64: 3, 384, 128>}, {pipeline_mode = #tpu.pipeline_mode<synchronous>, transform_indices = @transform_2, window_bounds = array<i64: 3, 384, 128>}, {transform_indices = @transform_3, window_bounds = array<i64: 1, 16, 16, 128>}]} {
    %c0 = arith.constant 0 : index
    %c0_0 = arith.constant 0 : index
    %c0_1 = arith.constant 0 : index
    %c0_2 = arith.constant 0 : index
    %0 = vector.load %arg1[%c0, %c0_0, %c0_1, %c0_2] : memref<1x16x16x128xf32, #tpu.memory_space<vmem>>, vector<1x16x16x128xf32>
    %1 = vector.shape_cast %0 : vector<1x16x16x128xf32> to vector<16x16x128xf32>
    %2 = arith.truncf %1 : vector<16x16x128xf32> to vector<16x16x128xbf16>
    %3 = vector.extract_strided_slice %2 {offsets = [1, 0, 0], sizes = [1, 16, 128], strides = [1, 1, 1]} : vector<16x16x128xbf16> to vector<1x16x128xbf16>
    %4 = vector.extract_strided_slice %2 {offsets = [14, 0, 0], sizes = [1, 16, 128], strides = [1, 1, 1]} : vector<16x16x128xbf16> to vector<1x16x128xbf16>
    %5 = tpu.concatenate %3, %2, %4 in 0 : vector<1x16x128xbf16>, vector<16x16x128xbf16>, vector<1x16x128xbf16> -> vector<18x16x128xbf16>
    %6 = vector.extract_strided_slice %5 {offsets = [0, 1, 0], sizes = [18, 1, 128], strides = [1, 1, 1]} : vector<18x16x128xbf16> to vector<18x1x128xbf16>
    %7 = vector.extract_strided_slice %5 {offsets = [0, 0, 0], sizes = [18, 15, 128], strides = [1, 1, 1]} : vector<18x16x128xbf16> to vector<18x15x128xbf16>
    %8 = tpu.concatenate %6, %7 in 1 : vector<18x1x128xbf16>, vector<18x15x128xbf16> -> vector<18x16x128xbf16>
    %9 = vector.extract_strided_slice %5 {offsets = [0, 1, 0], sizes = [18, 15, 128], strides = [1, 1, 1]} : vector<18x16x128xbf16> to vector<18x15x128xbf16>
    %10 = vector.extract_strided_slice %5 {offsets = [0, 14, 0], sizes = [18, 1, 128], strides = [1, 1, 1]} : vector<18x16x128xbf16> to vector<18x1x128xbf16>
    %11 = tpu.concatenate %9, %10 in 1 : vector<18x15x128xbf16>, vector<18x1x128xbf16> -> vector<18x16x128xbf16>
    %c0_3 = arith.constant 0 : index
    %c0_4 = arith.constant 0 : index
    %c0_5 = arith.constant 0 : index
    %12 = vector.load %arg5[%c0_3, %c0_4, %c0_5] : memref<18x16x384xbf16, #tpu.memory_space<vmem>>, vector<18x16x128xbf16>
    tpu.vector_store %arg5[%c0_3, %c0_4, %c0_5], %8 {strides = array<i32>} : memref<18x16x384xbf16, #tpu.memory_space<vmem>>, vector<18x16x128xbf16>,
    %c0_6 = arith.constant 0 : index
    %c0_7 = arith.constant 0 : index
    %c128 = arith.constant 128 : index
    %13 = vector.load %arg5[%c0_6, %c0_7, %c128] : memref<18x16x384xbf16, #tpu.memory_space<vmem>>, vector<18x16x128xbf16>
    tpu.vector_store %arg5[%c0_6, %c0_7, %c128], %5 {strides = array<i32>} : memref<18x16x384xbf16, #tpu.memory_space<vmem>>, vector<18x16x128xbf16>,
    %c0_8 = arith.constant 0 : index
    %c0_9 = arith.constant 0 : index
    %c256 = arith.constant 256 : index
    %14 = vector.load %arg5[%c0_8, %c0_9, %c256] : memref<18x16x384xbf16, #tpu.memory_space<vmem>>, vector<18x16x128xbf16>
    tpu.vector_store %arg5[%c0_8, %c0_9, %c256], %11 {strides = array<i32>} : memref<18x16x384xbf16, #tpu.memory_space<vmem>>, vector<18x16x128xbf16>,
    %c0_10 = arith.constant 0 : index
    %c0_11 = arith.constant 0 : index
    %c0_12 = arith.constant 0 : index
    %15 = vector.load %arg5[%c0_10, %c0_11, %c0_12] : memref<18x16x384xbf16, #tpu.memory_space<vmem>>, vector<16x16x384xbf16>
    %16 = vector.shape_cast %15 : vector<16x16x384xbf16> to vector<256x384xbf16>
    %c0_13 = arith.constant 0 : index
    %c0_14 = arith.constant 0 : index
    %c0_15 = arith.constant 0 : index
    %17 = vector.load %arg2[%c0_13, %c0_14, %c0_15] : memref<3x384x128xbf16, #tpu.memory_space<vmem>>, vector<1x384x128xbf16>
    %18 = vector.shape_cast %17 : vector<1x384x128xbf16> to vector<384x128xbf16>
    %cst = arith.constant dense<0.000000e+00> : vector<256x128xf32>
    %19 = tpu.matmul %16, %18, %cst {dimension_numbers = #tpu.dot_dimension_numbers<[1], [0], [0], [1], [0, 0, 1, 1], [], []>} : vector<256x384xbf16>, vector<384x128xbf16>, vector<256x128xf32> -> vector<256x128xf32>
    %c1 = arith.constant 1 : index
    %c0_16 = arith.constant 0 : index
    %c0_17 = arith.constant 0 : index
    %20 = vector.load %arg5[%c1, %c0_16, %c0_17] : memref<18x16x384xbf16, #tpu.memory_space<vmem>>, vector<16x16x384xbf16>
    %21 = vector.shape_cast %20 : vector<16x16x384xbf16> to vector<256x384xbf16>
    %c1_18 = arith.constant 1 : index
    %c0_19 = arith.constant 0 : index
    %c0_20 = arith.constant 0 : index
    %22 = vector.load %arg2[%c1_18, %c0_19, %c0_20] : memref<3x384x128xbf16, #tpu.memory_space<vmem>>, vector<1x384x128xbf16>
    %23 = vector.shape_cast %22 : vector<1x384x128xbf16> to vector<384x128xbf16>
    %cst_21 = arith.constant dense<0.000000e+00> : vector<256x128xf32>
    %24 = tpu.matmul %21, %23, %cst_21 {dimension_numbers = #tpu.dot_dimension_numbers<[1], [0], [0], [1], [0, 0, 1, 1], [], []>} : vector<256x384xbf16>, vector<384x128xbf16>, vector<256x128xf32> -> vector<256x128xf32>
    %25 = arith.addf %19, %24 : vector<256x128xf32>
    %c2 = arith.constant 2 : index
    %c0_22 = arith.constant 0 : index
    %c0_23 = arith.constant 0 : index
    %26 = vector.load %arg5[%c2, %c0_22, %c0_23] : memref<18x16x384xbf16, #tpu.memory_space<vmem>>, vector<16x16x384xbf16>
    %27 = vector.shape_cast %26 : vector<16x16x384xbf16> to vector<256x384xbf16>
    %c2_24 = arith.constant 2 : index
    %c0_25 = arith.constant 0 : index
    %c0_26 = arith.constant 0 : index
    %28 = vector.load %arg2[%c2_24, %c0_25, %c0_26] : memref<3x384x128xbf16, #tpu.memory_space<vmem>>, vector<1x384x128xbf16>
    %29 = vector.shape_cast %28 : vector<1x384x128xbf16> to vector<384x128xbf16>
    %cst_27 = arith.constant dense<0.000000e+00> : vector<256x128xf32>
    %30 = tpu.matmul %27, %29, %cst_27 {dimension_numbers = #tpu.dot_dimension_numbers<[1], [0], [0], [1], [0, 0, 1, 1], [], []>} : vector<256x384xbf16>, vector<384x128xbf16>, vector<256x128xf32> -> vector<256x128xf32>
    %31 = arith.addf %25, %30 : vector<256x128xf32>
    %cst_28 = arith.constant dense<0.000000e+00> : vector<128xf32>
    %32 = vector.multi_reduction <add>, %31, %cst_28 [0] : vector<256x128xf32> to vector<128xf32>
    %33 = vector.shape_cast %32 : vector<128xf32> to vector<1x128xf32>
    %cst_29 = arith.constant 3.906250e-03 : f32
    %34 = vector.broadcast %cst_29 : f32 to vector<1x128xf32>
    %35 = arith.mulf %33, %34 : vector<1x128xf32>
    %36 = arith.mulf %31, %31 : vector<256x128xf32>
    %cst_30 = arith.constant dense<0.000000e+00> : vector<128xf32>
    %37 = vector.multi_reduction <add>, %36, %cst_30 [0] : vector<256x128xf32> to vector<128xf32>
    %38 = vector.shape_cast %37 : vector<128xf32> to vector<1x128xf32>
    %cst_31 = arith.constant 3.906250e-03 : f32
    %39 = vector.broadcast %cst_31 : f32 to vector<1x128xf32>
    %40 = arith.mulf %38, %39 : vector<1x128xf32>
    %41 = arith.mulf %35, %35 : vector<1x128xf32>
    %42 = arith.subf %40, %41 : vector<1x128xf32>
    %cst_32 = arith.constant 0.000000e+00 : f32
    %43 = vector.broadcast %cst_32 : f32 to vector<1x128xf32>
    %44 = arith.maximumf %42, %43 : vector<1x128xf32>
    %45 = vector.broadcast %35 : vector<1x128xf32> to vector<256x128xf32>
    %46 = arith.subf %31, %45 : vector<256x128xf32>
    %cst_33 = arith.constant 9.99999974E-6 : f32
    %47 = vector.broadcast %cst_33 : f32 to vector<1x128xf32>
    %48 = arith.addf %44, %47 : vector<1x128xf32>
    %49 = math.rsqrt %48 : vector<1x128xf32>
    %50 = vector.broadcast %49 : vector<1x128xf32> to vector<256x128xf32>
    %51 = arith.mulf %46, %50 : vector<256x128xf32>
    %cst_34 = arith.constant 0.000000e+00 : f32
    %52 = vector.broadcast %cst_34 : f32 to vector<256x128xf32>
    %53 = arith.maximumf %51, %52 : vector<256x128xf32>
    %54 = vector.shape_cast %53 : vector<256x128xf32> to vector<16x16x128xf32>
    %55 = arith.truncf %54 : vector<16x16x128xf32> to vector<16x16x128xbf16>
    %56 = vector.extract_strided_slice %55 {offsets = [1, 0, 0], sizes = [1, 16, 128], strides = [1, 1, 1]} : vector<16x16x128xbf16> to vector<1x16x128xbf16>
    %57 = vector.extract_strided_slice %55 {offsets = [14, 0, 0], sizes = [1, 16, 128], strides = [1, 1, 1]} : vector<16x16x128xbf16> to vector<1x16x128xbf16>
    %58 = tpu.concatenate %56, %55, %57 in 0 : vector<1x16x128xbf16>, vector<16x16x128xbf16>, vector<1x16x128xbf16> -> vector<18x16x128xbf16>
    %59 = vector.extract_strided_slice %58 {offsets = [0, 1, 0], sizes = [18, 1, 128], strides = [1, 1, 1]} : vector<18x16x128xbf16> to vector<18x1x128xbf16>
    %60 = vector.extract_strided_slice %58 {offsets = [0, 0, 0], sizes = [18, 15, 128], strides = [1, 1, 1]} : vector<18x16x128xbf16> to vector<18x15x128xbf16>
    %61 = tpu.concatenate %59, %60 in 1 : vector<18x1x128xbf16>, vector<18x15x128xbf16> -> vector<18x16x128xbf16>
    %62 = vector.extract_strided_slice %58 {offsets = [0, 1, 0], sizes = [18, 15, 128], strides = [1, 1, 1]} : vector<18x16x128xbf16> to vector<18x15x128xbf16>
    %63 = vector.extract_strided_slice %58 {offsets = [0, 14, 0], sizes = [18, 1, 128], strides = [1, 1, 1]} : vector<18x16x128xbf16> to vector<18x1x128xbf16>
    %64 = tpu.concatenate %62, %63 in 1 : vector<18x15x128xbf16>, vector<18x1x128xbf16> -> vector<18x16x128xbf16>
    %c0_35 = arith.constant 0 : index
    %c0_36 = arith.constant 0 : index
    %c0_37 = arith.constant 0 : index
    %65 = vector.load %arg5[%c0_35, %c0_36, %c0_37] : memref<18x16x384xbf16, #tpu.memory_space<vmem>>, vector<18x16x128xbf16>
    tpu.vector_store %arg5[%c0_35, %c0_36, %c0_37], %61 {strides = array<i32>} : memref<18x16x384xbf16, #tpu.memory_space<vmem>>, vector<18x16x128xbf16>,
    %c0_38 = arith.constant 0 : index
    %c0_39 = arith.constant 0 : index
    %c128_40 = arith.constant 128 : index
    %66 = vector.load %arg5[%c0_38, %c0_39, %c128_40] : memref<18x16x384xbf16, #tpu.memory_space<vmem>>, vector<18x16x128xbf16>
    tpu.vector_store %arg5[%c0_38, %c0_39, %c128_40], %58 {strides = array<i32>} : memref<18x16x384xbf16, #tpu.memory_space<vmem>>, vector<18x16x128xbf16>,
    %c0_41 = arith.constant 0 : index
    %c0_42 = arith.constant 0 : index
    %c256_43 = arith.constant 256 : index
    %67 = vector.load %arg5[%c0_41, %c0_42, %c256_43] : memref<18x16x384xbf16, #tpu.memory_space<vmem>>, vector<18x16x128xbf16>
    tpu.vector_store %arg5[%c0_41, %c0_42, %c256_43], %64 {strides = array<i32>} : memref<18x16x384xbf16, #tpu.memory_space<vmem>>, vector<18x16x128xbf16>,
    %c0_44 = arith.constant 0 : index
    %c0_45 = arith.constant 0 : index
    %c0_46 = arith.constant 0 : index
    %68 = vector.load %arg5[%c0_44, %c0_45, %c0_46] : memref<18x16x384xbf16, #tpu.memory_space<vmem>>, vector<16x16x384xbf16>
    %69 = vector.shape_cast %68 : vector<16x16x384xbf16> to vector<256x384xbf16>
    %c0_47 = arith.constant 0 : index
    %c0_48 = arith.constant 0 : index
    %c0_49 = arith.constant 0 : index
    %70 = vector.load %arg3[%c0_47, %c0_48, %c0_49] : memref<3x384x128xbf16, #tpu.memory_space<vmem>>, vector<1x384x128xbf16>
    %71 = vector.shape_cast %70 : vector<1x384x128xbf16> to vector<384x128xbf16>
    %cst_50 = arith.constant dense<0.000000e+00> : vector<256x128xf32>
    %72 = tpu.matmul %69, %71, %cst_50 {dimension_numbers = #tpu.dot_dimension_numbers<[1], [0], [0], [1], [0, 0, 1, 1], [], []>} : vector<256x384xbf16>, vector<384x128xbf16>, vector<256x128xf32> -> vector<256x128xf32>
    %c1_51 = arith.constant 1 : index
    %c0_52 = arith.constant 0 : index
    %c0_53 = arith.constant 0 : index
    %73 = vector.load %arg5[%c1_51, %c0_52, %c0_53] : memref<18x16x384xbf16, #tpu.memory_space<vmem>>, vector<16x16x384xbf16>
    %74 = vector.shape_cast %73 : vector<16x16x384xbf16> to vector<256x384xbf16>
    %c1_54 = arith.constant 1 : index
    %c0_55 = arith.constant 0 : index
    %c0_56 = arith.constant 0 : index
    %75 = vector.load %arg3[%c1_54, %c0_55, %c0_56] : memref<3x384x128xbf16, #tpu.memory_space<vmem>>, vector<1x384x128xbf16>
    %76 = vector.shape_cast %75 : vector<1x384x128xbf16> to vector<384x128xbf16>
    %cst_57 = arith.constant dense<0.000000e+00> : vector<256x128xf32>
    %77 = tpu.matmul %74, %76, %cst_57 {dimension_numbers = #tpu.dot_dimension_numbers<[1], [0], [0], [1], [0, 0, 1, 1], [], []>} : vector<256x384xbf16>, vector<384x128xbf16>, vector<256x128xf32> -> vector<256x128xf32>
    %78 = arith.addf %72, %77 : vector<256x128xf32>
    %c2_58 = arith.constant 2 : index
    %c0_59 = arith.constant 0 : index
    %c0_60 = arith.constant 0 : index
    %79 = vector.load %arg5[%c2_58, %c0_59, %c0_60] : memref<18x16x384xbf16, #tpu.memory_space<vmem>>, vector<16x16x384xbf16>
    %80 = vector.shape_cast %79 : vector<16x16x384xbf16> to vector<256x384xbf16>
    %c2_61 = arith.constant 2 : index
    %c0_62 = arith.constant 0 : index
    %c0_63 = arith.constant 0 : index
    %81 = vector.load %arg3[%c2_61, %c0_62, %c0_63] : memref<3x384x128xbf16, #tpu.memory_space<vmem>>, vector<1x384x128xbf16>
    %82 = vector.shape_cast %81 : vector<1x384x128xbf16> to vector<384x128xbf16>
    %cst_64 = arith.constant dense<0.000000e+00> : vector<256x128xf32>
    %83 = tpu.matmul %80, %82, %cst_64 {dimension_numbers = #tpu.dot_dimension_numbers<[1], [0], [0], [1], [0, 0, 1, 1], [], []>} : vector<256x384xbf16>, vector<384x128xbf16>, vector<256x128xf32> -> vector<256x128xf32>
    %84 = arith.addf %78, %83 : vector<256x128xf32>
    %cst_65 = arith.constant dense<0.000000e+00> : vector<128xf32>
    %85 = vector.multi_reduction <add>, %84, %cst_65 [0] : vector<256x128xf32> to vector<128xf32>
    %86 = vector.shape_cast %85 : vector<128xf32> to vector<1x128xf32>
    %cst_66 = arith.constant 3.906250e-03 : f32
    %87 = vector.broadcast %cst_66 : f32 to vector<1x128xf32>
    %88 = arith.mulf %86, %87 : vector<1x128xf32>
    %89 = arith.mulf %84, %84 : vector<256x128xf32>
    %cst_67 = arith.constant dense<0.000000e+00> : vector<128xf32>
    %90 = vector.multi_reduction <add>, %89, %cst_67 [0] : vector<256x128xf32> to vector<128xf32>
    %91 = vector.shape_cast %90 : vector<128xf32> to vector<1x128xf32>
    %cst_68 = arith.constant 3.906250e-03 : f32
    %92 = vector.broadcast %cst_68 : f32 to vector<1x128xf32>
    %93 = arith.mulf %91, %92 : vector<1x128xf32>
    %94 = arith.mulf %88, %88 : vector<1x128xf32>
    %95 = arith.subf %93, %94 : vector<1x128xf32>
    %cst_69 = arith.constant 0.000000e+00 : f32
    %96 = vector.broadcast %cst_69 : f32 to vector<1x128xf32>
    %97 = arith.maximumf %95, %96 : vector<1x128xf32>
    %98 = vector.broadcast %88 : vector<1x128xf32> to vector<256x128xf32>
    %99 = arith.subf %84, %98 : vector<256x128xf32>
    %cst_70 = arith.constant 9.99999974E-6 : f32
    %100 = vector.broadcast %cst_70 : f32 to vector<1x128xf32>
    %101 = arith.addf %97, %100 : vector<1x128xf32>
    %102 = math.rsqrt %101 : vector<1x128xf32>
    %103 = vector.broadcast %102 : vector<1x128xf32> to vector<256x128xf32>
    %104 = arith.mulf %99, %103 : vector<256x128xf32>
    %c0_71 = arith.constant 0 : index
    %c0_72 = arith.constant 0 : index
    %c0_73 = arith.constant 0 : index
    %c0_74 = arith.constant 0 : index
    %105 = vector.load %arg1[%c0_71, %c0_72, %c0_73, %c0_74] : memref<1x16x16x128xf32, #tpu.memory_space<vmem>>, vector<1x16x16x128xf32>
    %106 = vector.shape_cast %105 : vector<1x16x16x128xf32> to vector<16x16x128xf32>
    %107 = vector.shape_cast %104 : vector<256x128xf32> to vector<16x16x128xf32>
    %108 = arith.addf %106, %107 : vector<16x16x128xf32>
    %c0_75 = arith.constant 0 : index
    %c0_76 = arith.constant 0 : index
    %c0_77 = arith.constant 0 : index
    %c0_78 = arith.constant 0 : index
    %109 = vector.load %arg4[%c0_75, %c0_76, %c0_77, %c0_78] : memref<1x16x16x128xf32, #tpu.memory_space<vmem>>, vector<1x16x16x128xf32>
    %110 = vector.shape_cast %109 : vector<1x16x16x128xf32> to vector<16x16x128xf32>
    %111 = vector.shape_cast %108 : vector<16x16x128xf32> to vector<1x16x16x128xf32>
    tpu.vector_store %arg4[%c0_75, %c0_76, %c0_77, %c0_78], %111 {strides = array<i32>} : memref<1x16x16x128xf32, #tpu.memory_space<vmem>>, vector<1x16x16x128xf32>,
    return
  }
  func.func @transform_0(%arg0: i32) -> (i32, i32, i32, i32) {
    %c0_i32 = arith.constant 0 : i32
    %c0_i32_0 = arith.constant 0 : i32
    %c0_i32_1 = arith.constant 0 : i32
    %c0_i32_2 = arith.constant 0 : i32
    return %arg0, %c0_i32, %c0_i32_0, %c0_i32_1 : i32, i32, i32, i32
  }
  func.func @transform_1(%arg0: i32) -> (i32, i32, i32) {
    %c0_i32 = arith.constant 0 : i32
    %c0_i32_0 = arith.constant 0 : i32
    %c0_i32_1 = arith.constant 0 : i32
    %c0_i32_2 = arith.constant 0 : i32
    return %c0_i32, %c0_i32_0, %c0_i32_1 : i32, i32, i32
  }
  func.func @transform_2(%arg0: i32) -> (i32, i32, i32) {
    %c0_i32 = arith.constant 0 : i32
    %c0_i32_0 = arith.constant 0 : i32
    %c0_i32_1 = arith.constant 0 : i32
    %c0_i32_2 = arith.constant 0 : i32
    return %c0_i32, %c0_i32_0, %c0_i32_1 : i32, i32, i32
  }
  func.func @transform_3(%arg0: i32) -> (i32, i32, i32, i32) {
    %c0_i32 = arith.constant 0 : i32
    %c0_i32_0 = arith.constant 0 : i32
    %c0_i32_1 = arith.constant 0 : i32
    %c0_i32_2 = arith.constant 0 : i32
    return %arg0, %c0_i32, %c0_i32_0, %c0_i32_1 : i32, i32, i32, i32
  }
}

</mosaic_0001>

<bundles_post_ra>
// kernel: residual_block.1
= control target key start
LH: loop header
LB: loop body
LE: loop exit
PB: predicated region body
PF: predicated region fallthrough
CT: control target
= control target key end

     0   :  { %8 = vsyncpa [#allocation4], 0  ;;  %s9545_s0 = inlined_call_operand.vmem [shape: f32[2,16,16,128], index: 0, kind: input, shape index: {}]   ;;  %s9546_s1 = inlined_call_operand.vmem [shape: bf16[3,384,128], index: 1, kind: input, shape index: {}]   ;;  %s9547_s2 = inlined_call_operand.vmem [shape: bf16[3,384,128], index: 2, kind: input, shape index: {}]   ;;  %s9548_s3 = inlined_call_operand.hbm [shape: f32[2,16,16,128], index: 3, kind: output, shape index: {}]  }
   0x1   :  { %10 = vsyncpa [#allocation4 + $0x1], 0  ;;  %s6878_s12 = smov 0   ;;  %s6880_s13 = smov 0  }
   0x2   :  { %s6882_s14 = smov 0   ;;  %s6884_s15 = smov 0  }
   0x3 LB: > { %s6899_s16 = sadd.s32 4294967295, %s6853_s15   ;;  %s4828_s17 = sadd.s32 4294967294, %s6853_s15   ;;  %s6853_s15 = sphi %s6884_s15, %s9625_s15   ;;  %s6849_s14 = sphi %s6882_s14, %s9624_s14   ;;  %s6845_s13 = sphi %s6880_s13, %s9623_s13   ;;  %s6841_s12 = sphi %s6878_s12, %s9622_s12  }
   0x4   : > { %s6903_s18 = sadd.s32 1, %s6853_s15   ;;  %s91_s19 = sadd.s32 1, %s6849_s14 }
   0x5   : > { %s88_s20 = ssub.s32 %s6853_s15, %s6903_s18  ;;  %p101_p0 = scmp.ne.s32.totalorder %s6849_s14, %s6845_s13 }
   0x6   : > { %p89_p1 = scmp.eq.s32.totalorder %s88_s20, 0  ;;  %p102_p2 = scmp.eq.s32.totalorder %s6899_s16, 1 }
   0x7   : > { %p107_p3 = scmp.ne.s32.totalorder %s6845_s13, %s6841_s12  ;;  %p108_p4 = scmp.eq.s32.totalorder %s4828_s17, 1 }
   0x8   : > { %s6914_s21 = scalar_select %p89_p1, %s6849_s14, %s91_s19  }
   0x9   : > { %p6916_p5 = por %p102_p2, %p101_p0  ;;  %p6920_p6 = por %p108_p4, %p107_p3 }
   0xa   : > { %p4831_p7 = scmp.ge.s32.totalorder %s6853_s15, 1  ;;  %p140_p8 = scmp.lt.s32.totalorder %s6853_s15, 3 }
   0xc   : > { %p141_p9 = pnand %p4831_p7, %p140_p8 }
   0xe   : > { %144 = sbr.rel (%p141_p9) target bundleno = 1261 (0x4ed), region = 32 }
  0x15   : > { %v6643_v0 = vld [vmem:[%s9546_s1 + $0x100] sm:$0xff]   ;;  %v6647_v4 = vld [vmem:[%s9546_s1 + $0x108] sm:$0xff]   ;;  %v6651_v8 = vld [vmem:[%s9546_s1 + $0x110] sm:$0xff]   ;;  %p164_p10 = scmp.lt.s32.totalorder %s6899_s16, 1  ;;  %vm362_vm0 = vcmask 1040384   ;;  %v9568_v47 = vmov 0 }
  0x16   : > { %v6644_v1 = vld [vmem:[%s9546_s1 + $0x40] sm:$0xff]   ;;  %5178 = vmatprep.subr.bf16.mxu0 %v6643_v0  ;;  %v6648_v5 = vld [vmem:[%s9546_s1 + $0x48] sm:$0xff]   ;;  %v6652_v9 = vld [vmem:[%s9546_s1 + $0x50] sm:$0xff]   ;;  %vm363_vm1 = vsmask.f32 256  ;;  %vm445_vm3 = vcmask 1047552  }
  0x17   : > { %v6645_v2 = vld [vmem:[%s9546_s1 + $0xc0] sm:$0xff]   ;;  %5314 = vmatprep.subr.bf16.mxu1 %v6644_v1  ;;  %v6649_v6 = vld [vmem:[%s9546_s1 + $0xc8] sm:$0xff]   ;;  %v6653_v10 = vld [vmem:[%s9546_s1 + $0xd0] sm:$0xff]   ;;  %s165_s7 = scalar_select %p164_p10, %s6899_s16, 1  ;;  %vm446_vm4 = vsmask.f32 7424 }
  0x18   : > { %v6646_v3 = vld [vmem:[%s9546_s1] sm:$0xff]   ;;  %5179 = vmatpush3.bf16.msra.mxu0 %v6645_v2  ;;  %v6650_v7 = vld [vmem:[%s9546_s1 + $0x8] sm:$0xff]   ;;  %v6654_v11 = vld [vmem:[%s9546_s1 + $0x10] sm:$0xff]   ;;  %s161_s24 = sand.u32 1, %s6845_s13   ;;  %s5177_s27 = sshll.u32 %s6899_s16, 12 }
  0x19   : > { %5315 = vmatpush3.bf16.msra.mxu1 %v6646_v3  ;;  %5180 = vmatprep.subr.bf16.mxu0 %v6647_v4  ;;  %v6655_v12 = vld [vmem:[%s9546_s1 + $0x118] sm:$0xff]   ;;  %v6659_v16 = vld [vmem:[%s9546_s1 + $0x120] sm:$0xff]   ;;  %v6663_v20 = vld [vmem:[%s9546_s1 + $0x128] sm:$0xff]   ;;  %s5176_s25 = sshll.u32 %s165_s7, 8  ;;  %s9480_s30 = scalar_lea.hbm %s9548_s3, %s5177_s27 }
  0x1a   : > { %5316 = vmatprep.subr.bf16.mxu1 %v6648_v5  ;;  %v6656_v13 = vld [vmem:[%s9546_s1 + $0x58] sm:$0xff]   ;;  %v6660_v17 = vld [vmem:[%s9546_s1 + $0x60] sm:$0xff]   ;;  %v6664_v21 = vld [vmem:[%s9546_s1 + $0x68] sm:$0xff]   ;;  %s7021_s8 = scalar_lea.vmem %s9545_s0, %s5176_s25  ;;  %s9335_s25 = sshll.u32 %s161_s24, 8 }
  0x1b   : > { %v6657_v14 = vld [vmem:[%s9546_s1 + $0xd8] sm:$0xff]   ;;  %v6661_v18 = vld [vmem:[%s9546_s1 + $0xe0] sm:$0xff]   ;;  %v6665_v22 = vld [vmem:[%s9546_s1 + $0xe8] sm:$0xff]   ;;  %s9361_s26 = scalar_lea.vmem [#allocation3], %s9335_s25  ;;  %s9504_s16 = scalar_lea.sflag [#allocation4], %s161_s24 }
  0x1c   : > { %5181 = vmatpush3.bf16.msra.mxu0 %v6649_v6  ;;  %v6658_v15 = vld [vmem:[%s9546_s1 + $0x18] sm:$0xff]   ;;  %v6662_v19 = vld [vmem:[%s9546_s1 + $0x20] sm:$0xff]   ;;  %v6666_v23 = vld [vmem:[%s9546_s1 + $0x28] sm:$0xff]   ;;  %s4766_s28 = sshll.u32 %s9361_s26, 4  ;;  %s6855_s5 = smov [#allocation3]   ;;  %s9484_s28 = int_to_ptr.vmem [resolvable:$true] %s4766_s28 }
  0x1d   : > { %5317 = vmatpush3.bf16.msra.mxu1 %v6650_v7  ;;  %5182 = vmatprep.subr.bf16.mxu0 %v6651_v8  ;;  %v6667_v24 = vld [vmem:[%s9546_s1 + $0x130] sm:$0xff]   ;;  %v6671_v28 = vld [vmem:[%s9546_s1 + $0x138] sm:$0xff]   ;;  %v170_v32 = vld [vmem:[%s7021_s8] sm:$0xff]  ;;  %s6791_s4 = scalar_lea.vmem %s9484_s28, 4096  ;;  %s6795_s6 = sshll.u32 %s6855_s5, 4  ;;  %s6796_s6 = int_to_ptr.vmem [resolvable:$false] %s6795_s6 }
  0x1e   : > { %5318 = vmatprep.subr.bf16.mxu1 %v6652_v9  ;;  %v6668_v25 = vld [vmem:[%s9546_s1 + $0x70] sm:$0xff]   ;;  %v6672_v29 = vld [vmem:[%s9546_s1 + $0x78] sm:$0xff]   ;;  %v171_v33 = vld [vmem:[%s7021_s8 + $0x8] sm:$0xff]  ;;  %p6792_p11 = scmp.ne.s32.totalorder %s9484_s28, %s6791_s4  ;;  %s6797_s7 = scalar_lea.vmem %s6796_s6, 8192 }
  0x1f   : > { %v6669_v26 = vld [vmem:[%s9546_s1 + $0xf0] sm:$0xff]   ;;  %v6673_v30 = vld [vmem:[%s9546_s1 + $0xf8] sm:$0xff]   ;;  %v202_v35 = vpack.c.bf16 %v171_v33, %v170_v32  ;;  %v6675_v38 = vld [vmem:[%s9546_s1 + $0x140] sm:$0xff]   ;;  %p6798_p0 = scmp.lt.s32.totalorder %s9484_s28, %s6796_s6  ;;  %p6799_p1 = scmp.lt.s32.totalorder %s6797_s7, %s6791_s4 }
  0x20   : > { %5183 = vmatpush3.bf16.msra.mxu0 %v6653_v10  ;;  %v6670_v27 = vld [vmem:[%s9546_s1 + $0x30] sm:$0xff]   ;;  %v6674_v31 = vld [vmem:[%s9546_s1 + $0x38] sm:$0xff]   ;;  %v174_v43 = vld [vmem:[%s7021_s8 + $0x20] sm:$0xff]  ;;  %p6793_p12 = pnand %p6792_p11, %p6916_p5 }
  0x21   : > { %5319 = vmatpush3.bf16.msra.mxu1 %v6654_v11  ;;  %5184 = vmatprep.subr.bf16.mxu0 %v6655_v12  ;;  %v172_v34 = vld [vmem:[%s7021_s8 + $0x10] sm:$0xff]  ;;  %v173_v36 = vld [vmem:[%s7021_s8 + $0x18] sm:$0xff]  ;;  %v222_v39 = vshrl.u32 %v202_v35, 16  ;;  %v7038_v40 = vshll.u32 %v202_v35, 16  ;;  %v175_v44 = vld [vmem:[%s7021_s8 + $0x28] sm:$0xff]  ;;  %p6800_p2 = por %p6799_p1, %p6798_p0 }
  0x22   : > { %5320 = vmatprep.subr.bf16.mxu1 %v6656_v13  ;;  %v7033_v37 = vpack.c.bf16 %v173_v36, %v172_v34  ;;  %888 = vmatprep.mubr.bf16.mxu0 %v202_v35  ;;  %vm7048_vm2 = vmand %vm362_vm0, %vm363_vm1  ;;  %v7053_v50 = vpack.c.bf16 %v175_v44, %v174_v43  ;;  %v6676_v54 = vld [vmem:[%s9546_s1 + $0x148] sm:$0xff]   ;;  %v176_v56 = vld [vmem:[%s7021_s8 + $0x30] sm:$0xff]  ;;  %p6794_p13 = pneg %p6793_p12 }
  0x23   : > { %v286_v45 = vrot.slane %v222_v39, 7  ;;  %v383_v46 = vrot.slane %v7038_v40, 1  ;;  %v9569_v47 = vsel %vm7048_vm2, 4294967295, %v9568_v47  ;;  %v177_v57 = vld [vmem:[%s7021_s8 + $0x38] sm:$0xff]  ;;  %v178_v58 = vld [vmem:[%s7021_s8 + $0x40] sm:$0xff]  ;;  %v179_v60 = vld [vmem:[%s7021_s8 + $0x48] sm:$0xff] }
  0x24   : > { %5185 = vmatpush3.bf16.msra.mxu0 %v6657_v14  ;;  %1354 = vmatprep.mubr.bf16.mxu1 %v7033_v37  ;;  %v219_v41 = vshrl.u32 %v7033_v37, 16  ;;  %v7043_v42 = vshll.u32 %v7033_v37, 16  ;;  %9570 = vst [vmem:[#allocation6_spill] sm:$0xff] %v9569_v47  ;;  %v225_v59 = vshrl.u32 %v7053_v50, 16  ;;  %v6677_v61 = vld [vmem:[%s9546_s1 + $0x150] sm:$0xff]   ;;  %v6680_v62 = vld [vmem:[%s9546_s1 + $0x80] sm:$0xff]   ;;  %v7080_v63 = vpack.c.bf16 %v177_v57, %v176_v56  ;;  %vm7179_vm5 = vmand %vm445_vm3, %vm446_vm4  ;;  %p6801_p3 = pnand %p6800_p2, %p6794_p13 }
  0x25   : > { %5321 = vmatpush3.bf16.msra.mxu1 %v6658_v15  ;;  %5186 = vmatprep.subr.bf16.mxu0 %v6659_v16  ;;  %v289_v49 = vor.u32 %v7038_v40, %v286_v45  ;;  %v7055_v51 = vor.u32 %v383_v46, %v222_v39  ;;  %v7082_v0 = vpack.c.bf16 %v179_v60, %v178_v58  ;;  %v180_v1 = vld [vmem:[%s7021_s8 + $0x50] sm:$0xff]  ;;  %v7086_v3 = vshll.u32 %v7053_v50, 16  ;;  %v181_v4 = vld [vmem:[%s7021_s8 + $0x58] sm:$0xff]  ;;  %v6682_v5 = vld [vmem:[%s9546_s1 + $0x88] sm:$0xff]  }
  0x26   : > { %5322 = vmatprep.subr.bf16.mxu1 %v6660_v17  ;;  %v282_v48 = vrot.slane %v219_v41, 7  ;;  %v290_v2 = vrot.slane %v225_v59, 7  ;;  %v182_v6 = vld [vmem:[%s7021_s8 + $0x60] sm:$0xff]  ;;  %v183_v7 = vld [vmem:[%s7021_s8 + $0x68] sm:$0xff]  ;;  %v6678_v8 = vld [vmem:[%s9546_s1 + $0x158] sm:$0xff]   ;;  %v381_v9 = vrot.slane %v7043_v42, 1  ;;  %v7107_v13 = vpack.c.bf16 %v181_v4, %v180_v1 }
  0x27   : > { %v366_v53 = vsel %vm7048_vm2, %v222_v39, %v289_v49  ;;  %v7100_v10 = vshrl.u32 %v7080_v63, 16  ;;  %v7103_v11 = vshrl.u32 %v7082_v0, 16  ;;  %v7109_v14 = vpack.c.bf16 %v183_v7, %v182_v6  ;;  %v184_v16 = vld [vmem:[%s7021_s8 + $0x70] sm:$0xff]  ;;  %v189_v34 = vld [vmem:[%s7021_s8 + $0x98] sm:$0xff]  ;;  %v6687_v44 = vld [vmem:[%s9546_s1 + $0xa0] sm:$0xff]  }
  0x28   : > { %5187 = vmatpush3.bf16.msra.mxu0 %v6661_v18  ;;  %v285_v52 = vor.u32 %v7043_v42, %v282_v48  ;;  %v293_v12 = vor.u32 %v7086_v3, %v290_v2  ;;  %v385_v15 = vrot.slane %v7086_v3, 1  ;;  %v6684_v17 = vld [vmem:[%s9546_s1 + $0x90] sm:$0xff]   ;;  %v382_v18 = vor.u32 %v381_v9, %v219_v41  ;;  %v190_v1 = vld [vmem:[%s7021_s8 + $0xa0] sm:$0xff]  ;;  %v191_v2 = vld [vmem:[%s7021_s8 + $0xa8] sm:$0xff] }
  0x29   : > { %5323 = vmatpush3.bf16.msra.mxu1 %v6662_v19  ;;  %5188 = vmatprep.subr.bf16.mxu0 %v6663_v20  ;;  %9571 = vst [vmem:[#allocation7_spill] sm:$0xff] %v7109_v14  ;;  %v295_v19 = vshll.u32 %v7080_v63, 16  ;;  %v7119_v20 = vshll.u32 %v7082_v0, 16  ;;  %v7151_v39 = vshll.u32 %v7107_v13, 16  ;;  %v9572_v56 = vmov 0 }
  0x2a   : > { %5324 = vmatprep.subr.bf16.mxu1 %v6664_v21  ;;  %v7065_v55 = vsel %vm7048_vm2, %v219_v41, %v285_v52  ;;  %v185_v21 = vld [vmem:[%s7021_s8 + $0x78] sm:$0xff]  ;;  %v386_v32 = vor.u32 %v385_v15, %v225_v59  ;;  %v7154_v41 = vshll.u32 %v7109_v14, 16  ;;  %v9573_v56 = vsel %vm7179_vm5, 4294967295, %v9572_v56  ;;  %v6689_v15 = vld [vmem:[%s9546_s1 + $0xb0] sm:$0xff]  }
  0x2b   : > { %v7143_v33 = vpack.c.bf16 %v185_v21, %v184_v16  ;;  %v387_v36 = vrot.slane %v295_v19, 1  ;;  %9574 = vst [vmem:[#allocation8_spill] sm:$0xff] %v9573_v56  ;;  %v389_v57 = vrot.slane %v7119_v20, 1  ;;  %v391_v58 = vrot.slane %v7151_v39, 1 }
  0x2c   : > { %5189 = vmatpush3.bf16.msra.mxu0 %v6665_v22  ;;  %v6679_v22 = vld [vmem:[%s9546_s1 + $0x160] sm:$0xff]   ;;  %v7203_v4 = vsel %vm7179_vm5, %v7055_v51, %v7038_v40  ;;  %v7213_v6 = vsel %vm7179_vm5, %v386_v32, %v7086_v3  ;;  %v6686_v3 = vld [vmem:[%s9546_s1 + $0x178] sm:$0xff]  }
  0x2d   : > { %5325 = vmatpush3.bf16.msra.mxu1 %v6666_v23  ;;  %5190 = vmatprep.subr.bf16.mxu0 %v6667_v24  ;;  %v294_v23 = vrot.slane %v7100_v10, 7  ;;  %v298_v24 = vrot.slane %v7103_v11, 7  ;;  %v388_v48 = vor.u32 %v387_v36, %v7100_v10  ;;  %v7168_v49 = vshrl.u32 %v7143_v33, 16 }
  0x2e   : > { %5326 = vmatprep.subr.bf16.mxu1 %v6668_v25  ;;  %v186_v25 = vld [vmem:[%s7021_s8 + $0x80] sm:$0xff]  ;;  %v7171_v52 = vshll.u32 %v7143_v33, 16  ;;  %v390_v51 = vor.u32 %v389_v57, %v7103_v11 }
  0x2f   : > { %v7217_v7 = vsel %vm7179_vm5, %v388_v48, %v295_v19 }
  0x30   : > { %5191 = vmatpush3.bf16.msra.mxu0 %v6669_v26  ;;  %v6685_v26 = vld [vmem:[%s9546_s1 + $0x98] sm:$0xff]   ;;  %v7242_v16 = vsel %vm7179_vm5, %v390_v51, %v7119_v20  ;;  %v196_v51 = vld [vmem:[%s7021_s8 + $0xd0] sm:$0xff] }
  0x31   : > { %5327 = vmatpush3.bf16.msra.mxu1 %v6670_v27  ;;  %5192 = vmatprep.subr.bf16.mxu0 %v6671_v28  ;;  %v7133_v27 = vsel %vm7048_vm2, %v225_v59, %v293_v12  ;;  %v7136_v28 = vshrl.u32 %v7107_v13, 16  ;;  %v393_v59 = vrot.slane %v7154_v41, 1 }
  0x32   : > { %5328 = vmatprep.subr.bf16.mxu1 %v6672_v29  ;;  %v7139_v29 = vshrl.u32 %v7109_v14, 16 }
  0x33   : > { %v302_v45 = vrot.slane %v7136_v28, 7 }
  0x34   : > { %5193 = vmatpush3.bf16.msra.mxu0 %v6673_v30  ;;  %v187_v30 = vld [vmem:[%s7021_s8 + $0x88] sm:$0xff]  ;;  %v306_v46 = vrot.slane %v7139_v29, 7  ;;  %v394_v9 = vor.u32 %v393_v59, %v7139_v29 }
  0x35   : > { %5329 = vmatpush3.bf16.msra.mxu1 %v6674_v31  ;;  %5994 = vmatprep.subr.bf16.mxu0 %v6675_v38  ;;  %v188_v31 = vld [vmem:[%s7021_s8 + $0x90] sm:$0xff]  ;;  %v7156_v43 = vpack.c.bf16 %v187_v30, %v186_v25  ;;  %v7263_v25 = vpack.c.bf16 %v191_v2, %v190_v1  ;;  %v194_v1 = vld [vmem:[%s7021_s8 + $0xc0] sm:$0xff]  ;;  %v195_v2 = vld [vmem:[%s7021_s8 + $0xc8] sm:$0xff] }
  0x36   : > { %6042 = vmatprep.subr.bf16.mxu1 %v6680_v62  ;;  %v7258_v21 = vsel %vm7179_vm5, %v394_v9, %v7154_v41 }
  0x37   : > { %889 = vmatmul.mubr.bf16.vlgmr.msra.gmra.mrb[0].mxu0 %v366_v53  ;;  %v7316_v59 = vshrl.u32 %v7263_v25, 16 }
  0x38   : > { %1355 = vmatmul.mubr.bf16.vlgmr.msra.gmra.mrb[0].mxu1 %v7065_v55  ;;  %5995 = vmatpush3.bf16.msra.mxu0 %v6675_v38  ;;  %v297_v38 = vor.u32 %v295_v19, %v294_v23  ;;  %v192_v19 = vld [vmem:[%s7021_s8 + $0xb0] sm:$0xff] }
  0x39   : > { %896 = vmatprep.mubr.bf16.mxu0 %v7033_v37  ;;  %1362 = vmatprep.mubr.bf16.mxu1 %v202_v35  ;;  %v6681_v35 = vld [vmem:[%s9546_s1 + $0x168] sm:$0xff]  }
  0x3a   : > { %5996 = vmatprep.subr.bf16.mxu0 %v6676_v54  ;;  %6043 = vmatpush3.bf16.msra.mxu1 %v6680_v62  ;;  %v7189_v60 = vsel %vm7048_vm2, %v7100_v10, %v297_v38  ;;  %v6688_v62 = vld [vmem:[%s9546_s1 + $0xa8] sm:$0xff]   ;;  %v395_v10 = vrot.slane %v7171_v52, 1 }
  0x3b   : > { %6044 = vmatprep.subr.bf16.mxu1 %v6682_v5 }
  0x3c   : > { %5997 = vmatpush3.bf16.msra.mxu0 %v6676_v54  ;;  %v6683_v54 = vld [vmem:[%s9546_s1 + $0x170] sm:$0xff]  }
  0x3d   : > { %5998 = vmatprep.subr.bf16.mxu0 %v6677_v61 }
  0x3e   : > { %6045 = vmatpush3.bf16.msra.mxu1 %v6682_v5  ;;  %v7208_v5 = vsel %vm7179_vm5, %v382_v18, %v7043_v42  ;;  %v392_v42 = vor.u32 %v391_v58, %v7136_v28  ;;  %v301_v18 = vor.u32 %v7119_v20, %v298_v24  ;;  %v310_v20 = vrot.slane %v7168_v49, 7  ;;  %v6691_v24 = vld [vmem:[%s9546_s1 + $0x1c0] sm:$0xff]  }
  0x3f   : > { %897 = vmatmul.mubr.bf16.gmra.mrb[4].mxu0 %v7065_v55  ;;  %6046 = vmatprep.subr.bf16.mxu1 %v6684_v17  ;;  %v305_v58 = vor.u32 %v7151_v39, %v302_v45 }
  0x40   : > { %1363 = vmatmul.mubr.bf16.gmra.mrb[4].mxu1 %v366_v53  ;;  %904 = vmatprep.mubr.bf16.mxu0 %v7053_v50  ;;  %v7173_v53 = vpack.c.bf16 %v189_v34, %v188_v31  ;;  %v7278_v34 = vshll.u32 %v7263_v25, 16  ;;  %v7287_v38 = vsel %vm7048_vm2, %v7103_v11, %v301_v18  ;;  %v7307_v11 = vld [vmem:[%s9546_s1 + $0x200] sm:$0xff]  }
  0x41   : > { %1370 = vmatprep.mubr.bf16.mxu1 %v7033_v37  ;;  %5999 = vmatpush3.bf16.msra.mxu0 %v6677_v61  ;;  %v7192_v61 = vshrl.u32 %v7156_v43, 16  ;;  %v7334_v45 = vsel %vm7048_vm2, %v7136_v28, %v305_v58 }
  0x42   : > { %6000 = vmatprep.subr.bf16.mxu0 %v6678_v8  ;;  %6047 = vmatpush3.bf16.msra.mxu1 %v6684_v17  ;;  %v7223_v40 = vshrl.u32 %v7173_v53, 16  ;;  %v7234_v12 = vshll.u32 %v7173_v53, 16  ;;  %v7247_v17 = vsel %vm7179_vm5, %v392_v42, %v7151_v39  ;;  %v401_v42 = vrot.slane %v7278_v34, 1 }
  0x43   : > { %6048 = vmatprep.subr.bf16.mxu1 %v6685_v26 }
  0x44   : > { %v399_v30 = vrot.slane %v7234_v12, 1 }
  0x45   : > { %6001 = vmatpush3.bf16.msra.mxu0 %v6678_v8  ;;  %v7220_v8 = vshll.u32 %v7156_v43, 16 }
  0x46   : > { %6002 = vmatprep.subr.bf16.mxu0 %v6679_v22  ;;  %6049 = vmatpush3.bf16.msra.mxu1 %v6685_v26  ;;  %v193_v26 = vld [vmem:[%s7021_s8 + $0xb8] sm:$0xff]  ;;  %v400_v36 = vor.u32 %v399_v30, %v7223_v40 }
  0x47   : > { %905 = vmatmul.mubr.bf16.gmra.mrb[8].mxu0 %v7133_v27  ;;  %6050 = vmatprep.subr.bf16.mxu1 %v6687_v44  ;;  %v397_v23 = vrot.slane %v7220_v8, 1 }
  0x48   : > { %1371 = vmatmul.mubr.bf16.gmra.mrb[8].mxu1 %v7065_v55  ;;  %912 = vmatprep.mubr.bf16.mxu0 %v7080_v63 }
  0x49   : > { %1378 = vmatprep.mubr.bf16.mxu1 %v7053_v50  ;;  %6003 = vmatpush3.bf16.msra.mxu0 %v6679_v22  ;;  %v396_v22 = vor.u32 %v395_v10, %v7168_v49  ;;  %v398_v32 = vor.u32 %v397_v23, %v7192_v61  ;;  %v402_v10 = vor.u32 %v401_v42, %v7316_v59 }
  0x4a   : > { %6004 = vmatprep.subr.bf16.mxu0 %v6681_v35  ;;  %6051 = vmatpush3.bf16.msra.mxu1 %v6687_v44  ;;  %v7289_v44 = vpack.c.bf16 %v193_v26, %v192_v19  ;;  %v309_v26 = vor.u32 %v7154_v41, %v306_v46 }
  0x4b   : > { %6052 = vmatprep.subr.bf16.mxu1 %v6688_v62  ;;  %v7274_v31 = vsel %vm7179_vm5, %v396_v22, %v7171_v52  ;;  %v7294_v48 = vsel %vm7179_vm5, %v398_v32, %v7220_v8  ;;  %v7343_v19 = vsel %vm7179_vm5, %v402_v10, %v7278_v34  ;;  %v198_v32 = vld [vmem:[%s7021_s8 + $0xe0] sm:$0xff] }
  0x4c   : > { %v7302_v57 = vshll.u32 %v7289_v44, 16  ;;  %v7380_v46 = vsel %vm7048_vm2, %v7139_v29, %v309_v26  ;;  %v313_v29 = vor.u32 %v7171_v52, %v310_v20  ;;  %v314_v26 = vrot.slane %v7192_v61, 7 }
  0x4d   : > { %6005 = vmatpush3.bf16.msra.mxu0 %v6681_v35  ;;  %v6690_v35 = vld [vmem:[%s9546_s1 + $0xb8] sm:$0xff]  }
  0x4e   : > { %6006 = vmatprep.subr.bf16.mxu0 %v6683_v54  ;;  %6053 = vmatpush3.bf16.msra.mxu1 %v6688_v62  ;;  %v7319_v62 = vshrl.u32 %v7289_v44, 16  ;;  %v403_v9 = vrot.slane %v7302_v57, 1 }
  0x4f   : > { %913 = vmatmul.mubr.bf16.gmra.mrb[12].mxu0 %v7189_v60  ;;  %6054 = vmatprep.subr.bf16.mxu1 %v6689_v15 }
  0x50   : > { %1379 = vmatmul.mubr.bf16.gmra.mrb[12].mxu1 %v7133_v27  ;;  %920 = vmatprep.mubr.bf16.mxu0 %v7082_v0  ;;  %v404_v39 = vor.u32 %v403_v9, %v7319_v62 }
  0x51   : > { %1386 = vmatprep.mubr.bf16.mxu1 %v7080_v63  ;;  %6007 = vmatpush3.bf16.msra.mxu0 %v6683_v54  ;;  %v7299_v54 = vsel %vm7179_vm5, %v400_v36, %v7234_v12  ;;  %v200_v36 = vld [vmem:[%s7021_s8 + $0xf0] sm:$0xff] }
  0x52   : > { %6008 = vmatprep.subr.bf16.mxu0 %v6686_v3  ;;  %6055 = vmatpush3.bf16.msra.mxu1 %v6689_v15  ;;  %v7336_v15 = vpack.c.bf16 %v195_v2, %v194_v1  ;;  %v7348_v22 = vsel %vm7179_vm5, %v404_v39, %v7302_v57  ;;  %v201_v1 = vld [vmem:[%s7021_s8 + $0xf8] sm:$0xff] }
  0x53   : > { %6056 = vmatprep.subr.bf16.mxu1 %v6690_v35 }
  0x54   : > { %v7351_v23 = vshll.u32 %v7336_v15, 16  ;;  %v7363_v30 = vshrl.u32 %v7336_v15, 16 }
  0x55   : > { %6009 = vmatpush3.bf16.msra.mxu0 %v6686_v3  ;;  %v197_v3 = vld [vmem:[%s7021_s8 + $0xd8] sm:$0xff] }
  0x56   : > { %5450 = vmatprep.subr.bf16.mxu0 %v6691_v24  ;;  %6057 = vmatpush3.bf16.msra.mxu1 %v6690_v35  ;;  %v7338_v18 = vpack.c.bf16 %v197_v3, %v196_v51  ;;  %v199_v35 = vld [vmem:[%s7021_s8 + $0xe8] sm:$0xff]  ;;  %v405_v58 = vrot.slane %v7351_v23, 1  ;;  %v7384_v3 = vpack.c.bf16 %v201_v1, %v200_v36 }
  0x57   : > { %921 = vmatmul.mubr.bf16.gmra.mrb[16].mxu0 %v7287_v38  ;;  %6090 = vmatprep.subr.bf16.mxu1 %v7307_v11  ;;  %v7382_v42 = vpack.c.bf16 %v199_v35, %v198_v32 }
  0x58   : > { %1387 = vmatmul.mubr.bf16.gmra.mrb[16].mxu1 %v7189_v60  ;;  %928 = vmatprep.mubr.bf16.mxu0 %v7107_v13  ;;  %v7354_v28 = vshll.u32 %v7338_v18, 16  ;;  %v7366_v24 = vshrl.u32 %v7338_v18, 16  ;;  %v406_v51 = vor.u32 %v405_v58, %v7363_v30  ;;  %v7398_v58 = vshll.u32 %v7384_v3, 16 }
  0x59   : > { %1394 = vmatprep.mubr.bf16.mxu1 %v7082_v0  ;;  %v339_v39 = vshll.u32 %v7382_v42, 16  ;;  %v261_v32 = vshrl.u32 %v7382_v42, 16  ;;  %v264_v36 = vshrl.u32 %v7384_v3, 16 }
  0x5a   : > { %v407_v2 = vrot.slane %v7354_v28, 1  ;;  %v7389_v9 = vsel %vm7179_vm5, %v406_v51, %v7351_v23  ;;  %v411_v1 = vrot.slane %v7398_v58, 1 }
  0x5b   : > { %v409_v35 = vrot.slane %v339_v39, 1 }
  0x5c   : > { %v408_v41 = vor.u32 %v407_v2, %v7366_v24  ;;  %v412_v51 = vor.u32 %v411_v1, %v264_v36  ;;  %v330_v1 = vrot.slane %v7363_v30, 7 }
  0x5d   : > { %v410_v2 = vor.u32 %v409_v35, %v261_v32  ;;  %v326_v35 = vrot.slane %v7319_v62, 7 }
  0x5e   : > { %v7394_v10 = vsel %vm7179_vm5, %v408_v41, %v7354_v28  ;;  %v7414_v41 = vsel %vm7048_vm2, %v7168_v49, %v313_v29  ;;  %v7423_v20 = vsel %vm7179_vm5, %v412_v51, %v7398_v58  ;;  %v317_v49 = vor.u32 %v7220_v8, %v314_v26 }
  0x5f   : > { %929 = vmatmul.mubr.bf16.gmra.mrb[20].mxu0 %v7334_v45  ;;  %v7418_v52 = vsel %vm7179_vm5, %v410_v2, %v339_v39  ;;  %v322_v29 = vrot.slane %v7316_v59, 7  ;;  %v338_v51 = vrot.slane %v261_v32, 7 }
  0x60   : > { %1395 = vmatmul.mubr.bf16.gmra.mrb[20].mxu1 %v7287_v38  ;;  %936 = vmatprep.mubr.bf16.mxu0 %v7109_v14  ;;  %v7437_v2 = vsel %vm7048_vm2, %v7192_v61, %v317_v49  ;;  %v342_v49 = vrot.slane %v264_v36, 7 }
  0x61   : > { %1402 = vmatprep.mubr.bf16.mxu1 %v7107_v13  ;;  %v325_v61 = vor.u32 %v7278_v34, %v322_v29  ;;  %v333_v34 = vor.u32 %v7351_v23, %v330_v1  ;;  %v6694_v29 = vld [vmem:[%s9546_s1 + $0x188] sm:$0xff]   ;;  %v6696_v1 = vld [vmem:[%s9546_s1 + $0x190] sm:$0xff]  }
  0x67   : > { %937 = vmatmul.mubr.bf16.gmra.mrb[24].mxu0 %v7380_v46 }
  0x68   : > { %1403 = vmatmul.mubr.bf16.gmra.mrb[24].mxu1 %v7334_v45  ;;  %944 = vmatprep.mubr.bf16.mxu0 %v7143_v33 }
  0x69   : > { %1410 = vmatprep.mubr.bf16.mxu1 %v7109_v14  ;;  %v318_v14 = vrot.slane %v7223_v40, 7 }
  0x6b   : > { %v321_v8 = vor.u32 %v7234_v12, %v318_v14  ;;  %v7457_v14 = vsel %vm7048_vm2, %v7316_v59, %v325_v61  ;;  %v334_v59 = vrot.slane %v7366_v24, 7  ;;  %v6698_v61 = vld [vmem:[%s9546_s1 + $0x198] sm:$0xff]  }
  0x6d   : > { %v7447_v26 = vsel %vm7048_vm2, %v7223_v40, %v321_v8  ;;  %v329_v40 = vor.u32 %v7302_v57, %v326_v35  ;;  %v7477_v57 = vsel %vm7048_vm2, %v7363_v30, %v333_v34  ;;  %v341_v30 = vor.u32 %v339_v39, %v338_v51  ;;  %v6695_v35 = vld [vmem:[%s9546_s1 + $0x1d0] sm:$0xff]   ;;  %v6697_v8 = vld [vmem:[%s9546_s1 + $0x1d8] sm:$0xff]   ;;  %v6708_v34 = vld [vmem:[%s9546_s1 + $0x220] sm:$0xff]  }
  0x6e   : > { %v6710_v51 = vld [vmem:[%s9546_s1 + $0x228] sm:$0xff]  }
  0x6f   : > { %945 = vmatmul.mubr.bf16.gmra.mrb[28].mxu0 %v7414_v41  ;;  %v7467_v12 = vsel %vm7048_vm2, %v7319_v62, %v329_v40  ;;  %v337_v62 = vor.u32 %v7354_v28, %v334_v59  ;;  %v7496_v28 = vsel %vm7048_vm2, %v261_v32, %v341_v30  ;;  %v6692_v32 = vld [vmem:[%s9546_s1 + $0x180] sm:$0xff]   ;;  %v6705_v30 = vld [vmem:[%s9546_s1 + $0x1a8] sm:$0xff]  }
  0x70   : > { %1411 = vmatmul.mubr.bf16.gmra.mrb[28].mxu1 %v7380_v46  ;;  %952 = vmatprep.mubr.bf16.mxu0 %v7156_v43  ;;  %v6699_v40 = vld [vmem:[%s9546_s1 + $0x1e0] sm:$0xff]  }
  0x71   : > { %1418 = vmatprep.mubr.bf16.mxu1 %v7143_v33  ;;  %v7488_v23 = vsel %vm7048_vm2, %v7366_v24, %v337_v62  ;;  %v345_v24 = vor.u32 %v7398_v58, %v342_v49  ;;  %v6693_v58 = vld [vmem:[%s9546_s1 + $0x1c8] sm:$0xff]   ;;  %v6701_v59 = vld [vmem:[%s9546_s1 + $0x1a0] sm:$0xff]   ;;  %v6707_v49 = vld [vmem:[%s9546_s1 + $0x1f0] sm:$0xff]  }
  0x72   : > { %v6703_v62 = vld [vmem:[%s9546_s1 + $0x1e8] sm:$0xff]  }
  0x73   : > { %v7505_v39 = vsel %vm7048_vm2, %v264_v36, %v345_v24  ;;  %v6702_v36 = vld [vmem:[%s9546_s1 + $0x208] sm:$0xff]   ;;  %v6712_v24 = vld [vmem:[%s9546_s1 + $0x230] sm:$0xff]  }
  0x77   : > { %953 = vmatmul.mubr.bf16.gmra.mrb[32].mxu0 %v7437_v2 }
  0x78   : > { %1419 = vmatmul.mubr.bf16.gmra.mrb[32].mxu1 %v7414_v41  ;;  %960 = vmatprep.mubr.bf16.mxu0 %v7173_v53 }
  0x79   : > { %1426 = vmatprep.mubr.bf16.mxu1 %v7156_v43 }
  0x7f   : > { %961 = vmatmul.mubr.bf16.gmra.mrb[36].mxu0 %v7447_v26 }
  0x80   : > { %1427 = vmatmul.mubr.bf16.gmra.mrb[36].mxu1 %v7437_v2  ;;  %968 = vmatprep.mubr.bf16.mxu0 %v7263_v25 }
  0x81   : > { %1434 = vmatprep.mubr.bf16.mxu1 %v7173_v53 }
  0x87   : > { %969 = vmatmul.mubr.bf16.gmra.mrb[40].mxu0 %v7457_v14 }
  0x88   : > { %1435 = vmatmul.mubr.bf16.gmra.mrb[40].mxu1 %v7447_v26  ;;  %976 = vmatprep.mubr.bf16.mxu0 %v7289_v44 }
  0x89   : > { %1442 = vmatprep.mubr.bf16.mxu1 %v7263_v25 }
  0x8f   : > { %977 = vmatmul.mubr.bf16.gmra.mrb[44].mxu0 %v7467_v12 }
  0x90   : > { %1443 = vmatmul.mubr.bf16.gmra.mrb[44].mxu1 %v7457_v14  ;;  %984 = vmatprep.mubr.bf16.mxu0 %v7336_v15 }
  0x91   : > { %1450 = vmatprep.mubr.bf16.mxu1 %v7289_v44 }
  0x97   : > { %985 = vmatmul.mubr.bf16.gmra.mrb[48].mxu0 %v7477_v57 }
  0x98   : > { %1451 = vmatmul.mubr.bf16.gmra.mrb[48].mxu1 %v7467_v12  ;;  %992 = vmatprep.mubr.bf16.mxu0 %v7338_v18 }
  0x99   : > { %1458 = vmatprep.mubr.bf16.mxu1 %v7336_v15 }
  0x9f   : > { %993 = vmatmul.mubr.bf16.gmra.mrb[52].mxu0 %v7488_v23 }
  0xa0   : > { %1459 = vmatmul.mubr.bf16.gmra.mrb[52].mxu1 %v7477_v57  ;;  %1000 = vmatprep.mubr.bf16.mxu0 %v7382_v42 }
  0xa1   : > { %1466 = vmatprep.mubr.bf16.mxu1 %v7338_v18 }
  0xa7   : > { %1001 = vmatmul.mubr.bf16.gmra.mrb[56].mxu0 %v7496_v28 }
  0xa8   : > { %1467 = vmatmul.mubr.bf16.gmra.mrb[56].mxu1 %v7488_v23  ;;  %1008 = vmatprep.mubr.bf16.mxu0 %v7384_v3 }
  0xa9   : > { %1474 = vmatprep.mubr.bf16.mxu1 %v7382_v42 }
  0xaf   : > { %1009 = vmatmul.mubr.bf16.gmra.mrb[60].mxu0 %v7505_v39 }
  0xb0   : > { %1475 = vmatmul.mubr.bf16.gmra.mrb[60].mxu1 %v7496_v28  ;;  %6010 = vmatprep.mubr.bf16.mxu0 %v7203_v4 }
  0xb1   : > { %6058 = vmatprep.mubr.bf16.mxu1 %v7208_v5 }
  0xb7   : > { %6011 = vmatmul.mubr.bf16.vlgmr.msra.gmra.mrb[64].mxu0 %v7208_v5 }
  0xb8   : > { %6059 = vmatmul.mubr.bf16.vlgmr.msra.gmra.mrb[64].mxu1 %v7203_v4  ;;  %5451 = vmatpush3.bf16.msra.mxu0 %v6692_v32  ;;  %v6704_v4 = vld [vmem:[%s9546_s1 + $0x210] sm:$0xff]  }
  0xb9   : > { %6014 = vmatprep.mubr.bf16.mxu0 %v7213_v6  ;;  %6062 = vmatprep.mubr.bf16.mxu1 %v7208_v5  ;;  %v6709_v32 = vld [vmem:[%s9546_s1 + $0x1b0] sm:$0xff]  }
  0xba   : > { %5452 = vmatprep.subr.bf16.mxu0 %v6693_v58  ;;  %6091 = vmatpush3.bf16.msra.mxu1 %v7307_v11  ;;  %v6706_v11 = vld [vmem:[%s9546_s1 + $0x218] sm:$0xff]  }
  0xbb   : > { %6092 = vmatprep.subr.bf16.mxu1 %v6702_v36  ;;  %v6711_v58 = vld [vmem:[%s9546_s1 + $0x1f8] sm:$0xff]  }
  0xbc   : > { %5453 = vmatpush3.bf16.msra.mxu0 %v6694_v29  ;;  %v6713_v29 = vld [vmem:[%s9546_s1 + $0x1b8] sm:$0xff]  }
  0xbd   : > { %5454 = vmatprep.subr.bf16.mxu0 %v6695_v35 }
  0xbe   : > { %6093 = vmatpush3.bf16.msra.mxu1 %v6702_v36  ;;  %v6714_v36 = vld [vmem:[%s9546_s1 + $0x238] sm:$0xff]  }
  0xbf   : > { %6015 = vmatmul.mubr.bf16.gmra.mrb[68].mxu0 %v7217_v7  ;;  %6094 = vmatprep.subr.bf16.mxu1 %v6704_v4 }
  0xc0   : > { %6063 = vmatmul.mubr.bf16.gmra.mrb[68].mxu1 %v7213_v6  ;;  %6018 = vmatprep.mubr.bf16.mxu0 %v7242_v16 }
  0xc1   : > { %6066 = vmatprep.mubr.bf16.mxu1 %v7217_v7  ;;  %5455 = vmatpush3.bf16.msra.mxu0 %v6696_v1 }
  0xc2   : > { %5456 = vmatprep.subr.bf16.mxu0 %v6697_v8  ;;  %6095 = vmatpush3.bf16.msra.mxu1 %v6704_v4 }
  0xc3   : > { %6096 = vmatprep.subr.bf16.mxu1 %v6706_v11 }
  0xc5   : > { %5457 = vmatpush3.bf16.msra.mxu0 %v6698_v61 }
  0xc6   : > { %5458 = vmatprep.subr.bf16.mxu0 %v6699_v40  ;;  %6097 = vmatpush3.bf16.msra.mxu1 %v6706_v11 }
  0xc7   : > { %6019 = vmatmul.mubr.bf16.gmra.mrb[72].mxu0 %v7247_v17  ;;  %6098 = vmatprep.subr.bf16.mxu1 %v6708_v34 }
  0xc8   : > { %6067 = vmatmul.mubr.bf16.gmra.mrb[72].mxu1 %v7242_v16  ;;  %6022 = vmatprep.mubr.bf16.mxu0 %v7258_v21 }
  0xc9   : > { %6070 = vmatprep.mubr.bf16.mxu1 %v7247_v17  ;;  %5459 = vmatpush3.bf16.msra.mxu0 %v6701_v59 }
  0xca   : > { %5460 = vmatprep.subr.bf16.mxu0 %v6703_v62  ;;  %6099 = vmatpush3.bf16.msra.mxu1 %v6708_v34 }
  0xcb   : > { %6100 = vmatprep.subr.bf16.mxu1 %v6710_v51 }
  0xcd   : > { %5461 = vmatpush3.bf16.msra.mxu0 %v6705_v30 }
  0xce   : > { %5462 = vmatprep.subr.bf16.mxu0 %v6707_v49  ;;  %6101 = vmatpush3.bf16.msra.mxu1 %v6710_v51 }
  0xcf   : > { %6023 = vmatmul.mubr.bf16.gmra.mrb[76].mxu0 %v7274_v31  ;;  %6102 = vmatprep.subr.bf16.mxu1 %v6712_v24 }
  0xd0   : > { %6071 = vmatmul.mubr.bf16.gmra.mrb[76].mxu1 %v7258_v21  ;;  %6026 = vmatprep.mubr.bf16.mxu0 %v7294_v48 }
  0xd1   : > { %6074 = vmatprep.mubr.bf16.mxu1 %v7274_v31  ;;  %5463 = vmatpush3.bf16.msra.mxu0 %v6709_v32 }
  0xd2   : > { %5464 = vmatprep.subr.bf16.mxu0 %v6711_v58  ;;  %6103 = vmatpush3.bf16.msra.mxu1 %v6712_v24 }
  0xd3   : > { %6104 = vmatprep.subr.bf16.mxu1 %v6714_v36 }
  0xd5   : > { %5465 = vmatpush3.bf16.msra.mxu0 %v6713_v29 }
  0xd6   : > { %6105 = vmatpush3.bf16.msra.mxu1 %v6714_v36 }
  0xd7   : > { %6027 = vmatmul.mubr.bf16.gmra.mrb[80].mxu0 %v7299_v54 }
  0xd8   : > { %6075 = vmatmul.mubr.bf16.gmra.mrb[80].mxu1 %v7294_v48  ;;  %6030 = vmatprep.mubr.bf16.mxu0 %v7343_v19 }
  0xd9   : > { %6078 = vmatprep.mubr.bf16.mxu1 %v7299_v54 }
  0xdf   : > { %6031 = vmatmul.mubr.bf16.gmra.mrb[84].mxu0 %v7348_v22 }
  0xe0   : > { %6079 = vmatmul.mubr.bf16.gmra.mrb[84].mxu1 %v7343_v19  ;;  %6034 = vmatprep.mubr.bf16.mxu0 %v7389_v9 }
  0xe1   : > { %6082 = vmatprep.mubr.bf16.mxu1 %v7348_v22 }
  0xe7   : > { %6035 = vmatmul.mubr.bf16.gmra.mrb[88].mxu0 %v7394_v10 }
  0xe8   : > { %6083 = vmatmul.mubr.bf16.gmra.mrb[88].mxu1 %v7389_v9  ;;  %6038 = vmatprep.mubr.bf16.mxu0 %v7418_v52 }
  0xe9   : > { %6086 = vmatprep.mubr.bf16.mxu1 %v7394_v10 }
  0xef   : > { %6039 = vmatmul.mubr.bf16.gmra.mrb[92].mxu0 %v7423_v20 }
  0xf0   : > { %6087 = vmatmul.mubr.bf16.gmra.mrb[92].mxu1 %v7418_v52  ;;  %1918 = vmatprep.mubr.bf16.mxu0 %v7033_v37 }
  0xf1   : > { %6106 = vmatprep.mubr.bf16.mxu1 %v7208_v5 }
  0xf7   : > { %1919 = vmatmul.mubr.bf16.vlgmr.msra.gmra.mrb[96].mxu0 %v7065_v55 }
  0xf8   : > { %6107 = vmatmul.mubr.bf16.vlgmr.msra.gmra.mrb[64].mxu1 %v7213_v6  ;;  %1926 = vmatprep.mubr.bf16.mxu0 %v7053_v50 }
  0xf9   : > { %6110 = vmatprep.mubr.bf16.mxu1 %v7217_v7 }
  0xff   : > { %1927 = vmatmul.mubr.bf16.gmra.mrb[100].mxu0 %v7133_v27 }
 0x100   : > { %6111 = vmatmul.mubr.bf16.gmra.mrb[68].mxu1 %v7242_v16  ;;  %1934 = vmatprep.mubr.bf16.mxu0 %v7080_v63 }
 0x101   : > { %6114 = vmatprep.mubr.bf16.mxu1 %v7247_v17 }
 0x107   : > { %1935 = vmatmul.mubr.bf16.gmra.mrb[104].mxu0 %v7189_v60 }
 0x108   : > { %6115 = vmatmul.mubr.bf16.gmra.mrb[72].mxu1 %v7258_v21  ;;  %1942 = vmatprep.mubr.bf16.mxu0 %v7082_v0 }
 0x109   : > { %6118 = vmatprep.mubr.bf16.mxu1 %v7274_v31 }
 0x10a   : > { %v5194_v37 = vpop.f32.mrb[0].mxu0 }
 0x10b   : > { %v5195_v50 = vpop.f32.mrb[1].mxu0  ;;  %v5330_v55 = vpop.f32.mrb[0].mxu1 }
 0x10c   : > { %v5197_v5 = vpop.f32.mrb[2].mxu0  ;;  %v5331_v6 = vpop.f32.mrb[1].mxu1  ;;  %v7622_v27 = vadd.f32 %v5195_v50, %v5194_v37 }
 0x10d   : > { %v5198_v7 = vpop.f32.mrb[3].mxu0  ;;  %v7624_v16 = vadd.f32 %v5331_v6, %v5330_v55  ;;  %v5333_v63 = vpop.f32.mrb[2].mxu1 }
 0x10e   : > { %v5334_v17 = vpop.f32.mrb[3].mxu1  ;;  %v7626_v35 = vadd.f32 %v5198_v7, %v5197_v5 }
 0x10f   : > { %1943 = vmatmul.mubr.bf16.gmra.mrb[108].mxu0 %v7287_v38  ;;  %v7629_v60 = vadd.f32 %v5334_v17, %v5333_v63 }
 0x110   : > { %6119 = vmatmul.mubr.bf16.gmra.mrb[76].mxu1 %v7294_v48  ;;  %1950 = vmatprep.mubr.bf16.mxu0 %v7107_v13  ;;  %v9575_v13 = vld [vmem:[#allocation7_spill] sm:$0xff] }
 0x111   : > { %6122 = vmatprep.mubr.bf16.mxu1 %v7299_v54 }
 0x112   : > { %v5200_v0 = vpop.f32.mrb[4].mxu0 }
 0x113   : > { %v5201_v21 = vpop.f32.mrb[5].mxu0  ;;  %v5336_v31 = vpop.f32.mrb[4].mxu1 }
 0x114   : > { %v5203_v4 = vpop.f32.mrb[6].mxu0  ;;  %v5337_v1 = vpop.f32.mrb[5].mxu1  ;;  %v7634_v8 = vadd.f32 %v5201_v21, %v5200_v0 }
 0x115   : > { %v5204_v11 = vpop.f32.mrb[7].mxu0  ;;  %v7636_v61 = vadd.f32 %v5337_v1, %v5336_v31  ;;  %v5339_v40 = vpop.f32.mrb[6].mxu1 }
 0x116   : > { %v5340_v38 = vpop.f32.mrb[7].mxu1  ;;  %v7638_v34 = vadd.f32 %v5204_v11, %v5203_v4 }
 0x117   : > { %1951 = vmatmul.mubr.bf16.gmra.mrb[112].mxu0 %v7334_v45  ;;  %v7641_v48 = vadd.f32 %v5340_v38, %v5339_v40 }
 0x118   : > { %6123 = vmatmul.mubr.bf16.gmra.mrb[80].mxu1 %v7343_v19  ;;  %1958 = vmatprep.mubr.bf16.mxu0 %v9575_v13 }
 0x119   : > { %6126 = vmatprep.mubr.bf16.mxu1 %v7348_v22 }
 0x11a   : > { %v5206_v54 = vpop.f32.mrb[8].mxu0 }
 0x11b   : > { %v5207_v59 = vpop.f32.mrb[9].mxu0  ;;  %v5342_v62 = vpop.f32.mrb[8].mxu1 }
 0x11c   : > { %v5209_v51 = vpop.f32.mrb[10].mxu0  ;;  %v5343_v30 = vpop.f32.mrb[9].mxu1  ;;  %v7646_v49 = vadd.f32 %v5207_v59, %v5206_v54 }
 0x11d   : > { %v5210_v24 = vpop.f32.mrb[11].mxu0  ;;  %v7648_v32 = vadd.f32 %v5343_v30, %v5342_v62  ;;  %v5345_v58 = vpop.f32.mrb[10].mxu1 }
 0x11e   : > { %v5346_v45 = vpop.f32.mrb[11].mxu1  ;;  %v7650_v36 = vadd.f32 %v5210_v24, %v5209_v51 }
 0x11f   : > { %1959 = vmatmul.mubr.bf16.gmra.mrb[116].mxu0 %v7380_v46  ;;  %v7653_v19 = vadd.f32 %v5346_v45, %v5345_v58 }
 0x120   : > { %6127 = vmatmul.mubr.bf16.gmra.mrb[84].mxu1 %v7389_v9  ;;  %1966 = vmatprep.mubr.bf16.mxu0 %v7143_v33 }
 0x121   : > { %6130 = vmatprep.mubr.bf16.mxu1 %v7394_v10 }
 0x122   : > { %v5212_v22 = vpop.f32.mrb[12].mxu0 }
 0x123   : > { %v5213_v29 = vpop.f32.mrb[13].mxu0  ;;  %v5348_v37 = vpop.f32.mrb[12].mxu1 }
 0x124   : > { %v5215_v50 = vpop.f32.mrb[14].mxu0  ;;  %v5349_v55 = vpop.f32.mrb[13].mxu1  ;;  %v7658_v5 = vadd.f32 %v5213_v29, %v5212_v22 }
 0x125   : > { %v5216_v6 = vpop.f32.mrb[15].mxu0  ;;  %v7660_v7 = vadd.f32 %v5349_v55, %v5348_v37  ;;  %v5351_v63 = vpop.f32.mrb[14].mxu1 }
 0x126   : > { %v5352_v46 = vpop.f32.mrb[15].mxu1  ;;  %v7662_v17 = vadd.f32 %v5216_v6, %v5215_v50 }
 0x127   : > { %1967 = vmatmul.mubr.bf16.gmra.mrb[120].mxu0 %v7414_v41  ;;  %v7665_v9 = vadd.f32 %v5352_v46, %v5351_v63 }
 0x128   : > { %6131 = vmatmul.mubr.bf16.gmra.mrb[88].mxu1 %v7418_v52  ;;  %1974 = vmatprep.mubr.bf16.mxu0 %v7156_v43 }
 0x129   : > { %6134 = vmatprep.mubr.bf16.mxu1 %v7423_v20 }
 0x12a   : > { %v5218_v33 = vpop.f32.mrb[16].mxu0 }
 0x12b   : > { %v5219_v10 = vpop.f32.mrb[17].mxu0  ;;  %v5354_v0 = vpop.f32.mrb[16].mxu1 }
 0x12c   : > { %v5221_v21 = vpop.f32.mrb[18].mxu0  ;;  %v5355_v31 = vpop.f32.mrb[17].mxu1  ;;  %v7670_v4 = vadd.f32 %v5219_v10, %v5218_v33 }
 0x12d   : > { %v5222_v1 = vpop.f32.mrb[19].mxu0  ;;  %v7672_v11 = vadd.f32 %v5355_v31, %v5354_v0  ;;  %v5357_v40 = vpop.f32.mrb[18].mxu1 }
 0x12e   : > { %v5358_v41 = vpop.f32.mrb[19].mxu1  ;;  %v7674_v38 = vadd.f32 %v5222_v1, %v5221_v21 }
 0x12f   : > { %1975 = vmatmul.mubr.bf16.gmra.mrb[124].mxu0 %v7437_v2  ;;  %v7677_v13 = vadd.f32 %v5358_v41, %v5357_v40 }
 0x130   : > { %6135 = vmatmul.mubr.bf16.gmra.mrb[92].mxu1 %v7418_v52  ;;  %1982 = vmatprep.mubr.bf16.mxu0 %v7173_v53 }
 0x132   : > { %v5224_v43 = vpop.f32.mrb[20].mxu0 }
 0x133   : > { %v5225_v20 = vpop.f32.mrb[21].mxu0  ;;  %v5360_v54 = vpop.f32.mrb[20].mxu1 }
 0x134   : > { %v5227_v59 = vpop.f32.mrb[22].mxu0  ;;  %v5361_v62 = vpop.f32.mrb[21].mxu1  ;;  %v7681_v51 = vadd.f32 %v5225_v20, %v5224_v43 }
 0x135   : > { %v5228_v30 = vpop.f32.mrb[23].mxu0  ;;  %v7683_v24 = vadd.f32 %v5361_v62, %v5360_v54  ;;  %v5363_v58 = vpop.f32.mrb[22].mxu1 }
 0x136   : > { %v5364_v45 = vpop.f32.mrb[23].mxu1  ;;  %v7685_v22 = vadd.f32 %v5228_v30, %v5227_v59 }
 0x137   : > { %1983 = vmatmul.mubr.bf16.gmra.mrb[128].mxu0 %v7447_v26  ;;  %v7688_v2 = vadd.f32 %v5364_v45, %v5363_v58 }
 0x138   : > { %1990 = vmatprep.mubr.bf16.mxu0 %v7263_v25 }
 0x13a   : > { %v5230_v53 = vpop.f32.mrb[24].mxu0 }
 0x13b   : > { %v5231_v52 = vpop.f32.mrb[25].mxu0  ;;  %v5366_v29 = vpop.f32.mrb[24].mxu1 }
 0x13c   : > { %v5233_v37 = vpop.f32.mrb[26].mxu0  ;;  %v5367_v50 = vpop.f32.mrb[25].mxu1  ;;  %v7691_v55 = vadd.f32 %v5231_v52, %v5230_v53 }
 0x13d   : > { %v5234_v6 = vpop.f32.mrb[27].mxu0  ;;  %v7693_v63 = vadd.f32 %v5367_v50, %v5366_v29  ;;  %v5369_v46 = vpop.f32.mrb[26].mxu1 }
 0x13e   : > { %v5370_v33 = vpop.f32.mrb[27].mxu1  ;;  %v7695_v10 = vadd.f32 %v5234_v6, %v5233_v37 }
 0x13f   : > { %1991 = vmatmul.mubr.bf16.gmra.mrb[132].mxu0 %v7457_v14  ;;  %v7698_v26 = vadd.f32 %v5370_v33, %v5369_v46 }
 0x140   : > { %1998 = vmatprep.mubr.bf16.mxu0 %v7289_v44 }
 0x142   : > { %v5236_v25 = vpop.f32.mrb[28].mxu0 }
 0x143   : > { %v5237_v0 = vpop.f32.mrb[29].mxu0  ;;  %v5372_v21 = vpop.f32.mrb[28].mxu1 }
 0x144   : > { %v5239_v31 = vpop.f32.mrb[30].mxu0  ;;  %v5373_v1 = vpop.f32.mrb[29].mxu1  ;;  %v7701_v40 = vadd.f32 %v5237_v0, %v5236_v25 }
 0x145   : > { %v5240_v41 = vpop.f32.mrb[31].mxu0  ;;  %v7703_v43 = vadd.f32 %v5373_v1, %v5372_v21  ;;  %v5375_v20 = vpop.f32.mrb[30].mxu1 }
 0x146   : > { %v5376_v54 = vpop.f32.mrb[31].mxu1  ;;  %v7705_v59 = vadd.f32 %v5240_v41, %v5239_v31 }
 0x147   : > { %1999 = vmatmul.mubr.bf16.gmra.mrb[136].mxu0 %v7467_v12  ;;  %v7708_v14 = vadd.f32 %v5376_v54, %v5375_v20 }
 0x148   : > { %2006 = vmatprep.mubr.bf16.mxu0 %v7336_v15 }
 0x14a   : > { %v5242_v44 = vpop.f32.mrb[32].mxu0 }
 0x14b   : > { %v5243_v62 = vpop.f32.mrb[33].mxu0  ;;  %v5378_v30 = vpop.f32.mrb[32].mxu1 }
 0x14c   : > { %v7711_v58 = vadd.f32 %v5243_v62, %v5242_v44  ;;  %v5245_v45 = vpop.f32.mrb[34].mxu0  ;;  %v5379_v53 = vpop.f32.mrb[33].mxu1 }
 0x14d   : > { %v5246_v52 = vpop.f32.mrb[35].mxu0  ;;  %v7713_v29 = vadd.f32 %v5379_v53, %v5378_v30  ;;  %v5381_v37 = vpop.f32.mrb[34].mxu1 }
 0x14e   : > { %v7715_v50 = vadd.f32 %v5246_v52, %v5245_v45  ;;  %v5382_v6 = vpop.f32.mrb[35].mxu1 }
 0x14f   : > { %2007 = vmatmul.mubr.bf16.gmra.mrb[140].mxu0 %v7477_v57  ;;  %v7718_v12 = vadd.f32 %v5382_v6, %v5381_v37 }
 0x150   : > { %2014 = vmatprep.mubr.bf16.mxu0 %v7338_v18 }
 0x152   : > { %v5248_v15 = vpop.f32.mrb[36].mxu0 }
 0x153   : > { %v5249_v46 = vpop.f32.mrb[37].mxu0  ;;  %v5384_v33 = vpop.f32.mrb[36].mxu1 }
 0x154   : > { %v7721_v25 = vadd.f32 %v5249_v46, %v5248_v15  ;;  %v5251_v0 = vpop.f32.mrb[38].mxu0  ;;  %v5385_v21 = vpop.f32.mrb[37].mxu1 }
 0x155   : > { %v5252_v31 = vpop.f32.mrb[39].mxu0  ;;  %v7723_v1 = vadd.f32 %v5385_v21, %v5384_v33  ;;  %v5387_v41 = vpop.f32.mrb[38].mxu1 }
 0x156   : > { %v7725_v20 = vadd.f32 %v5252_v31, %v5251_v0  ;;  %v5388_v54 = vpop.f32.mrb[39].mxu1 }
 0x157   : > { %2015 = vmatmul.mubr.bf16.gmra.mrb[144].mxu0 %v7488_v23  ;;  %v7728_v57 = vadd.f32 %v5388_v54, %v5387_v41 }
 0x158   : > { %2022 = vmatprep.mubr.bf16.mxu0 %v7382_v42 }
 0x15a   : > { %v5254_v18 = vpop.f32.mrb[40].mxu0 }
 0x15b   : > { %v5255_v44 = vpop.f32.mrb[41].mxu0  ;;  %v5390_v62 = vpop.f32.mrb[40].mxu1 }
 0x15c   : > { %v7731_v30 = vadd.f32 %v5255_v44, %v5254_v18  ;;  %v5257_v45 = vpop.f32.mrb[42].mxu0  ;;  %v5391_v53 = vpop.f32.mrb[41].mxu1 }
 0x15d   : > { %v5258_v52 = vpop.f32.mrb[43].mxu0  ;;  %v7733_v37 = vadd.f32 %v5391_v53, %v5390_v62  ;;  %v5393_v6 = vpop.f32.mrb[42].mxu1 }
 0x15e   : > { %v7735_v15 = vadd.f32 %v5258_v52, %v5257_v45  ;;  %v5394_v46 = vpop.f32.mrb[43].mxu1 }
 0x15f   : > { %2023 = vmatmul.mubr.bf16.gmra.mrb[148].mxu0 %v7496_v28  ;;  %v7738_v23 = vadd.f32 %v5394_v46, %v5393_v6 }
 0x160   : > { %9576 = vst [vmem:[#allocation7_spill] sm:$0xff] %v7735_v15  ;;  %2030 = vmatprep.mubr.bf16.mxu0 %v7384_v3 }
 0x161   : > { %9577 = vst [vmem:[#allocation9_spill] sm:$0xff] %v7738_v23 }
 0x162   : > { %v5260_v33 = vpop.f32.mrb[44].mxu0 }
 0x163   : > { %v5261_v0 = vpop.f32.mrb[45].mxu0  ;;  %v5396_v21 = vpop.f32.mrb[44].mxu1 }
 0x164   : > { %v7741_v31 = vadd.f32 %v5261_v0, %v5260_v33  ;;  %v5263_v41 = vpop.f32.mrb[46].mxu0  ;;  %v5397_v54 = vpop.f32.mrb[45].mxu1 }
 0x165   : > { %v5264_v18 = vpop.f32.mrb[47].mxu0  ;;  %v7743_v44 = vadd.f32 %v5397_v54, %v5396_v21  ;;  %v5399_v62 = vpop.f32.mrb[46].mxu1 }
 0x166   : > { %v7745_v45 = vadd.f32 %v5264_v18, %v5263_v41  ;;  %v5400_v53 = vpop.f32.mrb[47].mxu1 }
 0x167   : > { %2031 = vmatmul.mubr.bf16.gmra.mrb[152].mxu0 %v7505_v39  ;;  %v7748_v52 = vadd.f32 %v5400_v53, %v5399_v62 }
 0x168   : > { %2038 = vmatprep.mubr.bf16.mxu0 %v7382_v42 }
 0x169   : > { %9578 = vst [vmem:[#allocation10_spill] sm:$0xff] %v7748_v52 }
 0x16a   : > { %v5266_v3 = vpop.f32.mrb[48].mxu0 }
 0x16b   : > { %v5267_v6 = vpop.f32.mrb[49].mxu0  ;;  %v5402_v46 = vpop.f32.mrb[48].mxu1 }
 0x16c   : > { %v7751_v33 = vadd.f32 %v5267_v6, %v5266_v3  ;;  %v5269_v0 = vpop.f32.mrb[50].mxu0  ;;  %v5403_v47 = vpop.f32.mrb[49].mxu1 }
 0x16d   : > { %v5270_v56 = vpop.f32.mrb[51].mxu0  ;;  %v7753_v21 = vadd.f32 %v5403_v47, %v5402_v46  ;;  %v5405_v54 = vpop.f32.mrb[50].mxu1 }
 0x16e   : > { %9579 = vst [vmem:[#allocation11_spill] sm:$0xff] %v7751_v33  ;;  %v7755_v41 = vadd.f32 %v5270_v56, %v5269_v0  ;;  %v5406_v18 = vpop.f32.mrb[51].mxu1 }
 0x16f   : > { %9580 = vst [vmem:[#allocation12_spill] sm:$0xff] %v7753_v21  ;;  %2039 = vmatmul.mubr.bf16.gmra.mrb[156].mxu0 %v7496_v28  ;;  %v7758_v39 = vadd.f32 %v5406_v18, %v5405_v54 }
 0x170   : > { %9581 = vst [vmem:[#allocation13_spill] sm:$0xff] %v7755_v41 }
 0x171   : > { %9582 = vst [vmem:[#allocation14_spill] sm:$0xff] %v7758_v39 }
 0x172   : > { %v5272_v62 = vpop.f32.mrb[52].mxu0 }
 0x173   : > { %v5273_v42 = vpop.f32.mrb[53].mxu0  ;;  %v5408_v53 = vpop.f32.mrb[52].mxu1 }
 0x174   : > { %v7760_v23 = vadd.f32 %v5273_v42, %v5272_v62  ;;  %v5275_v3 = vpop.f32.mrb[54].mxu0  ;;  %v5409_v6 = vpop.f32.mrb[53].mxu1 }
 0x175   : > { %v5276_v33 = vpop.f32.mrb[55].mxu0  ;;  %v7762_v52 = vadd.f32 %v5409_v6, %v5408_v53  ;;  %v5411_v47 = vpop.f32.mrb[54].mxu1 }
 0x176   : > { %9583 = vst [vmem:[#allocation15_spill] sm:$0xff] %v7760_v23  ;;  %v7764_v46 = vadd.f32 %v5276_v33, %v5275_v3  ;;  %v5412_v56 = vpop.f32.mrb[55].mxu1 }
 0x177   : > { %9584 = vst [vmem:[#allocation16_spill] sm:$0xff] %v7762_v52  ;;  %v7766_v0 = vadd.f32 %v5412_v56, %v5411_v47 }
 0x178   : > { %9585 = vst [vmem:[#allocation17_spill] sm:$0xff] %v7764_v46 }
 0x179   : > { %9586 = vst [vmem:[#allocation18_spill] sm:$0xff] %v7766_v0 }
 0x17a   : > { %v5278_v41 = vpop.f32.mrb[56].mxu0 }
 0x17b   : > { %v5279_v28 = vpop.f32.mrb[57].mxu0  ;;  %v5414_v54 = vpop.f32.mrb[56].mxu1 }
 0x17c   : > { %v7768_v18 = vadd.f32 %v5279_v28, %v5278_v41  ;;  %v5281_v39 = vpop.f32.mrb[58].mxu0  ;;  %v5415_v21 = vpop.f32.mrb[57].mxu1 }
 0x17d   : > { %v5282_v62 = vpop.f32.mrb[59].mxu0  ;;  %v7770_v42 = vadd.f32 %v5415_v21, %v5414_v54  ;;  %v5417_v23 = vpop.f32.mrb[58].mxu1 }
 0x17e   : > { %9587 = vst [vmem:[#allocation19_spill] sm:$0xff] %v7768_v18  ;;  %v7772_v15 = vadd.f32 %v5282_v62, %v5281_v39  ;;  %v5418_v53 = vpop.f32.mrb[59].mxu1 }
 0x17f   : > { %v7774_v6 = vadd.f32 %v5418_v53, %v5417_v23 }
 0x181   : > { %9588 = vst [vmem:[#allocation20_spill] sm:$0xff] %v7774_v6 }
 0x182   : > { %v5284_v33 = vpop.f32.mrb[60].mxu0 }
 0x183   : > { %v5285_v3 = vpop.f32.mrb[61].mxu0  ;;  %v5420_v47 = vpop.f32.mrb[60].mxu1 }
 0x184   : > { %v7776_v56 = vadd.f32 %v5285_v3, %v5284_v33  ;;  %v5287_v0 = vpop.f32.mrb[62].mxu0  ;;  %v5421_v46 = vpop.f32.mrb[61].mxu1 }
 0x185   : > { %v5288_v41 = vpop.f32.mrb[63].mxu0  ;;  %v7778_v28 = vadd.f32 %v5421_v46, %v5420_v47  ;;  %v5423_v18 = vpop.f32.mrb[62].mxu1 }
 0x186   : > { %v7780_v52 = vadd.f32 %v5288_v41, %v5287_v0  ;;  %v5424_v21 = vpop.f32.mrb[63].mxu1 }
 0x187   : > { %v7782_v54 = vadd.f32 %v5424_v21, %v5423_v18 }
 0x18a   : > { %v6012_v39 = vpop.f32.mrb[64].mxu0 }
 0x18b   : > { %v1060_v23 = vadd.f32 %v6012_v39, %v7634_v8  ;;  %v1051_v62 = vpop.f32.mrb[65].mxu0 }
 0x18c   : > { %v1052_v53 = vadd.f32 %v7622_v27, %v1051_v62  ;;  %v6013_v6 = vpop.f32.mrb[66].mxu0 }
 0x18d   : > { %v7787_v33 = vadd.f32 %v7636_v61, %v1060_v23  ;;  %v1063_v3 = vadd.f32 %v6013_v6, %v7638_v34  ;;  %v1054_v46 = vpop.f32.mrb[67].mxu0 }
 0x18e   : > { %v7791_v47 = vadd.f32 %v7624_v16, %v1052_v53  ;;  %v1055_v0 = vadd.f32 %v7626_v35, %v1054_v46 }
 0x18f   : > { %v7795_v18 = vadd.f32 %v7641_v48, %v1063_v3 }
 0x190   : > { %v7798_v8 = vadd.f32 %v7629_v60, %v1055_v0 }
 0x192   : > { %v6016_v41 = vpop.f32.mrb[68].mxu0 }
 0x193   : > { %v1076_v27 = vadd.f32 %v6016_v41, %v7658_v5  ;;  %v1067_v21 = vpop.f32.mrb[69].mxu0 }
 0x194   : > { %v1068_v61 = vadd.f32 %v7646_v49, %v1067_v21  ;;  %v6017_v39 = vpop.f32.mrb[70].mxu0 }
 0x195   : > { %v7803_v34 = vadd.f32 %v7660_v7, %v1076_v27  ;;  %v1079_v16 = vadd.f32 %v6017_v39, %v7662_v17  ;;  %v1070_v6 = vpop.f32.mrb[71].mxu0 }
 0x196   : > { %v7807_v35 = vadd.f32 %v7648_v32, %v1068_v61  ;;  %v1071_v48 = vadd.f32 %v7650_v36, %v1070_v6 }
 0x197   : > { %v7811_v60 = vadd.f32 %v7665_v9, %v1079_v16 }
 0x198   : > { %v7814_v5 = vadd.f32 %v7653_v19, %v1071_v48 }
 0x19a   : > { %v6020_v23 = vpop.f32.mrb[72].mxu0 }
 0x19b   : > { %v1092_v49 = vadd.f32 %v6020_v23, %v7681_v51  ;;  %v1083_v62 = vpop.f32.mrb[73].mxu0 }
 0x19c   : > { %v1084_v7 = vadd.f32 %v7670_v4, %v1083_v62  ;;  %v6021_v53 = vpop.f32.mrb[74].mxu0 }
 0x19d   : > { %v7819_v17 = vadd.f32 %v7683_v24, %v1092_v49  ;;  %v1095_v32 = vadd.f32 %v6021_v53, %v7685_v22  ;;  %v1086_v3 = vpop.f32.mrb[75].mxu0  ;;  %v9591_v53 = vld [vmem:[#allocation9_spill] sm:$0xff] }
 0x19e   : > { %v7823_v36 = vadd.f32 %v7672_v11, %v1084_v7  ;;  %v1087_v9 = vadd.f32 %v7674_v38, %v1086_v3 }
 0x19f   : > { %v7827_v19 = vadd.f32 %v7688_v2, %v1095_v32 }
 0x1a0   : > { %v7830_v51 = vadd.f32 %v7677_v13, %v1087_v9 }
 0x1a2   : > { %v6024_v46 = vpop.f32.mrb[76].mxu0 }
 0x1a3   : > { %v1108_v4 = vadd.f32 %v6024_v46, %v7701_v40  ;;  %v1099_v0 = vpop.f32.mrb[77].mxu0 }
 0x1a4   : > { %v1100_v24 = vadd.f32 %v7691_v55, %v1099_v0  ;;  %v6025_v41 = vpop.f32.mrb[78].mxu0 }
 0x1a5   : > { %v7835_v22 = vadd.f32 %v7703_v43, %v1108_v4  ;;  %v1111_v11 = vadd.f32 %v6025_v41, %v7705_v59  ;;  %v1102_v27 = vpop.f32.mrb[79].mxu0 }
 0x1a6   : > { %v7839_v38 = vadd.f32 %v7693_v63, %v1100_v24  ;;  %v1103_v2 = vadd.f32 %v7695_v10, %v1102_v27 }
 0x1a7   : > { %v7843_v13 = vadd.f32 %v7708_v14, %v1111_v11  ;;  %v9596_v11 = vld [vmem:[#allocation12_spill] sm:$0xff] }
 0x1a8   : > { %v7846_v40 = vadd.f32 %v7698_v26, %v1103_v2  ;;  %v9597_v2 = vld [vmem:[#allocation13_spill] sm:$0xff] }
 0x1aa   : > { %v6028_v21 = vpop.f32.mrb[80].mxu0 }
 0x1ab   : > { %v1124_v55 = vadd.f32 %v6028_v21, %v7721_v25  ;;  %v1115_v61 = vpop.f32.mrb[81].mxu0 }
 0x1ac   : > { %v1116_v43 = vadd.f32 %v7711_v58, %v1115_v61  ;;  %v6029_v39 = vpop.f32.mrb[82].mxu0 }
 0x1ad   : > { %v7851_v59 = vadd.f32 %v7723_v1, %v1124_v55  ;;  %v1127_v63 = vadd.f32 %v6029_v39, %v7725_v20  ;;  %v1118_v16 = vpop.f32.mrb[83].mxu0  ;;  %v9598_v55 = vld [vmem:[#allocation18_spill] sm:$0xff] }
 0x1ae   : > { %v7855_v10 = vadd.f32 %v7713_v29, %v1116_v43  ;;  %v1119_v14 = vadd.f32 %v7715_v50, %v1118_v16  ;;  %v9599_v43 = vld [vmem:[#allocation14_spill] sm:$0xff] }
 0x1af   : > { %v7859_v26 = vadd.f32 %v7728_v57, %v1127_v63  ;;  %v9589_v57 = vld [vmem:[#allocation7_spill] sm:$0xff] }
 0x1b0   : > { %v7862_v25 = vadd.f32 %v7718_v12, %v1119_v14  ;;  %v9590_v12 = vld [vmem:[#allocation10_spill] sm:$0xff] }
 0x1b2   : > { %v6032_v6 = vpop.f32.mrb[84].mxu0 }
 0x1b3   : > { %v1140_v58 = vadd.f32 %v6032_v6, %v7741_v31  ;;  %v1131_v48 = vpop.f32.mrb[85].mxu0  ;;  %v9600_v6 = vld [vmem:[#allocation19_spill] sm:$0xff] }
 0x1b4   : > { %v1132_v1 = vadd.f32 %v7731_v30, %v1131_v48  ;;  %v6033_v23 = vpop.f32.mrb[86].mxu0  ;;  %v9592_v30 = vld [vmem:[#allocation15_spill] sm:$0xff] }
 0x1b5   : > { %v7867_v20 = vadd.f32 %v7743_v44, %v1140_v58  ;;  %v1143_v29 = vadd.f32 %v6033_v23, %v7745_v45  ;;  %v1134_v49 = vpop.f32.mrb[87].mxu0  ;;  %v9593_v44 = vld [vmem:[#allocation11_spill] sm:$0xff]  ;;  %v9594_v45 = vld [vmem:[#allocation16_spill] sm:$0xff]  ;;  %v6716_v23 = vld [vmem:[%s9547_s2 + $0xc0] sm:$0xff]  }
 0x1b6   : > { %v7871_v50 = vadd.f32 %v7733_v37, %v1132_v1  ;;  %v1135_v62 = vadd.f32 %v9589_v57, %v1134_v49  ;;  %v9595_v37 = vld [vmem:[#allocation17_spill] sm:$0xff]  ;;  %v6715_v1 = vld [vmem:[%s9547_s2 + $0x100] sm:$0xff]  }
 0x1b7   : > { %v7875_v7 = vadd.f32 %v9590_v12, %v1143_v29  ;;  %5586 = vmatprep.subr.bf16.mxu0 %v6715_v1  ;;  %v6717_v12 = vld [vmem:[%s9547_s2 + $0x140] sm:$0xff]  }
 0x1b8   : > { %v7878_v31 = vadd.f32 %v9591_v53, %v1135_v62  ;;  %5587 = vmatpush3.bf16.msra.mxu0 %v6716_v23  ;;  %6138 = vmatprep.subr.bf16.mxu1 %v6717_v12 }
 0x1b9   : > { %6139 = vmatpush3.bf16.msra.mxu1 %v6717_v12 }
 0x1ba   : > { %v6036_v32 = vpop.f32.mrb[88].mxu0 }
 0x1bb   : > { %v1156_v3 = vadd.f32 %v6036_v32, %v9592_v30  ;;  %v1147_v9 = vpop.f32.mrb[89].mxu0  ;;  %v9601_v32 = vld [vmem:[#allocation20_spill] sm:$0xff] }
 0x1bc   : > { %v1148_v46 = vadd.f32 %v9593_v44, %v1147_v9  ;;  %v6037_v4 = vpop.f32.mrb[90].mxu0 }
 0x1bd   : > { %v7883_v0 = vadd.f32 %v9594_v45, %v1156_v3  ;;  %v1159_v24 = vadd.f32 %v6037_v4, %v9595_v37  ;;  %v1150_v41 = vpop.f32.mrb[91].mxu0 }
 0x1be   : > { %v7887_v27 = vadd.f32 %v9596_v11, %v1148_v46  ;;  %v1151_v21 = vadd.f32 %v9597_v2, %v1150_v41 }
 0x1bf   : > { %v7891_v61 = vadd.f32 %v9598_v55, %v1159_v24 }
 0x1c0   : > { %v7894_v39 = vadd.f32 %v9599_v43, %v1151_v21 }
 0x1c2   : > { %v6040_v63 = vpop.f32.mrb[92].mxu0 }
 0x1c3   : > { %v1172_v16 = vadd.f32 %v6040_v63, %v7776_v56  ;;  %v1163_v14 = vpop.f32.mrb[93].mxu0 }
 0x1c4   : > { %v1164_v58 = vadd.f32 %v9600_v6, %v1163_v14  ;;  %v6041_v48 = vpop.f32.mrb[94].mxu0 }
 0x1c5   : > { %v7905_v29 = vadd.f32 %v7778_v28, %v1172_v16  ;;  %v1175_v49 = vadd.f32 %v6041_v48, %v7780_v52  ;;  %v1166_v57 = vpop.f32.mrb[95].mxu0 }
 0x1c6   : > { %v7909_v56 = vadd.f32 %v7770_v42, %v1164_v58  ;;  %v1167_v62 = vadd.f32 %v7772_v15, %v1166_v57 }
 0x1c7   : > { %v7916_v53 = vadd.f32 %v7782_v54, %v1175_v49 }
 0x1c8   : > { %v7919_v28 = vadd.f32 %v9601_v32, %v1167_v62 }
 0x1ca   : > { %v5466_v52 = vpop.f32.mrb[96].mxu0 }
 0x1cb   : > { %v6108_v30 = vpop.f32.mrb[64].mxu1  ;;  %v5467_v42 = vpop.f32.mrb[97].mxu0 }
 0x1cc   : > { %v5468_v3 = vadd.f32 %v5467_v42, %v5466_v52  ;;  %v2081_v9 = vpop.f32.mrb[65].mxu1  ;;  %v5469_v15 = vpop.f32.mrb[98].mxu0 }
 0x1cd   : > { %v6109_v44 = vpop.f32.mrb[66].mxu1  ;;  %v5470_v46 = vpop.f32.mrb[99].mxu0 }
 0x1ce   : > { %v6288_v4 = vadd.f32 %v5468_v3, %v7791_v47  ;;  %v5471_v45 = vadd.f32 %v5470_v46, %v5469_v15  ;;  %v2084_v37 = vpop.f32.mrb[67].mxu1 }
 0x1d0   : > { %v7922_v54 = vadd.f32 %v6288_v4, %v2081_v9  ;;  %v6296_v24 = vadd.f32 %v5471_v45, %v7798_v8 }
 0x1d2   : > { %v7925_v41 = vadd.f32 %v6296_v24, %v2084_v37  ;;  %v5472_v11 = vpop.f32.mrb[100].mxu0 }
 0x1d3   : > { %v6112_v2 = vpop.f32.mrb[68].mxu1  ;;  %v5473_v21 = vpop.f32.mrb[101].mxu0 }
 0x1d4   : > { %v5474_v55 = vadd.f32 %v5473_v21, %v5472_v11  ;;  %v2097_v43 = vpop.f32.mrb[69].mxu1  ;;  %v5475_v63 = vpop.f32.mrb[102].mxu0 }
 0x1d5   : > { %v6113_v16 = vpop.f32.mrb[70].mxu1  ;;  %v5476_v14 = vpop.f32.mrb[103].mxu0 }
 0x1d6   : > { %v6284_v6 = vadd.f32 %v5474_v55, %v7787_v33  ;;  %v5477_v58 = vadd.f32 %v5476_v14, %v5475_v63  ;;  %v2100_v47 = vpop.f32.mrb[71].mxu1 }
 0x1d8   : > { %v7928_v48 = vadd.f32 %v6284_v6, %v6108_v30  ;;  %v6292_v1 = vadd.f32 %v5477_v58, %v7795_v18  ;;  %v6718_v6 = vld [vmem:[%s9547_s2 + $0x148] sm:$0xff]   ;;  %v2278_v58 = vmul.f32 %v7922_v54, %v7922_v54 }
 0x1d9   : > { %6140 = vmatprep.subr.bf16.mxu1 %v6718_v6 }
 0x1da   : > { %v7931_v23 = vadd.f32 %v6292_v1, %v6109_v44  ;;  %v5478_v8 = vpop.f32.mrb[104].mxu0  ;;  %6141 = vmatpush3.bf16.msra.mxu1 %v6718_v6 }
 0x1db   : > { %v7933_v49 = vpop.f32.mrb[72].mxu1  ;;  %v5479_v57 = vpop.f32.mrb[105].mxu0 }
 0x1dc   : > { %v5480_v62 = vadd.f32 %v5479_v57, %v5478_v8  ;;  %v2113_v12 = vpop.f32.mrb[73].mxu1  ;;  %v5481_v32 = vpop.f32.mrb[106].mxu0 }
 0x1dd   : > { %v7935_v52 = vpop.f32.mrb[74].mxu1  ;;  %v5482_v42 = vpop.f32.mrb[107].mxu0 }
 0x1de   : > { %v6304_v33 = vadd.f32 %v5480_v62, %v7807_v35  ;;  %v5483_v3 = vadd.f32 %v5482_v42, %v5481_v32  ;;  %v2116_v9 = vpop.f32.mrb[75].mxu1 }
 0x1e0   : > { %v7938_v30 = vadd.f32 %v6304_v33, %v2097_v43  ;;  %v6312_v18 = vadd.f32 %v5483_v3, %v7814_v5  ;;  %v2279_v5 = vmul.f32 %v7925_v41, %v7925_v41 }
 0x1e2   : > { %v7941_v15 = vadd.f32 %v6312_v18, %v2100_v47  ;;  %v5484_v44 = vpop.f32.mrb[108].mxu0  ;;  %v2240_v47 = vadd.f32 %v7925_v41, %v7922_v54  ;;  %v2281_v18 = vmul.f32 %v7931_v23, %v7931_v23 }
 0x1e3   : > { %v7943_v46 = vpop.f32.mrb[76].mxu1  ;;  %v5485_v4 = vpop.f32.mrb[109].mxu0 }
 0x1e4   : > { %v5486_v45 = vadd.f32 %v5485_v4, %v5484_v44  ;;  %v7945_v37 = vpop.f32.mrb[77].mxu1  ;;  %v5487_v24 = vpop.f32.mrb[110].mxu0  ;;  %v2241_v62 = vadd.f32 %v7928_v48, %v2240_v47  ;;  %v6719_v4 = vld [vmem:[%s9547_s2 + $0x108] sm:$0xff]  }
 0x1e5   : > { %v7947_v11 = vpop.f32.mrb[78].mxu1  ;;  %v5488_v21 = vpop.f32.mrb[111].mxu0  ;;  %5588 = vmatprep.subr.bf16.mxu0 %v6719_v4 }
 0x1e6   : > { %v6300_v35 = vadd.f32 %v5486_v45, %v7803_v34  ;;  %v5489_v55 = vadd.f32 %v5488_v21, %v5487_v24  ;;  %v7950_v43 = vpop.f32.mrb[79].mxu1  ;;  %v2280_v34 = vmul.f32 %v7928_v48, %v7928_v48 }
 0x1e8   : > { %v7954_v63 = vadd.f32 %v6300_v35, %v6112_v2  ;;  %v6308_v14 = vadd.f32 %v5489_v55, %v7811_v60  ;;  %v2310_v2 = vadd.f32 %v2279_v5, %v2278_v58  ;;  %v6720_v35 = vld [vmem:[%s9547_s2 + $0xc8] sm:$0xff]   ;;  %v2282_v55 = vmul.f32 %v7938_v30, %v7938_v30 }
 0x1e9   : > { %v2242_v5 = vadd.f32 %v7931_v23, %v2241_v62  ;;  %5589 = vmatpush3.bf16.msra.mxu0 %v6720_v35 }
 0x1ea   : > { %v7966_v1 = vadd.f32 %v6308_v14, %v6113_v16  ;;  %v5490_v8 = vpop.f32.mrb[112].mxu0  ;;  %v2311_v3 = vadd.f32 %v2310_v2, %v2280_v34  ;;  %v6721_v2 = vld [vmem:[%s9547_s2 + $0x150] sm:$0xff]  }
 0x1eb   : > { %v7968_v57 = vpop.f32.mrb[80].mxu1  ;;  %v5491_v60 = vpop.f32.mrb[113].mxu0  ;;  %v2243_v34 = vadd.f32 %v7938_v30, %v2242_v5  ;;  %6142 = vmatprep.subr.bf16.mxu1 %v6721_v2 }
 0x1ec   : > { %v5492_v32 = vadd.f32 %v5491_v60, %v5490_v8  ;;  %v7971_v42 = vpop.f32.mrb[81].mxu1  ;;  %v5493_v33 = vpop.f32.mrb[114].mxu0  ;;  %v2312_v58 = vadd.f32 %v2311_v3, %v2281_v18  ;;  %v2283_v60 = vmul.f32 %v7941_v15, %v7941_v15  ;;  %v2284_v18 = vmul.f32 %v7954_v63, %v7954_v63  ;;  %6143 = vmatpush3.bf16.msra.mxu1 %v6721_v2 }
 0x1ed   : > { %v7975_v44 = vpop.f32.mrb[82].mxu1  ;;  %v5494_v16 = vpop.f32.mrb[115].mxu0 }
 0x1ee   : > { %v6320_v45 = vadd.f32 %v5492_v32, %v7823_v36  ;;  %v5495_v24 = vadd.f32 %v5494_v16, %v5493_v33  ;;  %v7981_v21 = vpop.f32.mrb[83].mxu1  ;;  %v6723_v36 = vld [vmem:[%s9547_s2 + $0x110] sm:$0xff]  }
 0x1ef   : > { %5590 = vmatprep.subr.bf16.mxu0 %v6723_v36 }
 0x1f0   : > { %v7989_v14 = vadd.f32 %v6320_v45, %v2113_v12  ;;  %v6328_v6 = vadd.f32 %v5495_v24, %v7830_v51  ;;  %v6724_v12 = vld [vmem:[%s9547_s2 + $0xd0] sm:$0xff]   ;;  %v2313_v51 = vadd.f32 %v2312_v58, %v2282_v55  ;;  %v6727_v45 = vld [vmem:[%s9547_s2 + $0x118] sm:$0xff]   ;;  %v2244_v24 = vadd.f32 %v7941_v15, %v2243_v34 }
 0x1f1   : > { %5591 = vmatpush3.bf16.msra.mxu0 %v6724_v12  ;;  %v6728_v58 = vld [vmem:[%s9547_s2 + $0xd8] sm:$0xff]   ;;  %v2285_v12 = vmul.f32 %v7966_v1, %v7966_v1 }
 0x1f2   : > { %9602 = vst [vmem:[#allocation7_spill] sm:$0xff] %v7989_v14  ;;  %v7996_v47 = vadd.f32 %v6328_v6, %v2116_v9  ;;  %v5496_v8 = vpop.f32.mrb[116].mxu0  ;;  %v6722_v6 = vld [vmem:[%s9547_s2 + $0x158] sm:$0xff]   ;;  %v2314_v36 = vadd.f32 %v2313_v51, %v2283_v60  ;;  %5592 = vmatprep.subr.bf16.mxu0 %v6727_v45 }
 0x1f3   : > { %v8006_v62 = vpop.f32.mrb[84].mxu1  ;;  %v5497_v32 = vpop.f32.mrb[117].mxu0  ;;  %6144 = vmatprep.subr.bf16.mxu1 %v6722_v6 }
 0x1f4   : > { %9603 = vst [vmem:[#allocation10_spill] sm:$0xff] %v7996_v47  ;;  %v5498_v33 = vadd.f32 %v5497_v32, %v5496_v8  ;;  %v8008_v9 = vpop.f32.mrb[85].mxu1  ;;  %v5499_v3 = vpop.f32.mrb[118].mxu0  ;;  %v2245_v8 = vadd.f32 %v7954_v63, %v2244_v24  ;;  %v2315_v34 = vadd.f32 %v2314_v36, %v2284_v18  ;;  %6145 = vmatpush3.bf16.msra.mxu1 %v6722_v6  ;;  %v6729_v32 = vld [vmem:[%s9547_s2 + $0x120] sm:$0xff]  }
 0x1f5   : > { %v8012_v16 = vpop.f32.mrb[86].mxu1  ;;  %v5500_v4 = vpop.f32.mrb[119].mxu0  ;;  %5593 = vmatpush3.bf16.msra.mxu0 %v6728_v58  ;;  %v6732_v58 = vld [vmem:[%s9547_s2 + $0x128] sm:$0xff]  }
 0x1f6   : > { %v6316_v35 = vadd.f32 %v5498_v33, %v7819_v17  ;;  %v5501_v55 = vadd.f32 %v5500_v4, %v5499_v3  ;;  %v8019_v5 = vpop.f32.mrb[87].mxu1  ;;  %v2286_v33 = vmul.f32 %v7989_v14, %v7989_v14  ;;  %5594 = vmatprep.subr.bf16.mxu0 %v6729_v32  ;;  %v2246_v4 = vadd.f32 %v7966_v1, %v2245_v8 }
 0x1f8   : > { %v8029_v2 = vadd.f32 %v6316_v35, %v7933_v49  ;;  %v6324_v17 = vadd.f32 %v5501_v55, %v7827_v19  ;;  %v6725_v49 = vld [vmem:[%s9547_s2 + $0x160] sm:$0xff]   ;;  %v2316_v35 = vadd.f32 %v2315_v34, %v2285_v12  ;;  %v2247_v36 = vadd.f32 %v7989_v14, %v2246_v4  ;;  %v6726_v34 = vld [vmem:[%s9547_s2 + $0x168] sm:$0xff]   ;;  %v6734_v4 = vld [vmem:[%s9547_s2 + $0x130] sm:$0xff]  }
 0x1f9   : > { %v6730_v19 = vld [vmem:[%s9547_s2 + $0xe0] sm:$0xff]   ;;  %6146 = vmatprep.subr.bf16.mxu1 %v6725_v49  ;;  %v6733_v12 = vld [vmem:[%s9547_s2 + $0xe8] sm:$0xff]  }
 0x1fa   : > { %9604 = vst [vmem:[#allocation9_spill] sm:$0xff] %v8029_v2  ;;  %v8038_v51 = vadd.f32 %v6324_v17, %v7935_v52  ;;  %v5502_v60 = vpop.f32.mrb[120].mxu0  ;;  %6147 = vmatpush3.bf16.msra.mxu1 %v6725_v49  ;;  %5595 = vmatpush3.bf16.msra.mxu0 %v6730_v19  ;;  %v2287_v49 = vmul.f32 %v7996_v47, %v7996_v47 }
 0x1fb   : > { %v8048_v3 = vpop.f32.mrb[88].mxu1  ;;  %v5503_v18 = vpop.f32.mrb[121].mxu0  ;;  %5596 = vmatprep.subr.bf16.mxu0 %v6732_v58  ;;  %6148 = vmatprep.subr.bf16.mxu1 %v6726_v34 }
 0x1fc   : > { %9605 = vst [vmem:[#allocation15_spill] sm:$0xff] %v8038_v51  ;;  %v5504_v52 = vadd.f32 %v5503_v18, %v5502_v60  ;;  %v8051_v45 = vpop.f32.mrb[89].mxu1  ;;  %v5505_v24 = vpop.f32.mrb[122].mxu0  ;;  %v2317_v60 = vadd.f32 %v2316_v35, %v2286_v33  ;;  %v2288_v18 = vmul.f32 %v8029_v2, %v8029_v2  ;;  %v2248_v33 = vadd.f32 %v7996_v47, %v2247_v36 }
 0x1fd   : > { %v8053_v55 = vpop.f32.mrb[90].mxu1  ;;  %v5506_v6 = vpop.f32.mrb[123].mxu0 }
 0x1fe   : > { %v6336_v17 = vadd.f32 %v5504_v52, %v7839_v38  ;;  %v5507_v8 = vadd.f32 %v5506_v6, %v5505_v24  ;;  %v8060_v32 = vpop.f32.mrb[91].mxu1  ;;  %6149 = vmatpush3.bf16.msra.mxu1 %v6726_v34  ;;  %5597 = vmatpush3.bf16.msra.mxu0 %v6733_v12  ;;  %v2318_v35 = vadd.f32 %v2317_v60, %v2287_v49  ;;  %v6736_v34 = vld [vmem:[%s9547_s2 + $0x178] sm:$0xff]  }
 0x1ff   : > { %5598 = vmatprep.subr.bf16.mxu0 %v6734_v4  ;;  %v6737_v12 = vld [vmem:[%s9547_s2 + $0x138] sm:$0xff]  }
 0x200   : > { %v8071_v19 = vadd.f32 %v6336_v17, %v7945_v37  ;;  %v6344_v38 = vadd.f32 %v5507_v8, %v7846_v40  ;;  %v6731_v40 = vld [vmem:[%s9547_s2 + $0x170] sm:$0xff]   ;;  %v2249_v17 = vadd.f32 %v8029_v2, %v2248_v33  ;;  %v2319_v60 = vadd.f32 %v2318_v35, %v2288_v18  ;;  %v6738_v4 = vld [vmem:[%s9547_s2 + $0xf8] sm:$0xff]  }
 0x201   : > { %v6735_v37 = vld [vmem:[%s9547_s2 + $0xf0] sm:$0xff]   ;;  %6150 = vmatprep.subr.bf16.mxu1 %v6731_v40  ;;  %v2289_v33 = vmul.f32 %v8038_v51, %v8038_v51 }
 0x202   : > { %v8081_v52 = vadd.f32 %v6344_v38, %v7950_v43  ;;  %v5508_v24 = vpop.f32.mrb[124].mxu0  ;;  %6151 = vmatpush3.bf16.msra.mxu1 %v6731_v40  ;;  %5599 = vmatpush3.bf16.msra.mxu0 %v6735_v37  ;;  %v2250_v18 = vadd.f32 %v8038_v51, %v2249_v17  ;;  %v2290_v40 = vmul.f32 %v8071_v19, %v8071_v19 }
 0x203   : > { %v8089_v6 = vpop.f32.mrb[92].mxu1  ;;  %v5509_v58 = vpop.f32.mrb[125].mxu0  ;;  %6152 = vmatprep.subr.bf16.mxu1 %v6736_v34  ;;  %5600 = vmatprep.subr.bf16.mxu0 %v6737_v12  ;;  %v2320_v47 = vadd.f32 %v2319_v60, %v2289_v33 }
 0x204   : > { %v5510_v36 = vadd.f32 %v5509_v58, %v5508_v24  ;;  %v8092_v8 = vpop.f32.mrb[93].mxu1  ;;  %v5511_v43 = vpop.f32.mrb[126].mxu0  ;;  %v2291_v17 = vmul.f32 %v8081_v52, %v8081_v52 }
 0x205   : > { %v8100_v49 = vpop.f32.mrb[94].mxu1  ;;  %v5512_v38 = vpop.f32.mrb[127].mxu0 }
 0x206   : > { %v6332_v24 = vadd.f32 %v5510_v36, %v7835_v22  ;;  %v5513_v58 = vadd.f32 %v5512_v38, %v5511_v43  ;;  %v8108_v2 = vpop.f32.mrb[95].mxu1  ;;  %6153 = vmatpush3.bf16.msra.mxu1 %v6736_v34  ;;  %5601 = vmatpush3.bf16.msra.mxu0 %v6738_v4  ;;  %v2251_v22 = vadd.f32 %v8071_v19, %v2250_v18 }
 0x207   : > { %v2321_v38 = vadd.f32 %v2320_v47, %v2290_v40 }
 0x208   : > { %v8114_v37 = vadd.f32 %v6332_v24, %v7943_v46  ;;  %v6340_v35 = vadd.f32 %v5513_v58, %v7843_v13  ;;  %v8126_v13 = vld [vmem:[%s9547_s2 + $0x80] sm:$0xff]   ;;  %v2252_v34 = vadd.f32 %v8081_v52, %v2251_v22 }
 0x209   : > { %6186 = vmatprep.subr.bf16.mxu1 %v8126_v13  ;;  %v2322_v47 = vadd.f32 %v2321_v38, %v2291_v17 }
 0x20a   : > { %v8119_v36 = vadd.f32 %v6340_v35, %v7947_v11  ;;  %v5514_v43 = vpop.f32.mrb[128].mxu0  ;;  %v2292_v11 = vmul.f32 %v8114_v37, %v8114_v37  ;;  %v2253_v33 = vadd.f32 %v8114_v37, %v2252_v34 }
 0x20b   : > { %v5515_v12 = vpop.f32.mrb[129].mxu0 }
 0x20c   : > { %v5516_v51 = vadd.f32 %v5515_v12, %v5514_v43  ;;  %v5517_v14 = vpop.f32.mrb[130].mxu0  ;;  %v2323_v18 = vadd.f32 %v2322_v47, %v2292_v11  ;;  %v2293_v40 = vmul.f32 %v8119_v36, %v8119_v36 }
 0x20d   : > { %v5518_v46 = vpop.f32.mrb[131].mxu0 }
 0x20e   : > { %v6352_v60 = vadd.f32 %v5516_v51, %v7855_v10  ;;  %v5519_v4 = vadd.f32 %v5518_v46, %v5517_v14  ;;  %v2254_v14 = vadd.f32 %v8119_v36, %v2253_v33  ;;  %v2324_v38 = vadd.f32 %v2323_v18, %v2293_v40 }
 0x210   : > { %v8135_v24 = vadd.f32 %v6352_v60, %v7971_v42  ;;  %v6360_v58 = vadd.f32 %v5519_v4, %v7862_v25 }
 0x212   : > { %v8141_v35 = vadd.f32 %v6360_v58, %v7981_v21  ;;  %v5520_v22 = vpop.f32.mrb[132].mxu0  ;;  %v2294_v51 = vmul.f32 %v8135_v24, %v8135_v24  ;;  %v2255_v25 = vadd.f32 %v8135_v24, %v2254_v14 }
 0x213   : > { %v5521_v10 = vpop.f32.mrb[133].mxu0 }
 0x214   : > { %v5522_v43 = vadd.f32 %v5521_v10, %v5520_v22  ;;  %v5523_v12 = vpop.f32.mrb[134].mxu0  ;;  %v2325_v34 = vadd.f32 %v2324_v38, %v2294_v51  ;;  %v2295_v21 = vmul.f32 %v8141_v35, %v8141_v35  ;;  %v2256_v4 = vadd.f32 %v8141_v35, %v2255_v25 }
 0x215   : > { %v5524_v42 = vpop.f32.mrb[135].mxu0 }
 0x216   : > { %v6348_v17 = vadd.f32 %v5522_v43, %v7851_v59  ;;  %v5525_v46 = vadd.f32 %v5524_v42, %v5523_v12  ;;  %v2326_v18 = vadd.f32 %v2325_v34, %v2295_v21 }
 0x218   : > { %v8151_v11 = vadd.f32 %v6348_v17, %v7968_v57  ;;  %v6356_v60 = vadd.f32 %v5525_v46, %v7859_v26 }
 0x21a   : > { %v2296_v47 = vmul.f32 %v8151_v11, %v8151_v11  ;;  %v8158_v33 = vadd.f32 %v6356_v60, %v7975_v44  ;;  %v5526_v58 = vpop.f32.mrb[136].mxu0  ;;  %v2257_v40 = vadd.f32 %v8151_v11, %v2256_v4 }
 0x21b   : > { %v5527_v59 = vpop.f32.mrb[137].mxu0 }
 0x21c   : > { %v5528_v22 = vadd.f32 %v5527_v59, %v5526_v58  ;;  %v5529_v10 = vpop.f32.mrb[138].mxu0  ;;  %v2327_v57 = vadd.f32 %v2326_v18, %v2296_v47  ;;  %v2297_v26 = vmul.f32 %v8158_v33, %v8158_v33  ;;  %v2258_v12 = vadd.f32 %v8158_v33, %v2257_v40 }
 0x21d   : > { %v5530_v14 = vpop.f32.mrb[139].mxu0 }
 0x21e   : > { %v6368_v51 = vadd.f32 %v5528_v22, %v7871_v50  ;;  %v5531_v43 = vadd.f32 %v5530_v14, %v5529_v10  ;;  %v2328_v38 = vadd.f32 %v2327_v57, %v2297_v26 }
 0x220   : > { %v8166_v44 = vadd.f32 %v6368_v51, %v8008_v9  ;;  %v6376_v42 = vadd.f32 %v5531_v43, %v7878_v31 }
 0x222   : > { %v2259_v25 = vadd.f32 %v8166_v44, %v2258_v12  ;;  %v2298_v17 = vmul.f32 %v8166_v44, %v8166_v44  ;;  %v8173_v46 = vadd.f32 %v6376_v42, %v8019_v5  ;;  %v5532_v34 = vpop.f32.mrb[140].mxu0 }
 0x223   : > { %v5533_v21 = vpop.f32.mrb[141].mxu0 }
 0x224   : > { %v2329_v50 = vadd.f32 %v2328_v38, %v2298_v17  ;;  %v2260_v60 = vadd.f32 %v8173_v46, %v2259_v25  ;;  %v2299_v9 = vmul.f32 %v8173_v46, %v8173_v46  ;;  %v5534_v4 = vadd.f32 %v5533_v21, %v5532_v34  ;;  %v5535_v47 = vpop.f32.mrb[142].mxu0 }
 0x225   : > { %v5536_v31 = vpop.f32.mrb[143].mxu0 }
 0x226   : > { %v2330_v58 = vadd.f32 %v2329_v50, %v2299_v9  ;;  %v6364_v59 = vadd.f32 %v5534_v4, %v7867_v20  ;;  %v5537_v18 = vadd.f32 %v5536_v31, %v5535_v47 }
 0x228   : > { %v8180_v40 = vadd.f32 %v6364_v59, %v8006_v62  ;;  %v6372_v5 = vadd.f32 %v5537_v18, %v7875_v7 }
 0x22a   : > { %v2261_v22 = vadd.f32 %v8180_v40, %v2260_v60  ;;  %v2300_v10 = vmul.f32 %v8180_v40, %v8180_v40  ;;  %v8187_v14 = vadd.f32 %v6372_v5, %v8012_v16  ;;  %v5538_v57 = vpop.f32.mrb[144].mxu0 }
 0x22b   : > { %v5539_v26 = vpop.f32.mrb[145].mxu0 }
 0x22c   : > { %v2331_v51 = vadd.f32 %v2330_v58, %v2300_v10  ;;  %v2262_v43 = vadd.f32 %v8187_v14, %v2261_v22  ;;  %v2301_v20 = vmul.f32 %v8187_v14, %v8187_v14  ;;  %v5540_v62 = vadd.f32 %v5539_v26, %v5538_v57  ;;  %v5541_v12 = vpop.f32.mrb[146].mxu0 }
 0x22d   : > { %v5542_v42 = vpop.f32.mrb[147].mxu0 }
 0x22e   : > { %v2332_v7 = vadd.f32 %v2331_v51, %v2301_v20  ;;  %v6384_v38 = vadd.f32 %v5540_v62, %v7887_v27  ;;  %v5543_v25 = vadd.f32 %v5542_v42, %v5541_v12 }
 0x230   : > { %v8194_v17 = vadd.f32 %v6384_v38, %v8051_v45  ;;  %v6392_v16 = vadd.f32 %v5543_v25, %v7894_v39 }
 0x232   : > { %v2263_v34 = vadd.f32 %v8194_v17, %v2262_v43  ;;  %v2302_v21 = vmul.f32 %v8194_v17, %v8194_v17  ;;  %v8201_v50 = vadd.f32 %v6392_v16, %v8060_v32  ;;  %v5544_v60 = vpop.f32.mrb[148].mxu0 }
 0x233   : > { %v5545_v9 = vpop.f32.mrb[149].mxu0 }
 0x234   : > { %v2333_v4 = vadd.f32 %v2332_v7, %v2302_v21  ;;  %v2264_v47 = vadd.f32 %v8201_v50, %v2263_v34  ;;  %v2303_v27 = vmul.f32 %v8201_v50, %v8201_v50  ;;  %v5546_v45 = vadd.f32 %v5545_v9, %v5544_v60  ;;  %v5547_v31 = vpop.f32.mrb[150].mxu0 }
 0x235   : > { %v5548_v58 = vpop.f32.mrb[151].mxu0 }
 0x236   : > { %v2334_v39 = vadd.f32 %v2333_v4, %v2303_v27  ;;  %v6380_v59 = vadd.f32 %v5546_v45, %v7883_v0  ;;  %v5549_v18 = vadd.f32 %v5548_v58, %v5547_v31 }
 0x238   : > { %v8208_v5 = vadd.f32 %v6380_v59, %v8048_v3  ;;  %v6388_v32 = vadd.f32 %v5549_v18, %v7891_v61 }
 0x23a   : > { %v2265_v22 = vadd.f32 %v8208_v5, %v2264_v47  ;;  %v2304_v10 = vmul.f32 %v8208_v5, %v8208_v5  ;;  %v8215_v57 = vadd.f32 %v6388_v32, %v8053_v55  ;;  %v5550_v26 = vpop.f32.mrb[152].mxu0 }
 0x23b   : > { %v5551_v51 = vpop.f32.mrb[153].mxu0 }
 0x23c   : > { %v2335_v43 = vadd.f32 %v2334_v39, %v2304_v10  ;;  %v2266_v20 = vadd.f32 %v8215_v57, %v2265_v22  ;;  %v2305_v0 = vmul.f32 %v8215_v57, %v8215_v57  ;;  %v5552_v3 = vadd.f32 %v5551_v51, %v5550_v26  ;;  %v5553_v62 = vpop.f32.mrb[154].mxu0 }
 0x23d   : > { %v5554_v12 = vpop.f32.mrb[155].mxu0 }
 0x23e   : > { %v2336_v61 = vadd.f32 %v2335_v43, %v2305_v0  ;;  %v6400_v42 = vadd.f32 %v5552_v3, %v7909_v56  ;;  %v5555_v7 = vadd.f32 %v5554_v12, %v5553_v62 }
 0x240   : > { %v8222_v38 = vadd.f32 %v6400_v42, %v8092_v8  ;;  %v6408_v55 = vadd.f32 %v5555_v7, %v7919_v28  ;;  %v6747_v28 = vld [vmem:[%s9547_s2 + $0x40] sm:$0xff]  }
 0x241   : > { %5722 = vmatprep.subr.bf16.mxu0 %v6747_v28 }
 0x242   : > { %v2267_v25 = vadd.f32 %v8222_v38, %v2266_v20  ;;  %v2306_v16 = vmul.f32 %v8222_v38, %v8222_v38  ;;  %v8229_v34 = vadd.f32 %v6408_v55, %v8108_v2  ;;  %v5556_v21 = vpop.f32.mrb[156].mxu0 }
 0x243   : > { %v5557_v60 = vpop.f32.mrb[157].mxu0 }
 0x244   : > { %v2337_v9 = vadd.f32 %v2336_v61, %v2306_v16  ;;  %v2268_v4 = vadd.f32 %v8229_v34, %v2267_v25  ;;  %v2307_v56 = vmul.f32 %v8229_v34, %v8229_v34  ;;  %v5558_v8 = vadd.f32 %v5557_v60, %v5556_v21  ;;  %v5559_v47 = vpop.f32.mrb[158].mxu0 }
 0x245   : > { %v5560_v27 = vpop.f32.mrb[159].mxu0 }
 0x246   : > { %v2338_v45 = vadd.f32 %v2337_v9, %v2307_v56  ;;  %v6396_v31 = vadd.f32 %v5558_v8, %v7905_v29  ;;  %v5561_v2 = vadd.f32 %v5560_v27, %v5559_v47 }
 0x248   : > { %v6397_v58 = vadd.f32 %v6396_v31, %v8089_v6  ;;  %v6404_v39 = vadd.f32 %v5561_v2, %v7916_v53 }
 0x24a   : > { %v2269_v59 = vadd.f32 %v6397_v58, %v2268_v4  ;;  %v2308_v18 = vmul.f32 %v6397_v58, %v6397_v58  ;;  %v6405_v32 = vadd.f32 %v6404_v39, %v8100_v49 }
 0x24c   : > { %v2339_v22 = vadd.f32 %v2338_v45, %v2308_v18  ;;  %v2270_v10 = vadd.f32 %v6405_v32, %v2269_v59  ;;  %v2309_v26 = vmul.f32 %v6405_v32, %v6405_v32 }
 0x24e   : > { %v2271_v51 = vrot.slane %v2270_v10, 4  ;;  %v2340_v43 = vadd.f32 %v2339_v22, %v2309_v26 }
 0x250   : > { %v2272_v20 = vadd.f32 %v2271_v51, %v2270_v10  ;;  %v2341_v0 = vrot.slane %v2340_v43, 4 }
 0x252   : > { %v2273_v3 = vrot.slane %v2272_v20, 2  ;;  %v2342_v62 = vadd.f32 %v2341_v0, %v2340_v43 }
 0x254   : > { %v2274_v29 = vadd.f32 %v2273_v3, %v2272_v20  ;;  %v2343_v12 = vrot.slane %v2342_v62, 2 }
 0x256   : > { %v2275_v61 = vrot.slane %v2274_v29, 1  ;;  %v2344_v42 = vadd.f32 %v2343_v12, %v2342_v62 }
 0x258   : > { %v2276_v6 = vadd.f32 %v2275_v61, %v2274_v29  ;;  %v2345_v7 = vrot.slane %v2344_v42, 1 }
 0x25a   : > { %v8241_v53 = vmul.f32 0.00390625, %v2276_v6  ;;  %v2346_v55 = vadd.f32 %v2345_v7, %v2344_v42 }
 0x25c   : > { %v2347_v25 = vmul.f32 0.00390625, %v2346_v55  ;;  %v2348_v49 = vmul.f32 %v8241_v53, %v8241_v53  ;;  %v2381_v16 = vsub.f32 %v6397_v58, %v8241_v53  ;;  %v2382_v21 = vsub.f32 %v6405_v32, %v8241_v53 }
 0x25d   : > { %v2371_v56 = vsub.f32 %v8166_v44, %v8241_v53  ;;  %v2372_v8 = vsub.f32 %v8173_v46, %v8241_v53  ;;  %v2373_v47 = vsub.f32 %v8180_v40, %v8241_v53  ;;  %v2374_v27 = vsub.f32 %v8187_v14, %v8241_v53 }
 0x25e   : > { %v2349_v60 = vsub.f32 %v2347_v25, %v2348_v49  ;;  %v2375_v28 = vsub.f32 %v8194_v17, %v8241_v53  ;;  %v2376_v45 = vsub.f32 %v8201_v50, %v8241_v53  ;;  %v2377_v31 = vsub.f32 %v8208_v5, %v8241_v53 }
 0x25f   : > { %v2378_v44 = vsub.f32 %v8215_v57, %v8241_v53  ;;  %v2379_v46 = vsub.f32 %v8222_v38, %v8241_v53  ;;  %v2380_v40 = vsub.f32 %v8229_v34, %v8241_v53  ;;  %v2351_v14 = vsub.f32 %v7922_v54, %v8241_v53 }
 0x260   : > { %v2350_v9 = vmax.f32 %v2349_v60, 0.0  ;;  %v2352_v17 = vsub.f32 %v7925_v41, %v8241_v53  ;;  %v2353_v50 = vsub.f32 %v7928_v48, %v8241_v53  ;;  %v2354_v5 = vsub.f32 %v7931_v23, %v8241_v53  ;;  %v9606_v41 = vld [vmem:[#allocation7_spill] sm:$0xff]  ;;  %v9607_v48 = vld [vmem:[#allocation10_spill] sm:$0xff]  ;;  %v9608_v23 = vld [vmem:[#allocation9_spill] sm:$0xff] }
 0x261   : > { %v2355_v57 = vsub.f32 %v7938_v30, %v8241_v53  ;;  %v2356_v38 = vsub.f32 %v7941_v15, %v8241_v53  ;;  %v2357_v34 = vsub.f32 %v7954_v63, %v8241_v53  ;;  %v2358_v54 = vsub.f32 %v7966_v1, %v8241_v53  ;;  %v9609_v30 = vld [vmem:[#allocation15_spill] sm:$0xff] }
 0x262   : > { %v2383_v4 = vadd.f32 1e-05, %v2350_v9  ;;  %v2359_v2 = vsub.f32 %v9606_v41, %v8241_v53  ;;  %v2360_v58 = vsub.f32 %v9607_v48, %v8241_v53  ;;  %v2361_v39 = vsub.f32 %v9608_v23, %v8241_v53 }
 0x263   : > { %v2362_v59 = vsub.f32 %v9609_v30, %v8241_v53  ;;  %v2363_v15 = vsub.f32 %v8071_v19, %v8241_v53  ;;  %v2364_v63 = vsub.f32 %v8081_v52, %v8241_v53  ;;  %v2365_v1 = vsub.f32 %v8114_v37, %v8241_v53 }
 0x264   : > { %6787 = vrsqrt.f32 %v2383_v4  ;;  %v2366_v18 = vsub.f32 %v8119_v36, %v8241_v53  ;;  %v2367_v22 = vsub.f32 %v8135_v24, %v8241_v53  ;;  %v2368_v10 = vsub.f32 %v8141_v35, %v8241_v53 }
 0x265   : > { %v2369_v26 = vsub.f32 %v8151_v11, %v8241_v53  ;;  %v2370_v19 = vsub.f32 %v8158_v33, %v8241_v53 }
 0x26e   : > { %v6788_v32 = vpop.eup %6787 }
 0x26f   : > { %v2415_v52 = vmul.f32 %v6788_v32, %v2381_v16  ;;  %v2416_v51 = vmul.f32 %v6788_v32, %v2382_v21  ;;  %v8307_v43 = vmul.f32 %v6788_v32, %v2351_v14  ;;  %v8309_v37 = vmul.f32 %v6788_v32, %v2352_v17 }
 0x270   : > { %v2387_v36 = vmul.f32 %v6788_v32, %v2353_v50  ;;  %v2388_v20 = vmul.f32 %v6788_v32, %v2354_v5  ;;  %v2389_v0 = vmul.f32 %v6788_v32, %v2355_v57  ;;  %v2390_v3 = vmul.f32 %v6788_v32, %v2356_v38 }
 0x271   : > { %v2447_v24 = vmax.f32 %v2415_v52, 0.0  ;;  %v2448_v62 = vmax.f32 %v2416_v51, 0.0  ;;  %v2391_v29 = vmul.f32 %v6788_v32, %v2357_v34  ;;  %v2392_v35 = vmul.f32 %v6788_v32, %v2358_v54 }
 0x272   : > { %v2393_v12 = vmul.f32 %v6788_v32, %v2359_v2  ;;  %v2394_v61 = vmul.f32 %v6788_v32, %v2360_v58  ;;  %v2395_v11 = vmul.f32 %v6788_v32, %v2361_v39  ;;  %v2396_v42 = vmul.f32 %v6788_v32, %v2362_v59 }
 0x273   : > { %v8311_v6 = vpack.c.bf16 %v2448_v62, %v2447_v24  ;;  %v2397_v33 = vmul.f32 %v6788_v32, %v2363_v15  ;;  %v2398_v7 = vmul.f32 %v6788_v32, %v2364_v63  ;;  %v2399_v53 = vmul.f32 %v6788_v32, %v2365_v1 }
 0x274   : > { %v2400_v55 = vmul.f32 %v6788_v32, %v2366_v18  ;;  %v2401_v25 = vmul.f32 %v6788_v32, %v2367_v22  ;;  %v2402_v49 = vmul.f32 %v6788_v32, %v2368_v10  ;;  %v2403_v16 = vmul.f32 %v6788_v32, %v2369_v26 }
 0x275   : > { %v2404_v21 = vmul.f32 %v6788_v32, %v2370_v19  ;;  %v2405_v60 = vmul.f32 %v6788_v32, %v2371_v56  ;;  %v2406_v9 = vmul.f32 %v6788_v32, %v2372_v8  ;;  %v2407_v4 = vmul.f32 %v6788_v32, %v2373_v47 }
 0x276   : > { %v2408_v14 = vmul.f32 %v6788_v32, %v2374_v27  ;;  %v2409_v17 = vmul.f32 %v6788_v32, %v2375_v28  ;;  %v2410_v50 = vmul.f32 %v6788_v32, %v2376_v45  ;;  %v2411_v5 = vmul.f32 %v6788_v32, %v2377_v31 }
 0x277   : > { %v2412_v57 = vmul.f32 %v6788_v32, %v2378_v44  ;;  %v2413_v38 = vmul.f32 %v6788_v32, %v2379_v46  ;;  %v2414_v34 = vmul.f32 %v6788_v32, %v2380_v40  ;;  %v2417_v54 = vmax.f32 %v8307_v43, 0.0 }
 0x278   : > { %v2418_v41 = vmax.f32 %v8309_v37, 0.0  ;;  %v2419_v2 = vmax.f32 %v2387_v36, 0.0  ;;  %v2420_v48 = vmax.f32 %v2388_v20, 0.0  ;;  %v2421_v58 = vmax.f32 %v2389_v0, 0.0 }
 0x279   : > { %v2422_v23 = vmax.f32 %v2390_v3, 0.0  ;;  %v2423_v39 = vmax.f32 %v2391_v29, 0.0  ;;  %v2424_v30 = vmax.f32 %v2392_v35, 0.0  ;;  %v2425_v56 = vmax.f32 %v2393_v12, 0.0 }
 0x27a   : > { %v2426_v8 = vmax.f32 %v2394_v61, 0.0  ;;  %v2427_v47 = vmax.f32 %v2395_v11, 0.0  ;;  %v2428_v27 = vmax.f32 %v2396_v42, 0.0  ;;  %v2429_v28 = vmax.f32 %v2397_v33, 0.0 }
 0x27b   : > { %v2430_v45 = vmax.f32 %v2398_v7, 0.0  ;;  %v2431_v31 = vmax.f32 %v2399_v53, 0.0  ;;  %v2432_v44 = vmax.f32 %v2400_v55, 0.0  ;;  %v2433_v46 = vmax.f32 %v2401_v25, 0.0 }
 0x27c   : > { %v2434_v40 = vmax.f32 %v2402_v49, 0.0  ;;  %v2435_v59 = vmax.f32 %v2403_v16, 0.0  ;;  %v2436_v15 = vmax.f32 %v2404_v21, 0.0  ;;  %v2437_v63 = vmax.f32 %v2405_v60, 0.0 }
 0x27d   : > { %v2438_v1 = vmax.f32 %v2406_v9, 0.0  ;;  %v2439_v18 = vmax.f32 %v2407_v4, 0.0  ;;  %v2440_v32 = vmax.f32 %v2408_v14, 0.0  ;;  %v2441_v22 = vmax.f32 %v2409_v17, 0.0 }
 0x27e   : > { %v2442_v10 = vmax.f32 %v2410_v50, 0.0  ;;  %v2443_v26 = vmax.f32 %v2411_v5, 0.0  ;;  %v2444_v19 = vmax.f32 %v2412_v57, 0.0  ;;  %v2445_v52 = vmax.f32 %v2413_v38, 0.0 }
 0x27f   : > { %v2446_v51 = vmax.f32 %v2414_v34, 0.0  ;;  %v8315_v43 = vpack.c.bf16 %v2420_v48, %v2419_v2  ;;  %v8317_v37 = vpack.c.bf16 %v2422_v23, %v2421_v58  ;;  %v8319_v36 = vpack.c.bf16 %v2424_v30, %v2423_v39  ;;  %v6740_v23 = vld [vmem:[%s9547_s2 + $0x88] sm:$0xff]   ;;  %v6748_v39 = vld [vmem:[%s9547_s2] sm:$0xff]  }
 0x280   : > { %v8321_v20 = vpack.c.bf16 %v2426_v8, %v2425_v56  ;;  %v8323_v0 = vpack.c.bf16 %v2428_v27, %v2427_v47  ;;  %v8325_v3 = vpack.c.bf16 %v2430_v45, %v2429_v28  ;;  %v8327_v24 = vpack.c.bf16 %v2432_v44, %v2431_v31  ;;  %v6753_v56 = vld [vmem:[%s9547_s2 + $0x48] sm:$0xff]   ;;  %v6741_v31 = vld [vmem:[%s9547_s2 + $0x90] sm:$0xff]  }
 0x281   : > { %v8329_v62 = vpack.c.bf16 %v2434_v40, %v2433_v46  ;;  %v8331_v29 = vpack.c.bf16 %v2436_v15, %v2435_v59  ;;  %v8333_v35 = vpack.c.bf16 %v2438_v1, %v2437_v63  ;;  %v8335_v12 = vpack.c.bf16 %v2440_v32, %v2439_v18  ;;  %v6754_v44 = vld [vmem:[%s9547_s2 + $0x8] sm:$0xff]   ;;  %v6759_v40 = vld [vmem:[%s9547_s2 + $0x50] sm:$0xff]   ;;  %v6742_v18 = vld [vmem:[%s9547_s2 + $0x98] sm:$0xff]  }
 0x282   : > { %9610 = vst [vmem:[#allocation11_spill] sm:$0xff] %v8323_v0  ;;  %9611 = vst [vmem:[#allocation16_spill] sm:$0xff] %v8325_v3  ;;  %v8337_v61 = vpack.c.bf16 %v2442_v10, %v2441_v22  ;;  %v8339_v11 = vpack.c.bf16 %v2444_v19, %v2443_v26  ;;  %v8341_v42 = vpack.c.bf16 %v2446_v51, %v2445_v52  ;;  %v2530_v7 = vshll.u32 %v8315_v43, 16  ;;  %v6760_v32 = vld [vmem:[%s9547_s2 + $0x10] sm:$0xff]   ;;  %v6765_v26 = vld [vmem:[%s9547_s2 + $0x58] sm:$0xff]  }
 0x283   : > { %v8343_v33 = vpack.c.bf16 %v2418_v41, %v2417_v54  ;;  %v8347_v53 = vshll.u32 %v8317_v37, 16  ;;  %v2466_v49 = vshrl.u32 %v8315_v43, 16  ;;  %v8355_v4 = vshrl.u32 %v8317_v37, 16  ;;  %v6780_v41 = vld [vmem:[%s9547_s2 + $0x208] sm:$0xff]  }
 0x284   : > { %v2625_v16 = vrot.slane %v2530_v7, 1  ;;  %v8358_v17 = vshll.u32 %v8319_v36, 16  ;;  %v8362_v38 = vshll.u32 %v8321_v20, 16  ;;  %v8399_v27 = vshrl.u32 %v8319_v36, 16 }
 0x285   : > { %3128 = vmatprep.mubr.bf16.mxu0 %v8343_v33  ;;  %v2469_v55 = vshrl.u32 %v8343_v33, 16  ;;  %v2534_v25 = vshll.u32 %v8343_v33, 16  ;;  %v2629_v21 = vrot.slane %v8347_v53, 1  ;;  %v2529_v58 = vrot.slane %v2466_v49, 7 }
 0x286   : > { %v2626_v14 = vor.u32 %v2625_v16, %v2466_v49  ;;  %v2631_v30 = vrot.slane %v8358_v17, 1  ;;  %v2633_v47 = vrot.slane %v8362_v38, 1  ;;  %v8402_v45 = vshrl.u32 %v8321_v20, 16 }
 0x287   : > { %v2533_v60 = vrot.slane %v2469_v55, 7  ;;  %v2627_v9 = vrot.slane %v2534_v25, 1  ;;  %v2630_v57 = vor.u32 %v2629_v21, %v8355_v4  ;;  %v2532_v28 = vor.u32 %v2530_v7, %v2529_v58 }
 0x288   : > { %v8366_v54 = vsel %vm7179_vm5, %v2626_v14, %v2530_v7  ;;  %v2632_v46 = vor.u32 %v2631_v30, %v8399_v27  ;;  %v2634_v59 = vor.u32 %v2633_v47, %v8402_v45  ;;  %v8419_v15 = vshll.u32 %v8325_v3, 16 }
 0x289   : > { %v2536_v50 = vor.u32 %v2534_v25, %v2533_v60  ;;  %v2628_v5 = vor.u32 %v2627_v9, %v2469_v55  ;;  %v8393_v8 = vsel %vm7179_vm5, %v2630_v57, %v8347_v53  ;;  %v8423_v63 = vsel %vm7048_vm2, %v2466_v49, %v2532_v28  ;;  %v6766_v49 = vld [vmem:[%s9547_s2 + $0x18] sm:$0xff]   ;;  %v6768_v57 = vld [vmem:[%s9547_s2 + $0x20] sm:$0xff]  }
 0x28a   : > { %v2537_v1 = vrot.slane %v8355_v4, 7  ;;  %v8436_v22 = vsel %vm7179_vm5, %v2632_v46, %v8358_v17  ;;  %v8447_v19 = vsel %vm7179_vm5, %v2634_v59, %v8362_v38  ;;  %v2637_v52 = vrot.slane %v8419_v15, 1  ;;  %v6745_v46 = vld [vmem:[%s9547_s2 + $0xb0] sm:$0xff]  }
 0x28b   : > { %v8370_v2 = vsel %vm7048_vm2, %v2469_v55, %v2536_v50  ;;  %v8374_v48 = vsel %vm7179_vm5, %v2628_v5, %v2534_v25  ;;  %v8452_v51 = vshrl.u32 %v8323_v0, 16  ;;  %v8456_v55 = vshrl.u32 %v8325_v3, 16  ;;  %v6743_v25 = vld [vmem:[%s9547_s2 + $0xa0] sm:$0xff]   ;;  %v6744_v5 = vld [vmem:[%s9547_s2 + $0xa8] sm:$0xff]  }
 0x28c   : > { %3129 = vmatmul.mubr.bf16.vlgmr.msra.gmra.mrb[160].mxu0 %v8370_v2  ;;  %6154 = vmatprep.mubr.bf16.mxu1 %v8374_v48  ;;  %v2540_v7 = vor.u32 %v8347_v53, %v2537_v1  ;;  %v8466_v21 = vshll.u32 %v8327_v24, 16  ;;  %v6767_v53 = vld [vmem:[%s9547_s2 + $0x60] sm:$0xff]   ;;  %v8473_v9 = vshll.u32 %v8329_v62, 16  ;;  %v2541_v50 = vrot.slane %v8399_v27, 7 }
 0x28d   : > { %3136 = vmatprep.mubr.bf16.mxu0 %v8315_v43  ;;  %6155 = vmatmul.mubr.bf16.vlgmr.msra.gmra.mrb[96].mxu1 %v8366_v54  ;;  %v2638_v60 = vor.u32 %v2637_v52, %v8456_v55  ;;  %v8510_v47 = vshrl.u32 %v8327_v24, 16  ;;  %v8513_v28 = vshrl.u32 %v8311_v6, 16  ;;  %v8527_v1 = vshll.u32 %v8331_v29, 16 }
 0x28e   : > { %6158 = vmatprep.mubr.bf16.mxu1 %v8393_v8  ;;  %6187 = vmatpush3.bf16.msra.mxu1 %v8126_v13  ;;  %v8412_v13 = vshll.u32 %v8323_v0, 16  ;;  %v8478_v14 = vsel %vm7048_vm2, %v8355_v4, %v2540_v7  ;;  %v2639_v4 = vrot.slane %v8466_v21, 1  ;;  %v8541_v52 = vshll.u32 %v8311_v6, 16 }
 0x28f   : > { %6188 = vmatprep.subr.bf16.mxu1 %v6740_v23  ;;  %5723 = vmatpush3.bf16.msra.mxu0 %v6748_v39  ;;  %v6771_v39 = vld [vmem:[%s9547_s2 + $0x68] sm:$0xff]   ;;  %v8505_v30 = vsel %vm7179_vm5, %v2638_v60, %v8419_v15  ;;  %v6774_v60 = vld [vmem:[%s9547_s2 + $0x30] sm:$0xff]  }
 0x290   : > { %5724 = vmatprep.subr.bf16.mxu0 %v6753_v56  ;;  %v2635_v10 = vrot.slane %v8412_v13, 1  ;;  %v2641_v56 = vrot.slane %v8473_v9, 1  ;;  %v2640_v59 = vor.u32 %v2639_v4, %v8510_v47  ;;  %v6777_v4 = vld [vmem:[%s9547_s2 + $0x78] sm:$0xff]  }
 0x292   : > { %6189 = vmatpush3.bf16.msra.mxu1 %v6740_v23  ;;  %v2636_v16 = vor.u32 %v2635_v10, %v8452_v51  ;;  %v8495_v23 = vshrl.u32 %v8341_v42, 16 }
 0x293   : > { %6190 = vmatprep.subr.bf16.mxu1 %v6741_v31  ;;  %5725 = vmatpush3.bf16.msra.mxu0 %v6754_v44  ;;  %v8517_v44 = vshrl.u32 %v8329_v62, 16 }
 0x294   : > { %3137 = vmatmul.mubr.bf16.gmra.mrb[164].mxu0 %v8423_v63  ;;  %5726 = vmatprep.subr.bf16.mxu0 %v6759_v40  ;;  %v8491_v58 = vsel %vm7179_vm5, %v2636_v16, %v8412_v13  ;;  %v6772_v40 = vld [vmem:[%s9547_s2 + $0x28] sm:$0xff]   ;;  %v2545_v16 = vrot.slane %v8402_v45, 7 }
 0x295   : > { %3144 = vmatprep.mubr.bf16.mxu0 %v8317_v37  ;;  %6159 = vmatmul.mubr.bf16.gmra.mrb[100].mxu1 %v8436_v22  ;;  %v2642_v10 = vor.u32 %v2641_v56, %v8517_v44 }
 0x296   : > { %6162 = vmatprep.mubr.bf16.mxu1 %v8447_v19  ;;  %6191 = vmatpush3.bf16.msra.mxu1 %v6741_v31  ;;  %v2544_v31 = vor.u32 %v8358_v17, %v2541_v50  ;;  %v8530_v17 = vshll.u32 %v8341_v42, 16  ;;  %v8561_v50 = vsel %vm7179_vm5, %v2640_v59, %v8466_v21  ;;  %v2548_v59 = vor.u32 %v8362_v38, %v2545_v16 }
 0x297   : > { %6192 = vmatprep.subr.bf16.mxu1 %v6742_v18  ;;  %5727 = vmatpush3.bf16.msra.mxu0 %v6760_v32  ;;  %v6773_v32 = vld [vmem:[%s9547_s2 + $0x70] sm:$0xff]  }
 0x298   : > { %5728 = vmatprep.subr.bf16.mxu0 %v6765_v26  ;;  %v8538_v26 = vshll.u32 %v8333_v35, 16  ;;  %v8611_v16 = vsel %vm7048_vm2, %v8402_v45, %v2548_v59  ;;  %v8635_v59 = vshrl.u32 %v8337_v61, 16 }
 0x299   : > { %9614 = vst [vmem:[#allocation17_spill] sm:$0xff] %v8611_v16 }
 0x29a   : > { %6193 = vmatpush3.bf16.msra.mxu1 %v6742_v18  ;;  %v2585_v18 = vrot.slane %v8495_v23, 7  ;;  %v2645_v56 = vrot.slane %v8538_v26, 1 }
 0x29b   : > { %6194 = vmatprep.subr.bf16.mxu1 %v6743_v25  ;;  %5729 = vmatpush3.bf16.msra.mxu0 %v6766_v49  ;;  %v8548_v49 = vsel %vm7048_vm2, %v8399_v27, %v2544_v31  ;;  %v2643_v27 = vrot.slane %v8527_v1, 1  ;;  %v8583_v31 = vshrl.u32 %v8331_v29, 16 }
 0x29c   : > { %3145 = vmatmul.mubr.bf16.gmra.mrb[168].mxu0 %v8478_v14  ;;  %5730 = vmatprep.subr.bf16.mxu0 %v6767_v53  ;;  %v2588_v7 = vor.u32 %v8530_v17, %v2585_v18  ;;  %v6746_v53 = vld [vmem:[%s9547_s2 + $0xb8] sm:$0xff]   ;;  %v8592_v18 = vshrl.u32 %v8333_v35, 16 }
 0x29d   : > { %3152 = vmatprep.mubr.bf16.mxu0 %v8319_v36  ;;  %6163 = vmatmul.mubr.bf16.gmra.mrb[104].mxu1 %v8491_v58  ;;  %v2565_v34 = vrot.slane %v8583_v31, 7 }
 0x29e   : > { %6166 = vmatprep.mubr.bf16.mxu1 %v8505_v30  ;;  %6195 = vmatpush3.bf16.msra.mxu1 %v6743_v25  ;;  %v2589_v25 = vrot.slane %v8513_v28, 7  ;;  %v2646_v38 = vor.u32 %v2645_v56, %v8592_v18 }
 0x29f   : > { %6196 = vmatprep.subr.bf16.mxu1 %v6744_v5  ;;  %5731 = vmatpush3.bf16.msra.mxu0 %v6768_v57 }
 0x2a0   : > { %5732 = vmatprep.subr.bf16.mxu0 %v6771_v39  ;;  %v2592_v57 = vor.u32 %v8541_v52, %v2589_v25  ;;  %v8578_v39 = vsel %vm7179_vm5, %v2642_v10, %v8473_v9  ;;  %v2644_v10 = vor.u32 %v2643_v27, %v8583_v31  ;;  %v8606_v25 = vshll.u32 %v8337_v61, 16 }
 0x2a1   : > { %v8626_v45 = vsel %vm7179_vm5, %v2646_v38, %v8538_v26 }
 0x2a2   : > { %6197 = vmatpush3.bf16.msra.mxu1 %v6744_v5  ;;  %v8567_v5 = vsel %vm7048_vm2, %v8495_v23, %v2588_v7  ;;  %v8602_v7 = vshll.u32 %v8335_v12, 16  ;;  %v8618_v27 = vsel %vm7179_vm5, %v2644_v10, %v8527_v1 }
 0x2a3   : > { %6198 = vmatprep.subr.bf16.mxu1 %v6745_v46  ;;  %5733 = vmatpush3.bf16.msra.mxu0 %v6772_v40  ;;  %v8588_v40 = vsel %vm7048_vm2, %v8513_v28, %v2592_v57 }
 0x2a4   : > { %3153 = vmatmul.mubr.bf16.gmra.mrb[172].mxu0 %v8548_v49  ;;  %5734 = vmatprep.subr.bf16.mxu0 %v6773_v32  ;;  %v6749_v32 = vld [vmem:[%s9547_s2 + $0x1c0] sm:$0xff]   ;;  %v2647_v57 = vrot.slane %v8602_v7, 1 }
 0x2a5   : > { %3160 = vmatprep.mubr.bf16.mxu0 %v8321_v20  ;;  %6167 = vmatmul.mubr.bf16.gmra.mrb[108].mxu1 %v8561_v50 }
 0x2a6   : > { %6170 = vmatprep.mubr.bf16.mxu1 %v8578_v39  ;;  %6199 = vmatpush3.bf16.msra.mxu1 %v6745_v46  ;;  %v6778_v46 = vld [vmem:[%s9547_s2 + $0x38] sm:$0xff]  }
 0x2a7   : > { %6200 = vmatprep.subr.bf16.mxu1 %v6746_v53  ;;  %5735 = vmatpush3.bf16.msra.mxu0 %v6774_v60  ;;  %v2549_v60 = vrot.slane %v8452_v51, 7 }
 0x2a8   : > { %5736 = vmatprep.subr.bf16.mxu0 %v6777_v4  ;;  %v8631_v4 = vshrl.u32 %v8335_v12, 16 }
 0x2a9   : > { %v2552_v56 = vor.u32 %v8412_v13, %v2549_v60 }
 0x2aa   : > { %6201 = vmatpush3.bf16.msra.mxu1 %v6746_v53  ;;  %v2649_v53 = vrot.slane %v8606_v25, 1 }
 0x2ab   : > { %5858 = vmatprep.subr.bf16.mxu1 %v6749_v32  ;;  %5737 = vmatpush3.bf16.msra.mxu0 %v6778_v46  ;;  %v2648_v32 = vor.u32 %v2647_v57, %v8631_v4  ;;  %v8639_v46 = vshll.u32 %v8339_v11, 16  ;;  %v8645_v38 = vsel %vm7048_vm2, %v8452_v51, %v2552_v56  ;;  %v2653_v57 = vrot.slane %v8530_v17, 1 }
 0x2ac   : > { %3161 = vmatmul.mubr.bf16.gmra.mrb[176].mxu0 %v8611_v16  ;;  %v2650_v10 = vor.u32 %v2649_v53, %v8635_v59  ;;  %9615 = vst [vmem:[#allocation12_spill] sm:$0xff] %v8645_v38  ;;  %v8665_v53 = vshrl.u32 %v8339_v11, 16 }
 0x2ad   : > { %3168 = vmatprep.mubr.bf16.mxu0 %v8323_v0  ;;  %6171 = vmatmul.mubr.bf16.gmra.mrb[112].mxu1 %v8618_v27  ;;  %v2553_v0 = vrot.slane %v8456_v55, 7  ;;  %v8652_v13 = vsel %vm7179_vm5, %v2648_v32, %v8602_v7  ;;  %v2651_v60 = vrot.slane %v8639_v46, 1 }
 0x2ae   : > { %6174 = vmatprep.mubr.bf16.mxu1 %v8626_v45  ;;  %v8660_v51 = vsel %vm7179_vm5, %v2650_v10, %v8606_v25  ;;  %v2557_v10 = vrot.slane %v8510_v47, 7 }
 0x2af   : > { %v2556_v56 = vor.u32 %v8419_v15, %v2553_v0  ;;  %v2652_v32 = vor.u32 %v2651_v60, %v8665_v53  ;;  %v2655_v0 = vrot.slane %v8541_v52, 1 }
 0x2b1   : > { %v8680_v16 = vsel %vm7179_vm5, %v2652_v32, %v8639_v46  ;;  %v2569_v32 = vrot.slane %v8592_v18, 7 }
 0x2b4   : > { %3169 = vmatmul.mubr.bf16.gmra.mrb[180].mxu0 %v8645_v38  ;;  %v8673_v38 = vsel %vm7048_vm2, %v8456_v55, %v2556_v56  ;;  %v2560_v55 = vor.u32 %v8466_v21, %v2557_v10  ;;  %v6756_v56 = vld [vmem:[%s9547_s2 + $0x190] sm:$0xff]   ;;  %v2572_v10 = vor.u32 %v8538_v26, %v2569_v32  ;;  %v6763_v26 = vld [vmem:[%s9547_s2 + $0x1e8] sm:$0xff]   ;;  %v2581_v32 = vrot.slane %v8665_v53, 7 }
 0x2b5   : > { %3176 = vmatprep.mubr.bf16.mxu0 %v8325_v3  ;;  %6175 = vmatmul.mubr.bf16.gmra.mrb[116].mxu1 %v8652_v13  ;;  %v2654_v3 = vor.u32 %v2653_v57, %v8495_v23  ;;  %v2656_v23 = vor.u32 %v2655_v0, %v8513_v28  ;;  %v2561_v57 = vrot.slane %v8517_v44, 7  ;;  %v6761_v0 = vld [vmem:[%s9547_s2 + $0x1e0] sm:$0xff]  }
 0x2b6   : > { %6178 = vmatprep.mubr.bf16.mxu1 %v8660_v51  ;;  %v8696_v60 = vsel %vm7048_vm2, %v8510_v47, %v2560_v55  ;;  %v6750_v47 = vld [vmem:[%s9547_s2 + $0x180] sm:$0xff]  }
 0x2b7   : > { %v8688_v15 = vsel %vm7179_vm5, %v2654_v3, %v8530_v17  ;;  %v8703_v3 = vsel %vm7179_vm5, %v2656_v23, %v8541_v52  ;;  %v2564_v21 = vor.u32 %v8473_v9, %v2561_v57  ;;  %v6751_v17 = vld [vmem:[%s9547_s2 + $0x1c8] sm:$0xff]   ;;  %v6755_v52 = vld [vmem:[%s9547_s2 + $0x1d0] sm:$0xff]   ;;  %v6762_v55 = vld [vmem:[%s9547_s2 + $0x1a0] sm:$0xff]   ;;  %v8761_v23 = vsel %vm7048_vm2, %v8592_v18, %v2572_v10 }
 0x2b8   : > { %v6752_v9 = vld [vmem:[%s9547_s2 + $0x188] sm:$0xff]   ;;  %v2573_v57 = vrot.slane %v8631_v4, 7  ;;  %v9619_v10 = vld [vmem:[#allocation16_spill] sm:$0xff] }
 0x2b9   : > { %v8715_v28 = vsel %vm7048_vm2, %v8517_v44, %v2564_v21  ;;  %v2568_v44 = vor.u32 %v8527_v1, %v2565_v34  ;;  %v6757_v1 = vld [vmem:[%s9547_s2 + $0x1d8] sm:$0xff]   ;;  %v6764_v18 = vld [vmem:[%s9547_s2 + $0x1a8] sm:$0xff]   ;;  %v6770_v34 = vld [vmem:[%s9547_s2 + $0x1b0] sm:$0xff]  }
 0x2ba   : > { %v2576_v21 = vor.u32 %v8602_v7, %v2573_v57  ;;  %v6775_v7 = vld [vmem:[%s9547_s2 + $0x1f8] sm:$0xff]  }
 0x2bc   : > { %3177 = vmatmul.mubr.bf16.gmra.mrb[184].mxu0 %v8673_v38 }
 0x2bd   : > { %3184 = vmatprep.mubr.bf16.mxu0 %v8327_v24  ;;  %6179 = vmatmul.mubr.bf16.gmra.mrb[120].mxu1 %v8680_v16 }
 0x2be   : > { %6182 = vmatprep.mubr.bf16.mxu1 %v8688_v15 }
 0x2c4   : > { %3185 = vmatmul.mubr.bf16.gmra.mrb[188].mxu0 %v8696_v60 }
 0x2c5   : > { %3192 = vmatprep.mubr.bf16.mxu0 %v8329_v62  ;;  %6183 = vmatmul.mubr.bf16.gmra.mrb[124].mxu1 %v8703_v3 }
 0x2c6   : > { %6202 = vmatprep.mubr.bf16.mxu1 %v8366_v54 }
 0x2cc   : > { %3193 = vmatmul.mubr.bf16.gmra.mrb[192].mxu0 %v8715_v28 }
 0x2cd   : > { %3200 = vmatprep.mubr.bf16.mxu0 %v8331_v29  ;;  %6203 = vmatmul.mubr.bf16.vlgmr.msra.gmra.mrb[96].mxu1 %v8374_v48  ;;  %v8738_v48 = vsel %vm7048_vm2, %v8583_v31, %v2568_v44  ;;  %v6758_v31 = vld [vmem:[%s9547_s2 + $0x198] sm:$0xff]  }
 0x2ce   : > { %6206 = vmatprep.mubr.bf16.mxu1 %v8366_v54  ;;  %5859 = vmatpush3.bf16.msra.mxu1 %v6750_v47  ;;  %v6769_v47 = vld [vmem:[%s9547_s2 + $0x1f0] sm:$0xff]  }
 0x2cf   : > { %5860 = vmatprep.subr.bf16.mxu1 %v6751_v17  ;;  %v8784_v17 = vsel %vm7048_vm2, %v8631_v4, %v2576_v21  ;;  %v6776_v4 = vld [vmem:[%s9547_s2 + $0x1b8] sm:$0xff]  }
 0x2d2   : > { %5861 = vmatpush3.bf16.msra.mxu1 %v6752_v9  ;;  %v2577_v9 = vrot.slane %v8635_v59, 7 }
 0x2d3   : > { %5862 = vmatprep.subr.bf16.mxu1 %v6755_v52  ;;  %v6779_v52 = vld [vmem:[%s9547_s2 + $0x200] sm:$0xff]  }
 0x2d4   : > { %3201 = vmatmul.mubr.bf16.gmra.mrb[196].mxu0 %v8738_v48  ;;  %v2580_v44 = vor.u32 %v8606_v25, %v2577_v9  ;;  %v2584_v25 = vor.u32 %v8639_v46, %v2581_v32  ;;  %v6782_v46 = vld [vmem:[%s9547_s2 + $0x218] sm:$0xff]  }
 0x2d5   : > { %3208 = vmatprep.mubr.bf16.mxu0 %v8333_v35  ;;  %6207 = vmatmul.mubr.bf16.gmra.mrb[100].mxu1 %v8393_v8 }
 0x2d6   : > { %6210 = vmatprep.mubr.bf16.mxu1 %v8436_v22  ;;  %5863 = vmatpush3.bf16.msra.mxu1 %v6756_v56  ;;  %v8804_v56 = vsel %vm7048_vm2, %v8635_v59, %v2580_v44  ;;  %v6781_v59 = vld [vmem:[%s9547_s2 + $0x210] sm:$0xff]  }
 0x2d7   : > { %5864 = vmatprep.subr.bf16.mxu1 %v6757_v1  ;;  %v8815_v1 = vsel %vm7048_vm2, %v8665_v53, %v2584_v25  ;;  %v6784_v53 = vld [vmem:[%s9547_s2 + $0x228] sm:$0xff]  }
 0x2da   : > { %5865 = vmatpush3.bf16.msra.mxu1 %v6758_v31  ;;  %v9618_v31 = vld [vmem:[#allocation12_spill] sm:$0xff] }
 0x2db   : > { %5866 = vmatprep.subr.bf16.mxu1 %v6761_v0 }
 0x2dc   : > { %3209 = vmatmul.mubr.bf16.gmra.mrb[200].mxu0 %v8761_v23 }
 0x2dd   : > { %3216 = vmatprep.mubr.bf16.mxu0 %v8335_v12  ;;  %6211 = vmatmul.mubr.bf16.gmra.mrb[104].mxu1 %v8447_v19 }
 0x2de   : > { %6214 = vmatprep.mubr.bf16.mxu1 %v8491_v58  ;;  %5867 = vmatpush3.bf16.msra.mxu1 %v6762_v55 }
 0x2df   : > { %5868 = vmatprep.subr.bf16.mxu1 %v6763_v26 }
 0x2e2   : > { %5869 = vmatpush3.bf16.msra.mxu1 %v6764_v18 }
 0x2e3   : > { %5870 = vmatprep.subr.bf16.mxu1 %v6769_v47 }
 0x2e4   : > { %3217 = vmatmul.mubr.bf16.gmra.mrb[204].mxu0 %v8784_v17 }
 0x2e5   : > { %3224 = vmatprep.mubr.bf16.mxu0 %v8337_v61  ;;  %6215 = vmatmul.mubr.bf16.gmra.mrb[108].mxu1 %v8505_v30 }
 0x2e6   : > { %6218 = vmatprep.mubr.bf16.mxu1 %v8561_v50  ;;  %5871 = vmatpush3.bf16.msra.mxu1 %v6770_v34 }
 0x2e7   : > { %5872 = vmatprep.subr.bf16.mxu1 %v6775_v7 }
 0x2ea   : > { %5873 = vmatpush3.bf16.msra.mxu1 %v6776_v4 }
 0x2eb   : > { %6234 = vmatprep.subr.bf16.mxu1 %v6779_v52 }
 0x2ec   : > { %3225 = vmatmul.mubr.bf16.gmra.mrb[208].mxu0 %v8804_v56 }
 0x2ed   : > { %3232 = vmatprep.mubr.bf16.mxu0 %v8339_v11  ;;  %6219 = vmatmul.mubr.bf16.gmra.mrb[112].mxu1 %v8578_v39 }
 0x2ee   : > { %6222 = vmatprep.mubr.bf16.mxu1 %v8618_v27 }
 0x2f4   : > { %3233 = vmatmul.mubr.bf16.gmra.mrb[212].mxu0 %v8815_v1 }
 0x2f5   : > { %3240 = vmatprep.mubr.bf16.mxu0 %v8341_v42  ;;  %6223 = vmatmul.mubr.bf16.gmra.mrb[116].mxu1 %v8626_v45 }
 0x2f6   : > { %6226 = vmatprep.mubr.bf16.mxu1 %v8652_v13 }
 0x2fc   : > { %3241 = vmatmul.mubr.bf16.gmra.mrb[216].mxu0 %v8567_v5 }
 0x2fd   : > { %3248 = vmatprep.mubr.bf16.mxu0 %v8311_v6  ;;  %6227 = vmatmul.mubr.bf16.gmra.mrb[120].mxu1 %v8660_v51 }
 0x2fe   : > { %6230 = vmatprep.mubr.bf16.mxu1 %v8680_v16 }
 0x304   : > { %3249 = vmatmul.mubr.bf16.gmra.mrb[220].mxu0 %v8588_v40 }
 0x305   : > { %3594 = vmatprep.mubr.bf16.mxu0 %v8315_v43  ;;  %6231 = vmatmul.mubr.bf16.gmra.mrb[124].mxu1 %v8688_v15 }
 0x306   : > { %4157 = vmatprep.mubr.bf16.mxu1 %v8315_v43 }
 0x30c   : > { %3595 = vmatmul.mubr.bf16.vlgmr.msra.gmra.mrb[224].mxu0 %v8423_v63 }
 0x30d   : > { %3602 = vmatprep.mubr.bf16.mxu0 %v8343_v33  ;;  %4158 = vmatmul.mubr.bf16.vlgmr.msra.gmra.mrb[128].mxu1 %v8423_v63  ;;  %v6783_v33 = vld [vmem:[%s9547_s2 + $0x220] sm:$0xff]  }
 0x30e   : > { %4165 = vmatprep.mubr.bf16.mxu1 %v8317_v37  ;;  %6235 = vmatpush3.bf16.msra.mxu1 %v6779_v52 }
 0x30f   : > { %6236 = vmatprep.subr.bf16.mxu1 %v6780_v41 }
 0x312   : > { %6237 = vmatpush3.bf16.msra.mxu1 %v6780_v41 }
 0x313   : > { %6238 = vmatprep.subr.bf16.mxu1 %v6781_v59 }
 0x314   : > { %3603 = vmatmul.mubr.bf16.gmra.mrb[228].mxu0 %v8370_v2  ;;  %v6786_v2 = vld [vmem:[%s9547_s2 + $0x238] sm:$0xff]  }
 0x315   : > { %3610 = vmatprep.mubr.bf16.mxu0 %v8315_v43  ;;  %4166 = vmatmul.mubr.bf16.gmra.mrb[132].mxu1 %v8478_v14  ;;  %v6785_v43 = vld [vmem:[%s9547_s2 + $0x230] sm:$0xff]  }
 0x316   : > { %4173 = vmatprep.mubr.bf16.mxu1 %v8319_v36  ;;  %6239 = vmatpush3.bf16.msra.mxu1 %v6781_v59 }
 0x317   : > { %6240 = vmatprep.subr.bf16.mxu1 %v6782_v46 }
 0x31a   : > { %6241 = vmatpush3.bf16.msra.mxu1 %v6782_v46 }
 0x31b   : > { %6242 = vmatprep.subr.bf16.mxu1 %v6783_v33 }
 0x31c   : > { %3611 = vmatmul.mubr.bf16.gmra.mrb[232].mxu0 %v8423_v63  ;;  %v9617_v63 = vld [vmem:[#allocation11_spill] sm:$0xff] }
 0x31d   : > { %3618 = vmatprep.mubr.bf16.mxu0 %v8317_v37  ;;  %4174 = vmatmul.mubr.bf16.gmra.mrb[136].mxu1 %v8548_v49  ;;  %v9616_v37 = vld [vmem:[#allocation17_spill] sm:$0xff] }
 0x31e   : > { %4181 = vmatprep.mubr.bf16.mxu1 %v8321_v20  ;;  %6243 = vmatpush3.bf16.msra.mxu1 %v6783_v33 }
 0x31f   : > { %6244 = vmatprep.subr.bf16.mxu1 %v6784_v53 }
 0x322   : > { %6245 = vmatpush3.bf16.msra.mxu1 %v6784_v53 }
 0x323   : > { %6246 = vmatprep.subr.bf16.mxu1 %v6785_v43 }
 0x324   : > { %3619 = vmatmul.mubr.bf16.gmra.mrb[236].mxu0 %v8478_v14 }
 0x325   : > { %3626 = vmatprep.mubr.bf16.mxu0 %v8319_v36  ;;  %4182 = vmatmul.mubr.bf16.gmra.mrb[140].mxu1 %v9616_v37 }
 0x326   : > { %4189 = vmatprep.mubr.bf16.mxu1 %v9617_v63  ;;  %6247 = vmatpush3.bf16.msra.mxu1 %v6785_v43 }
 0x327   : > { %6248 = vmatprep.subr.bf16.mxu1 %v6786_v2 }
 0x32a   : > { %6249 = vmatpush3.bf16.msra.mxu1 %v6786_v2 }
 0x32c   : > { %3627 = vmatmul.mubr.bf16.gmra.mrb[240].mxu0 %v8548_v49 }
 0x32d   : > { %3634 = vmatprep.mubr.bf16.mxu0 %v8321_v20  ;;  %4190 = vmatmul.mubr.bf16.gmra.mrb[144].mxu1 %v9618_v31 }
 0x32e   : > { %4197 = vmatprep.mubr.bf16.mxu1 %v9619_v10 }
 0x334   : > { %3635 = vmatmul.mubr.bf16.gmra.mrb[244].mxu0 %v9616_v37 }
 0x335   : > { %3642 = vmatprep.mubr.bf16.mxu0 %v9617_v63  ;;  %4198 = vmatmul.mubr.bf16.gmra.mrb[148].mxu1 %v8673_v38 }
 0x336   : > { %4205 = vmatprep.mubr.bf16.mxu1 %v8327_v24 }
 0x33c   : > { %3643 = vmatmul.mubr.bf16.gmra.mrb[248].mxu0 %v9618_v31 }
 0x33d   : > { %3650 = vmatprep.mubr.bf16.mxu0 %v9619_v10  ;;  %4206 = vmatmul.mubr.bf16.gmra.mrb[152].mxu1 %v8696_v60 }
 0x33e   : > { %4213 = vmatprep.mubr.bf16.mxu1 %v8329_v62 }
 0x344   : > { %3651 = vmatmul.mubr.bf16.gmra.mrb[252].mxu0 %v8673_v38 }
 0x345   : > { %3658 = vmatprep.mubr.bf16.mxu0 %v8327_v24  ;;  %4214 = vmatmul.mubr.bf16.gmra.mrb[156].mxu1 %v8715_v28 }
 0x346   : > { %4221 = vmatprep.mubr.bf16.mxu1 %v8331_v29 }
 0x34c   : > { %3659 = vmatmul.mubr.bf16.gmra.mrb[0].mxu0 %v8696_v60 }
 0x34d   : > { %3666 = vmatprep.mubr.bf16.mxu0 %v8329_v62  ;;  %4222 = vmatmul.mubr.bf16.gmra.mrb[160].mxu1 %v8738_v48 }
 0x34e   : > { %4229 = vmatprep.mubr.bf16.mxu1 %v8333_v35 }
 0x354   : > { %3667 = vmatmul.mubr.bf16.gmra.mrb[4].mxu0 %v8715_v28 }
 0x355   : > { %3674 = vmatprep.mubr.bf16.mxu0 %v8331_v29  ;;  %4230 = vmatmul.mubr.bf16.gmra.mrb[164].mxu1 %v8761_v23 }
 0x356   : > { %4237 = vmatprep.mubr.bf16.mxu1 %v8335_v12 }
 0x35c   : > { %3675 = vmatmul.mubr.bf16.gmra.mrb[8].mxu0 %v8738_v48 }
 0x35d   : > { %3682 = vmatprep.mubr.bf16.mxu0 %v8333_v35  ;;  %4238 = vmatmul.mubr.bf16.gmra.mrb[168].mxu1 %v8784_v17 }
 0x35e   : > { %4245 = vmatprep.mubr.bf16.mxu1 %v8337_v61 }
 0x35f   : > { %v5602_v36 = vpop.f32.mrb[160].mxu0 }
 0x360   : > { %v5603_v20 = vpop.f32.mrb[161].mxu0 }
 0x361   : > { %v8894_v24 = vadd.f32 %v5603_v20, %v5602_v36  ;;  %v5605_v62 = vpop.f32.mrb[162].mxu0 }
 0x362   : > { %v5606_v14 = vpop.f32.mrb[163].mxu0 }
 0x363   : > { %v8896_v49 = vadd.f32 %v5606_v14, %v5605_v62 }
 0x364   : > { %3683 = vmatmul.mubr.bf16.gmra.mrb[12].mxu0 %v8761_v23 }
 0x365   : > { %3690 = vmatprep.mubr.bf16.mxu0 %v8335_v12  ;;  %4246 = vmatmul.mubr.bf16.gmra.mrb[172].mxu1 %v8804_v56 }
 0x366   : > { %4253 = vmatprep.mubr.bf16.mxu1 %v8339_v11 }
 0x367   : > { %v5608_v29 = vpop.f32.mrb[164].mxu0 }
 0x368   : > { %v5609_v35 = vpop.f32.mrb[165].mxu0 }
 0x369   : > { %v8902_v38 = vadd.f32 %v5609_v35, %v5608_v29  ;;  %v5611_v60 = vpop.f32.mrb[166].mxu0 }
 0x36a   : > { %v5612_v28 = vpop.f32.mrb[167].mxu0 }
 0x36b   : > { %v8904_v48 = vadd.f32 %v5612_v28, %v5611_v60 }
 0x36c   : > { %3691 = vmatmul.mubr.bf16.gmra.mrb[16].mxu0 %v8784_v17 }
 0x36d   : > { %3698 = vmatprep.mubr.bf16.mxu0 %v8337_v61  ;;  %4254 = vmatmul.mubr.bf16.gmra.mrb[176].mxu1 %v8815_v1 }
 0x36e   : > { %4261 = vmatprep.mubr.bf16.mxu1 %v8341_v42 }
 0x36f   : > { %v5614_v12 = vpop.f32.mrb[168].mxu0 }
 0x370   : > { %v5615_v0 = vpop.f32.mrb[169].mxu0 }
 0x371   : > { %v8910_v55 = vadd.f32 %v5615_v0, %v5614_v12  ;;  %v5617_v23 = vpop.f32.mrb[170].mxu0 }
 0x372   : > { %v5618_v57 = vpop.f32.mrb[171].mxu0 }
 0x373   : > { %v8912_v26 = vadd.f32 %v5618_v57, %v5617_v23 }
 0x374   : > { %3699 = vmatmul.mubr.bf16.gmra.mrb[20].mxu0 %v8804_v56 }
 0x375   : > { %3706 = vmatprep.mubr.bf16.mxu0 %v8339_v11  ;;  %4262 = vmatmul.mubr.bf16.gmra.mrb[180].mxu1 %v8567_v5 }
 0x376   : > { %4269 = vmatprep.mubr.bf16.mxu1 %v8311_v6 }
 0x377   : > { %v5620_v61 = vpop.f32.mrb[172].mxu0 }
 0x378   : > { %v5621_v18 = vpop.f32.mrb[173].mxu0 }
 0x379   : > { %v8918_v21 = vadd.f32 %v5621_v18, %v5620_v61  ;;  %v5623_v47 = vpop.f32.mrb[174].mxu0 }
 0x37a   : > { %v5624_v34 = vpop.f32.mrb[175].mxu0 }
 0x37b   : > { %v8920_v17 = vadd.f32 %v5624_v34, %v5623_v47 }
 0x37c   : > { %3707 = vmatmul.mubr.bf16.gmra.mrb[24].mxu0 %v8815_v1 }
 0x37d   : > { %3714 = vmatprep.mubr.bf16.mxu0 %v8341_v42  ;;  %4270 = vmatmul.mubr.bf16.gmra.mrb[184].mxu1 %v8588_v40 }
 0x37e   : > { %4277 = vmatprep.mubr.bf16.mxu1 %v8341_v42 }
 0x37f   : > { %v5626_v11 = vpop.f32.mrb[176].mxu0 }
 0x380   : > { %v5627_v9 = vpop.f32.mrb[177].mxu0 }
 0x381   : > { %v8926_v7 = vadd.f32 %v5627_v9, %v5626_v11  ;;  %v5629_v6 = vpop.f32.mrb[178].mxu0 }
 0x382   : > { %v5630_v4 = vpop.f32.mrb[179].mxu0 }
 0x383   : > { %v8928_v44 = vadd.f32 %v5630_v4, %v5629_v6 }
 0x384   : > { %3715 = vmatmul.mubr.bf16.gmra.mrb[28].mxu0 %v8567_v5 }
 0x385   : > { %4278 = vmatmul.mubr.bf16.gmra.mrb[188].mxu1 %v8567_v5 }
 0x386   : > { %6250 = vmatprep.mubr.bf16.mxu1 %v8366_v54 }
 0x387   : > { %v5632_v52 = vpop.f32.mrb[180].mxu0 }
 0x388   : > { %v5633_v56 = vpop.f32.mrb[181].mxu0 }
 0x389   : > { %v8933_v32 = vadd.f32 %v5633_v56, %v5632_v52  ;;  %v5635_v40 = vpop.f32.mrb[182].mxu0 }
 0x38a   : > { %v5636_v42 = vpop.f32.mrb[183].mxu0 }
 0x38b   : > { %v8935_v25 = vadd.f32 %v5636_v42, %v5635_v40 }
 0x38d   : > { %6251 = vmatmul.mubr.bf16.vlgmr.msra.gmra.mrb[96].mxu1 %v8393_v8 }
 0x38e   : > { %6254 = vmatprep.mubr.bf16.mxu1 %v8436_v22 }
 0x38f   : > { %v5638_v1 = vpop.f32.mrb[184].mxu0 }
 0x390   : > { %v5639_v41 = vpop.f32.mrb[185].mxu0 }
 0x391   : > { %v8939_v59 = vadd.f32 %v5639_v41, %v5638_v1  ;;  %v5641_v46 = vpop.f32.mrb[186].mxu0 }
 0x392   : > { %v5642_v5 = vpop.f32.mrb[187].mxu0 }
 0x393   : > { %v8941_v33 = vadd.f32 %v5642_v5, %v5641_v46 }
 0x395   : > { %6255 = vmatmul.mubr.bf16.gmra.mrb[100].mxu1 %v8447_v19 }
 0x396   : > { %6258 = vmatprep.mubr.bf16.mxu1 %v8491_v58 }
 0x397   : > { %v5644_v54 = vpop.f32.mrb[188].mxu0 }
 0x398   : > { %v5645_v53 = vpop.f32.mrb[189].mxu0 }
 0x399   : > { %v8945_v43 = vadd.f32 %v5645_v53, %v5644_v54  ;;  %v5647_v2 = vpop.f32.mrb[190].mxu0 }
 0x39a   : > { %v5648_v8 = vpop.f32.mrb[191].mxu0 }
 0x39b   : > { %v8947_v37 = vadd.f32 %v5648_v8, %v5647_v2 }
 0x39d   : > { %6259 = vmatmul.mubr.bf16.gmra.mrb[104].mxu1 %v8505_v30 }
 0x39e   : > { %6262 = vmatprep.mubr.bf16.mxu1 %v8561_v50 }
 0x39f   : > { %v5650_v22 = vpop.f32.mrb[192].mxu0 }
 0x3a0   : > { %v5651_v63 = vpop.f32.mrb[193].mxu0 }
 0x3a1   : > { %v8951_v31 = vadd.f32 %v5651_v63, %v5650_v22  ;;  %v5653_v10 = vpop.f32.mrb[194].mxu0 }
 0x3a2   : > { %v5654_v19 = vpop.f32.mrb[195].mxu0 }
 0x3a3   : > { %v8953_v36 = vadd.f32 %v5654_v19, %v5653_v10 }
 0x3a5   : > { %6263 = vmatmul.mubr.bf16.gmra.mrb[108].mxu1 %v8578_v39 }
 0x3a6   : > { %6266 = vmatprep.mubr.bf16.mxu1 %v8618_v27 }
 0x3a7   : > { %v5656_v58 = vpop.f32.mrb[196].mxu0 }
 0x3a8   : > { %v5657_v20 = vpop.f32.mrb[197].mxu0 }
 0x3a9   : > { %v8957_v62 = vadd.f32 %v5657_v20, %v5656_v58  ;;  %v5659_v14 = vpop.f32.mrb[198].mxu0 }
 0x3aa   : > { %v5660_v30 = vpop.f32.mrb[199].mxu0 }
 0x3ab   : > { %v8959_v29 = vadd.f32 %v5660_v30, %v5659_v14 }
 0x3ad   : > { %6267 = vmatmul.mubr.bf16.gmra.mrb[112].mxu1 %v8626_v45 }
 0x3ae   : > { %6270 = vmatprep.mubr.bf16.mxu1 %v8652_v13 }
 0x3af   : > { %v5662_v50 = vpop.f32.mrb[200].mxu0 }
 0x3b0   : > { %v5663_v35 = vpop.f32.mrb[201].mxu0 }
 0x3b1   : > { %v8963_v60 = vadd.f32 %v5663_v35, %v5662_v50  ;;  %v5665_v28 = vpop.f32.mrb[202].mxu0 }
 0x3b2   : > { %v5666_v39 = vpop.f32.mrb[203].mxu0 }
 0x3b3   : > { %v8965_v12 = vadd.f32 %v5666_v39, %v5665_v28 }
 0x3b5   : > { %6271 = vmatmul.mubr.bf16.gmra.mrb[116].mxu1 %v8660_v51 }
 0x3b6   : > { %6274 = vmatprep.mubr.bf16.mxu1 %v8680_v16 }
 0x3b7   : > { %v5668_v27 = vpop.f32.mrb[204].mxu0 }
 0x3b8   : > { %v5669_v0 = vpop.f32.mrb[205].mxu0 }
 0x3b9   : > { %v8969_v23 = vadd.f32 %v5669_v0, %v5668_v27  ;;  %v5671_v57 = vpop.f32.mrb[206].mxu0 }
 0x3ba   : > { %v5672_v45 = vpop.f32.mrb[207].mxu0 }
 0x3bb   : > { %v8971_v61 = vadd.f32 %v5672_v45, %v5671_v57 }
 0x3bd   : > { %6275 = vmatmul.mubr.bf16.gmra.mrb[120].mxu1 %v8688_v15 }
 0x3be   : > { %6278 = vmatprep.mubr.bf16.mxu1 %v8703_v3 }
 0x3bf   : > { %v5674_v13 = vpop.f32.mrb[208].mxu0 }
 0x3c0   : > { %v5675_v18 = vpop.f32.mrb[209].mxu0 }
 0x3c1   : > { %v8975_v47 = vadd.f32 %v5675_v18, %v5674_v13  ;;  %v5677_v34 = vpop.f32.mrb[210].mxu0 }
 0x3c2   : > { %v5678_v51 = vpop.f32.mrb[211].mxu0 }
 0x3c3   : > { %v8977_v11 = vadd.f32 %v5678_v51, %v5677_v34 }
 0x3c5   : > { %6279 = vmatmul.mubr.bf16.gmra.mrb[124].mxu1 %v8688_v15 }
 0x3c7   : > { %v5680_v16 = vpop.f32.mrb[212].mxu0 }
 0x3c8   : > { %v5681_v9 = vpop.f32.mrb[213].mxu0 }
 0x3c9   : > { %v8980_v6 = vadd.f32 %v5681_v9, %v5680_v16  ;;  %v5683_v4 = vpop.f32.mrb[214].mxu0 }
 0x3ca   : > { %v5684_v52 = vpop.f32.mrb[215].mxu0 }
 0x3cb   : > { %v8982_v56 = vadd.f32 %v5684_v52, %v5683_v4 }
 0x3cf   : > { %v5686_v40 = vpop.f32.mrb[216].mxu0 }
 0x3d0   : > { %v5687_v3 = vpop.f32.mrb[217].mxu0 }
 0x3d1   : > { %v8984_v42 = vadd.f32 %v5687_v3, %v5686_v40  ;;  %v5689_v1 = vpop.f32.mrb[218].mxu0 }
 0x3d2   : > { %v5690_v41 = vpop.f32.mrb[219].mxu0 }
 0x3d3   : > { %v8986_v46 = vadd.f32 %v5690_v41, %v5689_v1 }
 0x3d7   : > { %v5692_v5 = vpop.f32.mrb[220].mxu0 }
 0x3d8   : > { %v5693_v54 = vpop.f32.mrb[221].mxu0 }
 0x3d9   : > { %v8988_v53 = vadd.f32 %v5693_v54, %v5692_v5  ;;  %v5695_v15 = vpop.f32.mrb[222].mxu0 }
 0x3da   : > { %v5696_v2 = vpop.f32.mrb[223].mxu0 }
 0x3db   : > { %v8990_v8 = vadd.f32 %v5696_v2, %v5695_v15 }
 0x3df   : > { %v5738_v22 = vpop.f32.mrb[224].mxu0 }
 0x3e0   : > { %v5739_v63 = vpop.f32.mrb[225].mxu0  ;;  %v5874_v10 = vpop.f32.mrb[128].mxu1 }
 0x3e1   : > { %v5740_v19 = vadd.f32 %v5739_v63, %v5738_v22  ;;  %v5741_v58 = vpop.f32.mrb[226].mxu0  ;;  %v5875_v20 = vpop.f32.mrb[129].mxu1 }
 0x3e2   : > { %v5876_v14 = vadd.f32 %v5875_v20, %v5874_v10  ;;  %v5742_v30 = vpop.f32.mrb[227].mxu0  ;;  %v5877_v50 = vpop.f32.mrb[130].mxu1 }
 0x3e3   : > { %v6413_v35 = vadd.f32 %v5740_v19, %v8894_v24  ;;  %v5743_v28 = vadd.f32 %v5742_v30, %v5741_v58  ;;  %v5878_v39 = vpop.f32.mrb[131].mxu1 }
 0x3e4   : > { %v5879_v27 = vadd.f32 %v5878_v39, %v5877_v50 }
 0x3e5   : > { %v6419_v0 = vadd.f32 %v5743_v28, %v8896_v49  ;;  %v8994_v57 = vadd.f32 %v6413_v35, %v5876_v14 }
 0x3e7   : > { %v5744_v45 = vpop.f32.mrb[228].mxu0  ;;  %v8996_v13 = vadd.f32 %v6419_v0, %v5879_v27 }
 0x3e8   : > { %v5745_v18 = vpop.f32.mrb[229].mxu0  ;;  %v5880_v34 = vpop.f32.mrb[132].mxu1 }
 0x3e9   : > { %v5746_v51 = vadd.f32 %v5745_v18, %v5744_v45  ;;  %v5747_v16 = vpop.f32.mrb[230].mxu0  ;;  %v5881_v9 = vpop.f32.mrb[133].mxu1 }
 0x3ea   : > { %v5882_v4 = vadd.f32 %v5881_v9, %v5880_v34  ;;  %v5748_v52 = vpop.f32.mrb[231].mxu0  ;;  %v5883_v40 = vpop.f32.mrb[134].mxu1 }
 0x3eb   : > { %v6410_v24 = vadd.f32 %v5746_v51, %v8902_v38  ;;  %v5749_v3 = vadd.f32 %v5748_v52, %v5747_v16  ;;  %v5884_v1 = vpop.f32.mrb[135].mxu1 }
 0x3ec   : > { %v5885_v41 = vadd.f32 %v5884_v1, %v5883_v40 }
 0x3ed   : > { %v6416_v49 = vadd.f32 %v5749_v3, %v8904_v48  ;;  %v9000_v5 = vadd.f32 %v6410_v24, %v5882_v4 }
 0x3ef   : > { %v5750_v54 = vpop.f32.mrb[232].mxu0  ;;  %v9002_v15 = vadd.f32 %v6416_v49, %v5885_v41 }
 0x3f0   : > { %v5751_v2 = vpop.f32.mrb[233].mxu0  ;;  %v5886_v22 = vpop.f32.mrb[136].mxu1 }
 0x3f1   : > { %v5752_v63 = vadd.f32 %v5751_v2, %v5750_v54  ;;  %v5753_v10 = vpop.f32.mrb[234].mxu0  ;;  %v5887_v19 = vpop.f32.mrb[137].mxu1 }
 0x3f2   : > { %v5888_v58 = vadd.f32 %v5887_v19, %v5886_v22  ;;  %v5754_v20 = vpop.f32.mrb[235].mxu0  ;;  %v5889_v14 = vpop.f32.mrb[138].mxu1 }
 0x3f3   : > { %v6425_v38 = vadd.f32 %v5752_v63, %v8910_v55  ;;  %v5755_v30 = vadd.f32 %v5754_v20, %v5753_v10  ;;  %v5890_v50 = vpop.f32.mrb[139].mxu1 }
 0x3f4   : > { %v5891_v35 = vadd.f32 %v5890_v50, %v5889_v14 }
 0x3f5   : > { %v6431_v48 = vadd.f32 %v5755_v30, %v8912_v26  ;;  %v9006_v28 = vadd.f32 %v6425_v38, %v5888_v58 }
 0x3f7   : > { %v5756_v39 = vpop.f32.mrb[236].mxu0  ;;  %v9008_v27 = vadd.f32 %v6431_v48, %v5891_v35 }
 0x3f8   : > { %v5757_v0 = vpop.f32.mrb[237].mxu0  ;;  %v5892_v45 = vpop.f32.mrb[140].mxu1 }
 0x3f9   : > { %v5758_v18 = vadd.f32 %v5757_v0, %v5756_v39  ;;  %v5759_v34 = vpop.f32.mrb[238].mxu0  ;;  %v5893_v51 = vpop.f32.mrb[141].mxu1 }
 0x3fa   : > { %v5894_v16 = vadd.f32 %v5893_v51, %v5892_v45  ;;  %v5760_v9 = vpop.f32.mrb[239].mxu0  ;;  %v5895_v4 = vpop.f32.mrb[142].mxu1 }
 0x3fb   : > { %v6422_v55 = vadd.f32 %v5758_v18, %v8918_v21  ;;  %v5761_v52 = vadd.f32 %v5760_v9, %v5759_v34  ;;  %v5896_v40 = vpop.f32.mrb[143].mxu1 }
 0x3fc   : > { %v5897_v24 = vadd.f32 %v5896_v40, %v5895_v4 }
 0x3fd   : > { %v6428_v26 = vadd.f32 %v5761_v52, %v8920_v17  ;;  %v9012_v3 = vadd.f32 %v6422_v55, %v5894_v16 }
 0x3ff   : > { %v5762_v1 = vpop.f32.mrb[240].mxu0  ;;  %v9014_v41 = vadd.f32 %v6428_v26, %v5897_v24 }
 0x400   : > { %v5763_v49 = vpop.f32.mrb[241].mxu0  ;;  %v5898_v54 = vpop.f32.mrb[144].mxu1 }
 0x401   : > { %v5764_v2 = vadd.f32 %v5763_v49, %v5762_v1  ;;  %v5765_v22 = vpop.f32.mrb[242].mxu0  ;;  %v5899_v63 = vpop.f32.mrb[145].mxu1 }
 0x402   : > { %v5900_v10 = vadd.f32 %v5899_v63, %v5898_v54  ;;  %v5766_v19 = vpop.f32.mrb[243].mxu0  ;;  %v5901_v58 = vpop.f32.mrb[146].mxu1 }
 0x403   : > { %v6437_v21 = vadd.f32 %v5764_v2, %v8926_v7  ;;  %v5767_v20 = vadd.f32 %v5766_v19, %v5765_v22  ;;  %v5902_v14 = vpop.f32.mrb[147].mxu1 }
 0x404   : > { %v5903_v38 = vadd.f32 %v5902_v14, %v5901_v58 }
 0x405   : > { %v6443_v17 = vadd.f32 %v5767_v20, %v8928_v44  ;;  %v9018_v30 = vadd.f32 %v6437_v21, %v5900_v10 }
 0x407   : > { %v5768_v50 = vpop.f32.mrb[244].mxu0  ;;  %v9020_v35 = vadd.f32 %v6443_v17, %v5903_v38 }
 0x408   : > { %v5769_v48 = vpop.f32.mrb[245].mxu0  ;;  %v5904_v39 = vpop.f32.mrb[148].mxu1 }
 0x409   : > { %v5770_v0 = vadd.f32 %v5769_v48, %v5768_v50  ;;  %v5771_v45 = vpop.f32.mrb[246].mxu0  ;;  %v5905_v18 = vpop.f32.mrb[149].mxu1 }
 0x40a   : > { %v5906_v34 = vadd.f32 %v5905_v18, %v5904_v39  ;;  %v5772_v51 = vpop.f32.mrb[247].mxu0  ;;  %v5907_v16 = vpop.f32.mrb[150].mxu1 }
 0x40b   : > { %v6434_v7 = vadd.f32 %v5770_v0, %v8933_v32  ;;  %v5773_v9 = vadd.f32 %v5772_v51, %v5771_v45  ;;  %v5908_v4 = vpop.f32.mrb[151].mxu1 }
 0x40c   : > { %v5909_v55 = vadd.f32 %v5908_v4, %v5907_v16 }
 0x40d   : > { %v6440_v44 = vadd.f32 %v5773_v9, %v8935_v25  ;;  %v9024_v52 = vadd.f32 %v6434_v7, %v5906_v34 }
 0x40f   : > { %v5774_v40 = vpop.f32.mrb[248].mxu0  ;;  %v9026_v24 = vadd.f32 %v6440_v44, %v5909_v55 }
 0x410   : > { %v5775_v26 = vpop.f32.mrb[249].mxu0  ;;  %v5910_v1 = vpop.f32.mrb[152].mxu1 }
 0x411   : > { %v5776_v49 = vadd.f32 %v5775_v26, %v5774_v40  ;;  %v5777_v54 = vpop.f32.mrb[250].mxu0  ;;  %v5911_v2 = vpop.f32.mrb[153].mxu1 }
 0x412   : > { %v5912_v22 = vadd.f32 %v5911_v2, %v5910_v1  ;;  %v5778_v63 = vpop.f32.mrb[251].mxu0  ;;  %v5913_v10 = vpop.f32.mrb[154].mxu1 }
 0x413   : > { %v6449_v32 = vadd.f32 %v5776_v49, %v8939_v59  ;;  %v5779_v19 = vadd.f32 %v5778_v63, %v5777_v54  ;;  %v5914_v58 = vpop.f32.mrb[155].mxu1 }
 0x414   : > { %v5915_v21 = vadd.f32 %v5914_v58, %v5913_v10 }
 0x415   : > { %v6455_v25 = vadd.f32 %v5779_v19, %v8941_v33  ;;  %v9030_v20 = vadd.f32 %v6449_v32, %v5912_v22 }
 0x417   : > { %v5780_v14 = vpop.f32.mrb[252].mxu0  ;;  %v9032_v38 = vadd.f32 %v6455_v25, %v5915_v21 }
 0x418   : > { %v5781_v17 = vpop.f32.mrb[253].mxu0  ;;  %v5916_v50 = vpop.f32.mrb[156].mxu1 }
 0x419   : > { %v5782_v48 = vadd.f32 %v5781_v17, %v5780_v14  ;;  %v5783_v39 = vpop.f32.mrb[254].mxu0  ;;  %v5917_v0 = vpop.f32.mrb[157].mxu1 }
 0x41a   : > { %v5918_v45 = vadd.f32 %v5917_v0, %v5916_v50  ;;  %v5784_v18 = vpop.f32.mrb[255].mxu0  ;;  %v5919_v34 = vpop.f32.mrb[158].mxu1 }
 0x41b   : > { %v6446_v59 = vadd.f32 %v5782_v48, %v8945_v43  ;;  %v5785_v51 = vadd.f32 %v5784_v18, %v5783_v39  ;;  %v5920_v16 = vpop.f32.mrb[159].mxu1 }
 0x41c   : > { %v5921_v7 = vadd.f32 %v5920_v16, %v5919_v34 }
 0x41d   : > { %v6452_v33 = vadd.f32 %v5785_v51, %v8947_v37  ;;  %v9036_v9 = vadd.f32 %v6446_v59, %v5918_v45 }
 0x41f   : > { %v5786_v4 = vpop.f32.mrb[0].mxu0  ;;  %v9038_v55 = vadd.f32 %v6452_v33, %v5921_v7 }
 0x420   : > { %v5787_v44 = vpop.f32.mrb[1].mxu0  ;;  %v5922_v40 = vpop.f32.mrb[160].mxu1 }
 0x421   : > { %v5788_v26 = vadd.f32 %v5787_v44, %v5786_v4  ;;  %v5789_v1 = vpop.f32.mrb[2].mxu0  ;;  %v5923_v49 = vpop.f32.mrb[161].mxu1 }
 0x422   : > { %v5924_v54 = vadd.f32 %v5923_v49, %v5922_v40  ;;  %v5790_v2 = vpop.f32.mrb[3].mxu0  ;;  %v5925_v22 = vpop.f32.mrb[162].mxu1 }
 0x423   : > { %v6461_v43 = vadd.f32 %v5788_v26, %v8951_v31  ;;  %v5791_v63 = vadd.f32 %v5790_v2, %v5789_v1  ;;  %v5926_v10 = vpop.f32.mrb[163].mxu1 }
 0x424   : > { %v5927_v32 = vadd.f32 %v5926_v10, %v5925_v22 }
 0x425   : > { %v6467_v37 = vadd.f32 %v5791_v63, %v8953_v36  ;;  %v9042_v19 = vadd.f32 %v6461_v43, %v5924_v54 }
 0x427   : > { %v5792_v58 = vpop.f32.mrb[4].mxu0  ;;  %v9044_v21 = vadd.f32 %v6467_v37, %v5927_v32 }
 0x428   : > { %v5793_v25 = vpop.f32.mrb[5].mxu0  ;;  %v5928_v14 = vpop.f32.mrb[164].mxu1 }
 0x429   : > { %v5794_v17 = vadd.f32 %v5793_v25, %v5792_v58  ;;  %v5795_v50 = vpop.f32.mrb[6].mxu0  ;;  %v5929_v48 = vpop.f32.mrb[165].mxu1 }
 0x42a   : > { %v5930_v39 = vadd.f32 %v5929_v48, %v5928_v14  ;;  %v5796_v0 = vpop.f32.mrb[7].mxu0  ;;  %v5931_v45 = vpop.f32.mrb[166].mxu1 }
 0x42b   : > { %v6458_v31 = vadd.f32 %v5794_v17, %v8957_v62  ;;  %v5797_v18 = vadd.f32 %v5796_v0, %v5795_v50  ;;  %v5932_v34 = vpop.f32.mrb[167].mxu1 }
 0x42c   : > { %v5933_v59 = vadd.f32 %v5932_v34, %v5931_v45 }
 0x42d   : > { %v6464_v36 = vadd.f32 %v5797_v18, %v8959_v29  ;;  %v9048_v51 = vadd.f32 %v6458_v31, %v5930_v39 }
 0x42f   : > { %v5798_v16 = vpop.f32.mrb[8].mxu0  ;;  %v9050_v7 = vadd.f32 %v6464_v36, %v5933_v59 }
 0x430   : > { %v5799_v33 = vpop.f32.mrb[9].mxu0  ;;  %v5934_v4 = vpop.f32.mrb[168].mxu1 }
 0x431   : > { %v5800_v44 = vadd.f32 %v5799_v33, %v5798_v16  ;;  %v5801_v40 = vpop.f32.mrb[10].mxu0  ;;  %v5935_v26 = vpop.f32.mrb[169].mxu1 }
 0x432   : > { %v5936_v1 = vadd.f32 %v5935_v26, %v5934_v4  ;;  %v5802_v49 = vpop.f32.mrb[11].mxu0  ;;  %v5937_v54 = vpop.f32.mrb[170].mxu1 }
 0x433   : > { %v6473_v62 = vadd.f32 %v5800_v44, %v8963_v60  ;;  %v5803_v2 = vadd.f32 %v5802_v49, %v5801_v40  ;;  %v5938_v22 = vpop.f32.mrb[171].mxu1 }
 0x434   : > { %v5939_v43 = vadd.f32 %v5938_v22, %v5937_v54 }
 0x435   : > { %v6479_v29 = vadd.f32 %v5803_v2, %v8965_v12  ;;  %v9054_v63 = vadd.f32 %v6473_v62, %v5936_v1 }
 0x437   : > { %v5804_v10 = vpop.f32.mrb[12].mxu0  ;;  %v9056_v32 = vadd.f32 %v6479_v29, %v5939_v43 }
 0x438   : > { %v5805_v37 = vpop.f32.mrb[13].mxu0  ;;  %v5940_v58 = vpop.f32.mrb[172].mxu1 }
 0x439   : > { %v5806_v25 = vadd.f32 %v5805_v37, %v5804_v10  ;;  %v5807_v14 = vpop.f32.mrb[14].mxu0  ;;  %v5941_v17 = vpop.f32.mrb[173].mxu1 }
 0x43a   : > { %v5942_v50 = vadd.f32 %v5941_v17, %v5940_v58  ;;  %v5808_v48 = vpop.f32.mrb[15].mxu0  ;;  %v5943_v39 = vpop.f32.mrb[174].mxu1 }
 0x43b   : > { %v6470_v60 = vadd.f32 %v5806_v25, %v8969_v23  ;;  %v5809_v0 = vadd.f32 %v5808_v48, %v5807_v14  ;;  %v5944_v45 = vpop.f32.mrb[175].mxu1 }
 0x43c   : > { %v5945_v31 = vadd.f32 %v5944_v45, %v5943_v39 }
 0x43d   : > { %v6476_v12 = vadd.f32 %v5809_v0, %v8971_v61  ;;  %v9060_v18 = vadd.f32 %v6470_v60, %v5942_v50 }
 0x43f   : > { %v5810_v34 = vpop.f32.mrb[16].mxu0  ;;  %v9062_v59 = vadd.f32 %v6476_v12, %v5945_v31 }
 0x440   : > { %v5811_v36 = vpop.f32.mrb[17].mxu0  ;;  %v5946_v16 = vpop.f32.mrb[176].mxu1 }
 0x441   : > { %v5812_v33 = vadd.f32 %v5811_v36, %v5810_v34  ;;  %v5813_v4 = vpop.f32.mrb[18].mxu0  ;;  %v5947_v44 = vpop.f32.mrb[177].mxu1 }
 0x442   : > { %v5948_v40 = vadd.f32 %v5947_v44, %v5946_v16  ;;  %v5814_v26 = vpop.f32.mrb[19].mxu0  ;;  %v5949_v1 = vpop.f32.mrb[178].mxu1 }
 0x443   : > { %v6485_v23 = vadd.f32 %v5812_v33, %v8975_v47  ;;  %v5815_v49 = vadd.f32 %v5814_v26, %v5813_v4  ;;  %v5950_v54 = vpop.f32.mrb[179].mxu1 }
 0x444   : > { %v5951_v62 = vadd.f32 %v5950_v54, %v5949_v1 }
 0x445   : > { %v6491_v61 = vadd.f32 %v5815_v49, %v8977_v11  ;;  %v9066_v2 = vadd.f32 %v6485_v23, %v5948_v40 }
 0x447   : > { %v5816_v22 = vpop.f32.mrb[20].mxu0  ;;  %v9068_v43 = vadd.f32 %v6491_v61, %v5951_v62 }
 0x448   : > { %v5817_v29 = vpop.f32.mrb[21].mxu0  ;;  %v5952_v10 = vpop.f32.mrb[180].mxu1 }
 0x449   : > { %v5818_v37 = vadd.f32 %v5817_v29, %v5816_v22  ;;  %v5819_v58 = vpop.f32.mrb[22].mxu0  ;;  %v5953_v25 = vpop.f32.mrb[181].mxu1 }
 0x44a   : > { %v5954_v14 = vadd.f32 %v5953_v25, %v5952_v10  ;;  %v5820_v17 = vpop.f32.mrb[23].mxu0  ;;  %v5955_v50 = vpop.f32.mrb[182].mxu1 }
 0x44b   : > { %v6482_v47 = vadd.f32 %v5818_v37, %v8980_v6  ;;  %v5821_v48 = vadd.f32 %v5820_v17, %v5819_v58  ;;  %v5956_v39 = vpop.f32.mrb[183].mxu1 }
 0x44c   : > { %v5957_v60 = vadd.f32 %v5956_v39, %v5955_v50 }
 0x44d   : > { %v6488_v11 = vadd.f32 %v5821_v48, %v8982_v56  ;;  %v9072_v0 = vadd.f32 %v6482_v47, %v5954_v14 }
 0x44f   : > { %v5822_v45 = vpop.f32.mrb[24].mxu0  ;;  %v9074_v31 = vadd.f32 %v6488_v11, %v5957_v60 }
 0x450   : > { %v5823_v12 = vpop.f32.mrb[25].mxu0  ;;  %v5958_v34 = vpop.f32.mrb[184].mxu1 }
 0x451   : > { %v5824_v36 = vadd.f32 %v5823_v12, %v5822_v45  ;;  %v5825_v16 = vpop.f32.mrb[26].mxu0  ;;  %v5959_v33 = vpop.f32.mrb[185].mxu1 }
 0x452   : > { %v5960_v4 = vadd.f32 %v5959_v33, %v5958_v34  ;;  %v5826_v44 = vpop.f32.mrb[27].mxu0  ;;  %v5961_v40 = vpop.f32.mrb[186].mxu1 }
 0x453   : > { %v6497_v6 = vadd.f32 %v5824_v36, %v8984_v42  ;;  %v5827_v26 = vadd.f32 %v5826_v44, %v5825_v16  ;;  %v5962_v1 = vpop.f32.mrb[187].mxu1 }
 0x454   : > { %v5963_v23 = vadd.f32 %v5962_v1, %v5961_v40 }
 0x455   : > { %v6503_v56 = vadd.f32 %v5827_v26, %v8986_v46  ;;  %v9078_v49 = vadd.f32 %v6497_v6, %v5960_v4 }
 0x457   : > { %v5828_v54 = vpop.f32.mrb[28].mxu0  ;;  %v9080_v62 = vadd.f32 %v6503_v56, %v5963_v23 }
 0x458   : > { %v5829_v61 = vpop.f32.mrb[29].mxu0  ;;  %v5964_v22 = vpop.f32.mrb[188].mxu1 }
 0x459   : > { %v5830_v29 = vadd.f32 %v5829_v61, %v5828_v54  ;;  %v5831_v10 = vpop.f32.mrb[30].mxu0  ;;  %v5965_v37 = vpop.f32.mrb[189].mxu1 }
 0x45a   : > { %v5966_v58 = vadd.f32 %v5965_v37, %v5964_v22  ;;  %v5832_v25 = vpop.f32.mrb[31].mxu0  ;;  %v5967_v14 = vpop.f32.mrb[190].mxu1 }
 0x45b   : > { %v6494_v42 = vadd.f32 %v5830_v29, %v8988_v53  ;;  %v5833_v17 = vadd.f32 %v5832_v25, %v5831_v10  ;;  %v5968_v50 = vpop.f32.mrb[191].mxu1 }
 0x45c   : > { %v5969_v47 = vadd.f32 %v5968_v50, %v5967_v14 }
 0x45d   : > { %v6500_v46 = vadd.f32 %v5833_v17, %v8990_v8  ;;  %v9084_v48 = vadd.f32 %v6494_v42, %v5966_v58 }
 0x45f   : > { %v9086_v39 = vadd.f32 %v6500_v46, %v5969_v47 }
 0x460   : > { %v6252_v60 = vpop.f32.mrb[96].mxu1 }
 0x461   : > { %v9089_v11 = vadd.f32 %v9000_v5, %v6252_v60  ;;  %v4320_v45 = vpop.f32.mrb[97].mxu1 }
 0x462   : > { %v9092_v12 = vadd.f32 %v8994_v57, %v4320_v45  ;;  %v6253_v34 = vpop.f32.mrb[98].mxu1 }
 0x463   : > { %v9095_v53 = vadd.f32 %v9002_v15, %v6253_v34  ;;  %v4323_v36 = vpop.f32.mrb[99].mxu1  ;;  %v4519_v57 = vmul.f32 %v9089_v11, %v9089_v11 }
 0x464   : > { %v9098_v16 = vadd.f32 %v8996_v13, %v4323_v36  ;;  %v4517_v8 = vmul.f32 %v9092_v12, %v9092_v12 }
 0x465   : > { %v4520_v6 = vmul.f32 %v9095_v53, %v9095_v53 }
 0x466   : > { %v4479_v33 = vadd.f32 %v9098_v16, %v9092_v12  ;;  %v4518_v5 = vmul.f32 %v9098_v16, %v9098_v16 }
 0x468   : > { %v4480_v4 = vadd.f32 %v9089_v11, %v4479_v33  ;;  %v4549_v15 = vadd.f32 %v4518_v5, %v4517_v8  ;;  %v6256_v44 = vpop.f32.mrb[100].mxu1 }
 0x469   : > { %v9110_v40 = vadd.f32 %v9012_v3, %v6256_v44  ;;  %v4336_v13 = vpop.f32.mrb[101].mxu1 }
 0x46a   : > { %v4550_v26 = vadd.f32 %v4549_v15, %v4519_v57  ;;  %v9115_v1 = vadd.f32 %v9006_v28, %v4336_v13  ;;  %v4481_v23 = vadd.f32 %v9095_v53, %v4480_v4  ;;  %v6257_v56 = vpop.f32.mrb[102].mxu1 }
 0x46b   : > { %v9119_v54 = vadd.f32 %v9014_v41, %v6257_v56  ;;  %v4339_v61 = vpop.f32.mrb[103].mxu1  ;;  %v4523_v41 = vmul.f32 %v9110_v40, %v9110_v40 }
 0x46c   : > { %v4482_v22 = vadd.f32 %v9115_v1, %v4481_v23  ;;  %v4521_v3 = vmul.f32 %v9115_v1, %v9115_v1  ;;  %v4551_v29 = vadd.f32 %v4550_v26, %v4520_v6  ;;  %v9125_v10 = vadd.f32 %v9008_v27, %v4339_v61 }
 0x46d   : > { %v4524_v27 = vmul.f32 %v9119_v54, %v9119_v54 }
 0x46e   : > { %v4552_v37 = vadd.f32 %v4551_v29, %v4521_v3  ;;  %v4483_v28 = vadd.f32 %v9125_v10, %v4482_v22  ;;  %v4522_v58 = vmul.f32 %v9125_v10, %v9125_v10 }
 0x470   : > { %v4484_v25 = vadd.f32 %v9110_v40, %v4483_v28  ;;  %v4553_v14 = vadd.f32 %v4552_v37, %v4522_v58  ;;  %v6260_v42 = vpop.f32.mrb[104].mxu1 }
 0x471   : > { %v9134_v17 = vadd.f32 %v9024_v52, %v6260_v42  ;;  %v4352_v50 = vpop.f32.mrb[105].mxu1 }
 0x472   : > { %v4554_v47 = vadd.f32 %v4553_v14, %v4523_v41  ;;  %v9139_v46 = vadd.f32 %v9018_v30, %v4352_v50  ;;  %v4485_v60 = vadd.f32 %v9119_v54, %v4484_v25  ;;  %v6261_v45 = vpop.f32.mrb[106].mxu1 }
 0x473   : > { %v9143_v34 = vadd.f32 %v9026_v24, %v6261_v45  ;;  %v4355_v36 = vpop.f32.mrb[107].mxu1  ;;  %v4527_v24 = vmul.f32 %v9134_v17, %v9134_v17 }
 0x474   : > { %v4486_v8 = vadd.f32 %v9139_v46, %v4485_v60  ;;  %v4525_v52 = vmul.f32 %v9139_v46, %v9139_v46  ;;  %v4555_v33 = vadd.f32 %v4554_v47, %v4524_v27  ;;  %v9149_v5 = vadd.f32 %v9020_v35, %v4355_v36 }
 0x475   : > { %v4528_v35 = vmul.f32 %v9143_v34, %v9143_v34 }
 0x476   : > { %v4556_v57 = vadd.f32 %v4555_v33, %v4525_v52  ;;  %v4487_v30 = vadd.f32 %v9149_v5, %v4486_v8  ;;  %v4526_v4 = vmul.f32 %v9149_v5, %v9149_v5 }
 0x478   : > { %v4488_v15 = vadd.f32 %v9134_v17, %v4487_v30  ;;  %v4557_v44 = vadd.f32 %v4556_v57, %v4526_v4  ;;  %v6264_v13 = vpop.f32.mrb[108].mxu1 }
 0x479   : > { %v9158_v6 = vadd.f32 %v9036_v9, %v6264_v13  ;;  %v4368_v26 = vpop.f32.mrb[109].mxu1 }
 0x47a   : > { %v4558_v23 = vadd.f32 %v4557_v44, %v4527_v24  ;;  %v9163_v56 = vadd.f32 %v9030_v20, %v4368_v26  ;;  %v4489_v61 = vadd.f32 %v9143_v34, %v4488_v15  ;;  %v6265_v22 = vpop.f32.mrb[110].mxu1 }
 0x47b   : > { %v9167_v3 = vadd.f32 %v9038_v55, %v6265_v22  ;;  %v4371_v29 = vpop.f32.mrb[111].mxu1  ;;  %v4531_v55 = vmul.f32 %v9158_v6, %v9158_v6 }
 0x47c   : > { %v4490_v37 = vadd.f32 %v9163_v56, %v4489_v61  ;;  %v4529_v9 = vmul.f32 %v9163_v56, %v9163_v56  ;;  %v4559_v28 = vadd.f32 %v4558_v23, %v4528_v35  ;;  %v9173_v58 = vadd.f32 %v9032_v38, %v4371_v29 }
 0x47d   : > { %v4532_v38 = vmul.f32 %v9167_v3, %v9167_v3 }
 0x47e   : > { %v4560_v41 = vadd.f32 %v4559_v28, %v4529_v9  ;;  %v4491_v20 = vadd.f32 %v9173_v58, %v4490_v37  ;;  %v4530_v25 = vmul.f32 %v9173_v58, %v9173_v58 }
 0x480   : > { %v4492_v14 = vadd.f32 %v9158_v6, %v4491_v20  ;;  %v4561_v42 = vadd.f32 %v4560_v41, %v4530_v25  ;;  %v6268_v50 = vpop.f32.mrb[112].mxu1 }
 0x481   : > { %v9182_v27 = vadd.f32 %v9048_v51, %v6268_v50  ;;  %v4384_v47 = vpop.f32.mrb[113].mxu1 }
 0x482   : > { %v4562_v60 = vadd.f32 %v4561_v42, %v4531_v55  ;;  %v9187_v45 = vadd.f32 %v9042_v19, %v4384_v47  ;;  %v4493_v36 = vadd.f32 %v9167_v3, %v4492_v14  ;;  %v6269_v8 = vpop.f32.mrb[114].mxu1 }
 0x483   : > { %v9191_v52 = vadd.f32 %v9050_v7, %v6269_v8  ;;  %v4387_v33 = vpop.f32.mrb[115].mxu1  ;;  %v4535_v7 = vmul.f32 %v9182_v27, %v9182_v27 }
 0x484   : > { %v4494_v57 = vadd.f32 %v9187_v45, %v4493_v36  ;;  %v4533_v51 = vmul.f32 %v9187_v45, %v9187_v45  ;;  %v4563_v30 = vadd.f32 %v4562_v60, %v4532_v38  ;;  %v9197_v4 = vadd.f32 %v9044_v21, %v4387_v33 }
 0x485   : > { %v4536_v21 = vmul.f32 %v9191_v52, %v9191_v52 }
 0x486   : > { %v4564_v24 = vadd.f32 %v4563_v30, %v4533_v51  ;;  %v4495_v19 = vadd.f32 %v9197_v4, %v4494_v57  ;;  %v4534_v15 = vmul.f32 %v9197_v4, %v9197_v4 }
 0x488   : > { %v4496_v44 = vadd.f32 %v9182_v27, %v4495_v19  ;;  %v4565_v13 = vadd.f32 %v4564_v24, %v4534_v15  ;;  %v6272_v26 = vpop.f32.mrb[116].mxu1 }
 0x489   : > { %v9206_v35 = vadd.f32 %v9060_v18, %v6272_v26  ;;  %v4400_v23 = vpop.f32.mrb[117].mxu1 }
 0x48a   : > { %v4566_v61 = vadd.f32 %v4565_v13, %v4535_v7  ;;  %v9211_v22 = vadd.f32 %v9054_v63, %v4400_v23  ;;  %v4497_v29 = vadd.f32 %v9191_v52, %v4496_v44  ;;  %v6273_v37 = vpop.f32.mrb[118].mxu1 }
 0x48b   : > { %v9215_v9 = vadd.f32 %v9062_v59, %v6273_v37  ;;  %v4403_v28 = vpop.f32.mrb[119].mxu1  ;;  %v4539_v59 = vmul.f32 %v9206_v35, %v9206_v35 }
 0x48c   : > { %v4498_v41 = vadd.f32 %v9211_v22, %v4497_v29  ;;  %v4537_v18 = vmul.f32 %v9211_v22, %v9211_v22  ;;  %v4567_v20 = vadd.f32 %v4566_v61, %v4536_v21  ;;  %v9221_v25 = vadd.f32 %v9056_v32, %v4403_v28 }
 0x48d   : > { %v4540_v32 = vmul.f32 %v9215_v9, %v9215_v9 }
 0x48e   : > { %v4568_v55 = vadd.f32 %v4567_v20, %v4537_v18  ;;  %v4499_v63 = vadd.f32 %v9221_v25, %v4498_v41  ;;  %v4538_v14 = vmul.f32 %v9221_v25, %v9221_v25 }
 0x490   : > { %v4500_v42 = vadd.f32 %v9206_v35, %v4499_v63  ;;  %v4569_v50 = vadd.f32 %v4568_v55, %v4538_v14  ;;  %v6276_v47 = vpop.f32.mrb[120].mxu1 }
 0x491   : > { %v9230_v38 = vadd.f32 %v9072_v0, %v6276_v47  ;;  %v4416_v60 = vpop.f32.mrb[121].mxu1 }
 0x492   : > { %v4570_v36 = vadd.f32 %v4569_v50, %v4539_v59  ;;  %v9235_v8 = vadd.f32 %v9066_v2, %v4416_v60  ;;  %v4501_v33 = vadd.f32 %v9215_v9, %v4500_v42  ;;  %v6277_v57 = vpop.f32.mrb[122].mxu1 }
 0x493   : > { %v9239_v51 = vadd.f32 %v9074_v31, %v6277_v57  ;;  %v4419_v30 = vpop.f32.mrb[123].mxu1  ;;  %v4543_v31 = vmul.f32 %v9230_v38, %v9230_v38 }
 0x494   : > { %v4502_v24 = vadd.f32 %v9235_v8, %v4501_v33  ;;  %v4541_v0 = vmul.f32 %v9235_v8, %v9235_v8  ;;  %v4571_v19 = vadd.f32 %v4570_v36, %v4540_v32  ;;  %v9245_v15 = vadd.f32 %v9068_v43, %v4419_v30 }
 0x495   : > { %v4544_v43 = vmul.f32 %v9239_v51, %v9239_v51 }
 0x496   : > { %v4572_v7 = vadd.f32 %v4571_v19, %v4541_v0  ;;  %v4503_v2 = vadd.f32 %v9245_v15, %v4502_v24  ;;  %v4542_v44 = vmul.f32 %v9245_v15, %v9245_v15 }
 0x498   : > { %v4504_v13 = vadd.f32 %v9230_v38, %v4503_v2  ;;  %v4573_v26 = vadd.f32 %v4572_v7, %v4542_v44  ;;  %v6280_v23 = vpop.f32.mrb[124].mxu1 }
 0x499   : > { %v9254_v21 = vadd.f32 %v9084_v48, %v6280_v23  ;;  %v4432_v61 = vpop.f32.mrb[125].mxu1 }
 0x49a   : > { %v4574_v29 = vadd.f32 %v4573_v26, %v4543_v31  ;;  %v9259_v37 = vadd.f32 %v9078_v49, %v4432_v61  ;;  %v4505_v28 = vadd.f32 %v9239_v51, %v4504_v13  ;;  %v6281_v41 = vpop.f32.mrb[126].mxu1 }
 0x49b   : > { %v9263_v18 = vadd.f32 %v9086_v39, %v6281_v41  ;;  %v4435_v20 = vpop.f32.mrb[127].mxu1  ;;  %v4547_v39 = vmul.f32 %v9254_v21, %v9254_v21 }
 0x49c   : > { %v4506_v55 = vadd.f32 %v9259_v37, %v4505_v28  ;;  %v4545_v48 = vmul.f32 %v9259_v37, %v9259_v37  ;;  %v4575_v63 = vadd.f32 %v4574_v29, %v4544_v43  ;;  %v9269_v14 = vadd.f32 %v9080_v62, %v4435_v20 }
 0x49d   : > { %v4548_v60 = vmul.f32 %v9263_v18, %v9263_v18 }
 0x49e   : > { %v4576_v59 = vadd.f32 %v4575_v63, %v4545_v48  ;;  %v4507_v49 = vadd.f32 %v9269_v14, %v4506_v55  ;;  %v4546_v42 = vmul.f32 %v9269_v14, %v9269_v14 }
 0x4a0   : > { %v4508_v50 = vadd.f32 %v9254_v21, %v4507_v49  ;;  %v4577_v47 = vadd.f32 %v4576_v59, %v4546_v42 }
 0x4a2   : > { %v4509_v32 = vadd.f32 %v9263_v18, %v4508_v50  ;;  %v4578_v36 = vadd.f32 %v4577_v47, %v4547_v39 }
 0x4a4   : > { %v4510_v62 = vrot.slane %v4509_v32, 4  ;;  %v4579_v33 = vadd.f32 %v4578_v36, %v4548_v60 }
 0x4a6   : > { %v4511_v57 = vadd.f32 %v4510_v62, %v4509_v32  ;;  %v4580_v30 = vrot.slane %v4579_v33, 4 }
 0x4a8   : > { %v4512_v24 = vrot.slane %v4511_v57, 2  ;;  %v4581_v0 = vadd.f32 %v4580_v30, %v4579_v33 }
 0x4aa   : > { %v4513_v19 = vadd.f32 %v4512_v24, %v4511_v57  ;;  %v4582_v7 = vrot.slane %v4581_v0, 2 }
 0x4ac   : > { %v4514_v2 = vrot.slane %v4513_v19, 1  ;;  %v4583_v44 = vadd.f32 %v4582_v7, %v4581_v0 }
 0x4ae   : > { %v4515_v31 = vadd.f32 %v4514_v2, %v4513_v19  ;;  %v4584_v13 = vrot.slane %v4583_v44, 1 }
 0x4b0   : > { %v9280_v26 = vmul.f32 0.00390625, %v4515_v31  ;;  %v4585_v23 = vadd.f32 %v4584_v13, %v4583_v44  ;;  %v4658_v13 = vld [vmem:[%s7021_s8 + $0x10] sm:$0xff] }
 0x4b2   : > { %v4586_v61 = vmul.f32 0.00390625, %v4585_v23  ;;  %v4587_v43 = vmul.f32 %v9280_v26, %v9280_v26  ;;  %v4619_v29 = vsub.f32 %v9269_v14, %v9280_v26  ;;  %v4599_v41 = vsub.f32 %v9149_v5, %v9280_v26 }
 0x4b3   : > { %v4601_v20 = vsub.f32 %v9143_v34, %v9280_v26  ;;  %v4602_v48 = vsub.f32 %v9163_v56, %v9280_v26  ;;  %v4603_v63 = vsub.f32 %v9173_v58, %v9280_v26  ;;  %v4604_v59 = vsub.f32 %v9158_v6, %v9280_v26 }
 0x4b4   : > { %v4588_v28 = vsub.f32 %v4586_v61, %v4587_v43  ;;  %v4605_v14 = vsub.f32 %v9167_v3, %v9280_v26  ;;  %v4606_v49 = vsub.f32 %v9187_v45, %v9280_v26  ;;  %v4607_v5 = vsub.f32 %v9197_v4, %v9280_v26 }
 0x4b5   : > { %v4608_v34 = vsub.f32 %v9182_v27, %v9280_v26  ;;  %v4609_v58 = vsub.f32 %v9191_v52, %v9280_v26  ;;  %v4610_v6 = vsub.f32 %v9211_v22, %v9280_v26  ;;  %v4611_v3 = vsub.f32 %v9221_v25, %v9280_v26 }
 0x4b6   : > { %v4589_v55 = vmax.f32 %v4588_v28, 0.0  ;;  %v4612_v45 = vsub.f32 %v9206_v35, %v9280_v26  ;;  %v4613_v4 = vsub.f32 %v9215_v9, %v9280_v26  ;;  %v4614_v27 = vsub.f32 %v9235_v8, %v9280_v26  ;;  %v4659_v28 = vld [vmem:[%s7021_s8 + $0x18] sm:$0xff] }
 0x4b7   : > { %v4615_v42 = vsub.f32 %v9245_v15, %v9280_v26  ;;  %v4616_v52 = vsub.f32 %v9230_v38, %v9280_v26  ;;  %v4617_v22 = vsub.f32 %v9239_v51, %v9280_v26  ;;  %v4618_v25 = vsub.f32 %v9259_v37, %v9280_v26  ;;  %v4671_v35 = vld [vmem:[%s7021_s8 + $0x78] sm:$0xff]  ;;  %v4674_v38 = vld [vmem:[%s7021_s8 + $0x90] sm:$0xff] }
 0x4b8   : > { %v4622_v56 = vadd.f32 1e-05, %v4589_v55  ;;  %v4620_v39 = vsub.f32 %v9254_v21, %v9280_v26  ;;  %v4621_v50 = vsub.f32 %v9263_v18, %v9280_v26  ;;  %v4590_v47 = vsub.f32 %v9092_v12, %v9280_v26  ;;  %v4685_v12 = vld [vmem:[%s7021_s8 + $0xe8] sm:$0xff]  ;;  %v4678_v21 = vld [vmem:[%s7021_s8 + $0xb0] sm:$0xff] }
 0x4b9   : > { %v4591_v60 = vsub.f32 %v9098_v16, %v9280_v26  ;;  %v4592_v32 = vsub.f32 %v9089_v11, %v9280_v26  ;;  %v4593_v36 = vsub.f32 %v9095_v53, %v9280_v26  ;;  %v4594_v62 = vsub.f32 %v9115_v1, %v9280_v26  ;;  %v4657_v55 = vld [vmem:[%s7021_s8 + $0x8] sm:$0xff] }
 0x4ba   : > { %6789 = vrsqrt.f32 %v4622_v56  ;;  %v4595_v33 = vsub.f32 %v9125_v10, %v9280_v26  ;;  %v4596_v16 = vsub.f32 %v9110_v40, %v9280_v26  ;;  %v4597_v30 = vsub.f32 %v9119_v54, %v9280_v26  ;;  %v4662_v56 = vld [vmem:[%s7021_s8 + $0x30] sm:$0xff]  ;;  %v4677_v18 = vld [vmem:[%s7021_s8 + $0xa8] sm:$0xff] }
 0x4bb   : > { %v4598_v11 = vsub.f32 %v9139_v46, %v9280_v26  ;;  %v4600_v53 = vsub.f32 %v9134_v17, %v9280_v26  ;;  %v4656_v17 = vld [vmem:[%s7021_s8] sm:$0xff]  ;;  %v4682_v26 = vld [vmem:[%s7021_s8 + $0xd0] sm:$0xff] }
 0x4c4   : > { %v6790_v57 = vpop.eup %6789 }
 0x4c5   : > { %v4653_v1 = vmul.f32 %v6790_v57, %v4619_v29  ;;  %v4624_v24 = vmul.f32 %v6790_v57, %v4590_v47  ;;  %v4625_v0 = vmul.f32 %v6790_v57, %v4591_v60  ;;  %v4626_v10 = vmul.f32 %v6790_v57, %v4592_v32  ;;  %v4660_v47 = vld [vmem:[%s7021_s8 + $0x20] sm:$0xff] }
 0x4c6   : > { %v4627_v19 = vmul.f32 %v6790_v57, %v4593_v36  ;;  %v4628_v40 = vmul.f32 %v6790_v57, %v4594_v62  ;;  %v4629_v7 = vmul.f32 %v6790_v57, %v4595_v33  ;;  %v4630_v54 = vmul.f32 %v6790_v57, %v4596_v16  ;;  %v4666_v36 = vld [vmem:[%s7021_s8 + $0x50] sm:$0xff]  ;;  %v4664_v62 = vld [vmem:[%s7021_s8 + $0x40] sm:$0xff] }
 0x4c7   : > { %v4717_v2 = vadd.f32 %v4685_v12, %v4653_v1  ;;  %v4631_v44 = vmul.f32 %v6790_v57, %v4597_v30  ;;  %v4632_v31 = vmul.f32 %v6790_v57, %v4598_v11  ;;  %v4633_v46 = vmul.f32 %v6790_v57, %v4599_v41 }
 0x4c8   : > { %v4634_v23 = vmul.f32 %v6790_v57, %v4600_v53  ;;  %v4635_v61 = vmul.f32 %v6790_v57, %v4601_v20  ;;  %v4636_v43 = vmul.f32 %v6790_v57, %v4602_v48  ;;  %v4637_v29 = vmul.f32 %v6790_v57, %v4603_v63  ;;  %v4663_v48 = vld [vmem:[%s7021_s8 + $0x38] sm:$0xff]  ;;  %v4661_v63 = vld [vmem:[%s7021_s8 + $0x28] sm:$0xff] }
 0x4c9   : > { %4749 = vst [vmem:[%s9361_s26 + $0xe8] sm:$0xff] %v4717_v2  ;;  %v4638_v41 = vmul.f32 %v6790_v57, %v4604_v59  ;;  %v9364_v60 = vmul.f32 %v6790_v57, %v4605_v14  ;;  %v9366_v32 = vmul.f32 %v6790_v57, %v4606_v49  ;;  %v9368_v20 = vmul.f32 %v6790_v57, %v4607_v5  ;;  %v4667_v14 = vld [vmem:[%s7021_s8 + $0x58] sm:$0xff]  ;;  %v4665_v49 = vld [vmem:[%s7021_s8 + $0x48] sm:$0xff]  ;;  %v4670_v5 = vld [vmem:[%s7021_s8 + $0x70] sm:$0xff] }
 0x4ca   : > { %v4642_v33 = vmul.f32 %v6790_v57, %v4608_v34  ;;  %v9374_v12 = vmul.f32 %v6790_v57, %v4609_v58  ;;  %v9376_v16 = vmul.f32 %v6790_v57, %v4610_v6  ;;  %v9378_v59 = vmul.f32 %v6790_v57, %v4611_v3  ;;  %v4668_v3 = vld [vmem:[%s7021_s8 + $0x60] sm:$0xff] }
 0x4cb   : > { %v4646_v30 = vmul.f32 %v6790_v57, %v4612_v45  ;;  %v9389_v34 = vmul.f32 %v6790_v57, %v4613_v4  ;;  %v9394_v58 = vmul.f32 %v6790_v57, %v4614_v27  ;;  %v9399_v6 = vmul.f32 %v6790_v57, %v4615_v42  ;;  %v4669_v45 = vld [vmem:[%s7021_s8 + $0x68] sm:$0xff]  ;;  %v4672_v27 = vld [vmem:[%s7021_s8 + $0x80] sm:$0xff]  ;;  %v4675_v42 = vld [vmem:[%s7021_s8 + $0x98] sm:$0xff] }
 0x4cc   : > { %v9407_v9 = vmul.f32 %v6790_v57, %v4616_v52  ;;  %v9412_v8 = vmul.f32 %v6790_v57, %v4617_v22  ;;  %v9417_v15 = vmul.f32 %v6790_v57, %v4618_v25  ;;  %v9422_v4 = vmul.f32 %v6790_v57, %v4620_v39  ;;  %v4673_v25 = vld [vmem:[%s7021_s8 + $0x88] sm:$0xff]  ;;  %v4676_v39 = vld [vmem:[%s7021_s8 + $0xa0] sm:$0xff] }
 0x4cd   : > { %v9430_v51 = vmul.f32 %v6790_v57, %v4621_v50  ;;  %v4688_v52 = vadd.f32 %v4656_v17, %v4624_v24  ;;  %v4689_v37 = vadd.f32 %v4657_v55, %v4625_v0  ;;  %v4690_v22 = vadd.f32 %v4658_v13, %v4626_v10  ;;  %v4680_v10 = vld [vmem:[%s7021_s8 + $0xc0] sm:$0xff]  ;;  %v4687_v17 = vld [vmem:[%s7021_s8 + $0xf8] sm:$0xff] }
 0x4ce   : > { %9620 = vst [vmem:[#allocation13_spill] sm:$0xff] %v9422_v4  ;;  %v4691_v11 = vadd.f32 %v4659_v28, %v4627_v19  ;;  %v4692_v53 = vadd.f32 %v4660_v47, %v4628_v40  ;;  %v4693_v1 = vadd.f32 %v4661_v63, %v4629_v7  ;;  %v4694_v2 = vadd.f32 %v4662_v56, %v4630_v54  ;;  %v4679_v4 = vld [vmem:[%s7021_s8 + $0xb8] sm:$0xff]  ;;  %v4681_v40 = vld [vmem:[%s7021_s8 + $0xc8] sm:$0xff]  ;;  %v4684_v13 = vld [vmem:[%s7021_s8 + $0xe0] sm:$0xff] }
 0x4cf   : > { %v4695_v50 = vadd.f32 %v4663_v48, %v4631_v44  ;;  %v4696_v57 = vadd.f32 %v4664_v62, %v4632_v31  ;;  %v4697_v24 = vadd.f32 %v4665_v49, %v4633_v46  ;;  %v4698_v0 = vadd.f32 %v4666_v36, %v4634_v23  ;;  %4720 = vst [vmem:[%s9361_s26] sm:$0xff] %v4688_v52  ;;  %v4683_v19 = vld [vmem:[%s7021_s8 + $0xd8] sm:$0xff]  ;;  %v4686_v46 = vld [vmem:[%s7021_s8 + $0xf0] sm:$0xff] }
 0x4d0   : > { %4721 = vst [vmem:[%s9361_s26 + $0x8] sm:$0xff] %v4689_v37  ;;  %4722 = vst [vmem:[%s9361_s26 + $0x10] sm:$0xff] %v4690_v22  ;;  %v4699_v7 = vadd.f32 %v4667_v14, %v4635_v61  ;;  %v4700_v54 = vadd.f32 %v4668_v3, %v4636_v43  ;;  %v4701_v44 = vadd.f32 %v4669_v45, %v4637_v29 }
 0x4d1   : > { %v4702_v31 = vadd.f32 %v4670_v5, %v4638_v41  ;;  %4723 = vst [vmem:[%s9361_s26 + $0x18] sm:$0xff] %v4691_v11  ;;  %4724 = vst [vmem:[%s9361_s26 + $0x20] sm:$0xff] %v4692_v53  ;;  %v4703_v23 = vadd.f32 %v4671_v35, %v9364_v60  ;;  %v4704_v61 = vadd.f32 %v4672_v27, %v9366_v32 }
 0x4d2   : > { %4725 = vst [vmem:[%s9361_s26 + $0x28] sm:$0xff] %v4693_v1  ;;  %4726 = vst [vmem:[%s9361_s26 + $0x30] sm:$0xff] %v4694_v2  ;;  %v4705_v43 = vadd.f32 %v4673_v25, %v9368_v20  ;;  %v4706_v29 = vadd.f32 %v4674_v38, %v4642_v33  ;;  %v4707_v28 = vadd.f32 %v4675_v42, %v9374_v12 }
 0x4d3   : > { %4727 = vst [vmem:[%s9361_s26 + $0x38] sm:$0xff] %v4695_v50  ;;  %4728 = vst [vmem:[%s9361_s26 + $0x40] sm:$0xff] %v4696_v57  ;;  %v4708_v55 = vadd.f32 %v4676_v39, %v9376_v16  ;;  %v4709_v56 = vadd.f32 %v4677_v18, %v9378_v59  ;;  %v4710_v47 = vadd.f32 %v4678_v21, %v4646_v30 }
 0x4d4   : > { %4729 = vst [vmem:[%s9361_s26 + $0x48] sm:$0xff] %v4697_v24  ;;  %4730 = vst [vmem:[%s9361_s26 + $0x50] sm:$0xff] %v4698_v0  ;;  %v4711_v41 = vadd.f32 %v4679_v4, %v9389_v34  ;;  %v4712_v60 = vadd.f32 %v4680_v10, %v9394_v58  ;;  %v4713_v32 = vadd.f32 %v4681_v40, %v9399_v6 }
 0x4d5   : > { %4731 = vst [vmem:[%s9361_s26 + $0x58] sm:$0xff] %v4699_v7  ;;  %4732 = vst [vmem:[%s9361_s26 + $0x60] sm:$0xff] %v4700_v54  ;;  %v4714_v20 = vadd.f32 %v4682_v26, %v9407_v9  ;;  %v4715_v48 = vadd.f32 %v4683_v19, %v9412_v8  ;;  %v4716_v63 = vadd.f32 %v4684_v13, %v9417_v15  ;;  %v9621_v36 = vld [vmem:[#allocation13_spill] sm:$0xff] }
 0x4d6   : > { %4733 = vst [vmem:[%s9361_s26 + $0x68] sm:$0xff] %v4701_v44  ;;  %4734 = vst [vmem:[%s9361_s26 + $0x70] sm:$0xff] %v4702_v31  ;;  %v4718_v62 = vadd.f32 %v4686_v46, %v9621_v36  ;;  %v4719_v33 = vadd.f32 %v4687_v17, %v9430_v51 }
 0x4d7   : > { %4735 = vst [vmem:[%s9361_s26 + $0x78] sm:$0xff] %v4703_v23  ;;  %4736 = vst [vmem:[%s9361_s26 + $0x80] sm:$0xff] %v4704_v61 }
 0x4d8   : > { %4737 = vst [vmem:[%s9361_s26 + $0x88] sm:$0xff] %v4705_v43  ;;  %4738 = vst [vmem:[%s9361_s26 + $0x90] sm:$0xff] %v4706_v29 }
 0x4d9   : > { %4739 = vst [vmem:[%s9361_s26 + $0x98] sm:$0xff] %v4707_v28  ;;  %4740 = vst [vmem:[%s9361_s26 + $0xa0] sm:$0xff] %v4708_v55 }
 0x4da   : > { %4741 = vst [vmem:[%s9361_s26 + $0xa8] sm:$0xff] %v4709_v56  ;;  %4742 = vst [vmem:[%s9361_s26 + $0xb0] sm:$0xff] %v4710_v47 }
 0x4db   : > { %4743 = vst [vmem:[%s9361_s26 + $0xb8] sm:$0xff] %v4711_v41  ;;  %4744 = vst [vmem:[%s9361_s26 + $0xc0] sm:$0xff] %v4712_v60 }
 0x4dc   : > { %4745 = vst [vmem:[%s9361_s26 + $0xc8] sm:$0xff] %v4713_v32  ;;  %4746 = vst [vmem:[%s9361_s26 + $0xd0] sm:$0xff] %v4714_v20 }
 0x4dd   : > { %4747 = vst [vmem:[%s9361_s26 + $0xd8] sm:$0xff] %v4715_v48  ;;  %4748 = vst [vmem:[%s9361_s26 + $0xe0] sm:$0xff] %v4716_v63 }
 0x4de   : > { %4750 = vst [vmem:[%s9361_s26 + $0xf0] sm:$0xff] %v4718_v62  ;;  %4751 = vst [vmem:[%s9361_s26 + $0xf8] sm:$0xff] %v4719_v33 }
 0x4df   : > { %6804 = shalt.err (!%p6801_p3)
}
 0x4e0   : > { %s6805_s9 = scalar_lea.hbm %s9480_s30, 4096  ;;  %s6809_s17 = scalar_lea.hbm %s9548_s3, 8192 }
 0x4e1   : > { %p6806_p4 = scmp.ne.s32.totalorder %s9480_s30, %s6805_s9  ;;  %p6810_p9 = scmp.lt.u32.totalorder %s9480_s30, %s9548_s3 }
 0x4e2   : > { %p6811_p10 = scmp.lt.u32.totalorder %s6809_s17, %s6805_s9  ;;  %p6813_p12 = scmp.lt.u32.totalorder %s6805_s9, %s9480_s30 }
 0x4e3   : > { %p6807_p7 = pnand %p6806_p4, %p6916_p5 }
 0x4e4   : > { %p6812_p11 = por %p6811_p10, %p6810_p9 }
 0x4e5   : > { %p6808_p8 = pneg %p6807_p7 }
 0x4e6   : > { %p6814_p13 = por %p6813_p12, %p6812_p11 }
 0x4e8   : > { %p6815_p0 = pnand %p6814_p13, %p6808_p8 }
 0x4ea   : > { %6818 = shalt.err (!%p6815_p0)
}
 0x4eb   : > { %s6856_s24 = smov 128   ;;  %s6857_s25 = smov 8  }
 0x4ec   : > { %6602 = dma.vmem_to_hbm [thread:$0]  (%p6916_p5), %s9484_s28, 4096, %s9480_s30, %s9504_s16, %s6856_s24, %s6856_s24, %s6857_s25  }
 0x4ed PF: > { %p6608_p1 = scmp.ge.s32.totalorder %s6853_s15, 2  ;;  %s4781_s26 = sand.u32 1, %s6841_s12  }
 0x4ee   : > { %s4782_s27 = scalar_lea.sflag [#allocation4], %s4781_s26 }
 0x4ef   : > { %p6605_p2 = pnand %p6608_p1, %p6920_p6 }
 0x4f1   : > { %6836 = dma.done.wait (!%p6605_p2), %s4782_s27, 4096  }
 0x4f2   : > { %6838 = vsyncadd (!%p6605_p2), %s4782_s27, 4294963200  ;;  %p13_p3 = scmp.ge.s32.totalorder %s6903_s18, 4   ;;  %s9622_s12 = smov %s6845_s13 }
 0x4f3   : > { %s9623_s13 = smov %s6849_s14  ;;  %s9624_s14 = smov %s6914_s21 }
 0x4f4   : > { %s9625_s15 = smov %s6903_s18  ;;  %15 = sbr.rel (!%p13_p3) target bundleno = 3 (0x3), region = 73 }
 0x4fb   :  { %4787 = vsyncpa [#allocation4], 1 }
 0x4fc   :  { %4789 = vsyncpa [#allocation4 + $0x1], 1 }

</bundles_post_ra>
